<compile_context>
chip_gen: v6e
topology: v6e:2x2x1
jax: 0.10.0
libtpu: 0.0.40
codegen_flags: <defaults>
</compile_context>

<pallas_src>
import functools

import jax
import jax.numpy as jnp
from jax.experimental import pallas as pl
from jax.experimental.pallas import tpu as pltpu

MAX_LOGSTD = 10.0
GEN_EPS = 1e-7        # GENConv message epsilon
LANE = 128            # lane width: channel dims padded to this


def _round_up(v, m):
    return ((v + m - 1) // m) * m


def _pad2(a, rows, cols, dtype=None):
    """Zero-pad a 2-D array to (rows, cols) and optionally cast."""
    dtype = a.dtype if dtype is None else dtype
    out = jnp.zeros((rows, cols), dtype)
    return out.at[: a.shape[0], : a.shape[1]].set(a.astype(dtype))


# ------------------------------ fused kernel --------------------------------

def _fused_kernel(n_aggr,
                  x_ref, wlin_ref, blin_ref, gsrc_ref, sdst_ref,
                  w1_ref, w2_ref, noise_ref, t_ref,
                  zrec_ref, z_ref):
    f32 = jnp.float32
    bf16 = jnp.bfloat16

    gsrc = gsrc_ref[...]          # [E, N]  bf16 (exact 0/1)
    sdst = sdst_ref[...]          # [N, E]  bf16 (exact 0/1)

    def safe_div(numer, denom):
        # isolated / padded nodes: denom == 0 -> divide by 1, numer is 0 -> aggr = 0
        denom_safe = denom + (denom == 0.0).astype(f32)
        return numer * pl.reciprocal(denom_safe, approx=True)

    def shift(msg_max, msg_min, t):
        # per-channel max of t*msg, valid for either sign of the learned t:
        # max_e(t*msg_e) = t*max(msg) if t>=0 else t*min(msg).
        return jnp.maximum(t * msg_max, t * msg_min)

    def gen_mlp(inp, l):
        # 2-layer MLP (bias=False; BatchNorm == identity in eval mode)
        h1 = jnp.maximum(
            jnp.dot(inp.astype(bf16), w1_ref[l], preferred_element_type=f32), 0.0)
        return jnp.dot(h1.astype(bf16), w2_ref[l], preferred_element_type=f32)

    def gen_conv(h, l):
        # gather source-node features for every edge: [E, C]
        xj = jnp.dot(gsrc, h.astype(bf16), preferred_element_type=f32)
        msg = jnp.maximum(xj, 0.0) + GEN_EPS
        t = t_ref[l]
        m = shift(jnp.max(msg, axis=0, keepdims=True),
                  jnp.min(msg, axis=0, keepdims=True), t)
        e = jnp.exp(msg * t - m)                                  # f32 exp (v5e-safe)
        # ONE 256-wide scatter matmul: [denom | numer] packed on the lane axis.
        packed = jnp.concatenate([e.astype(bf16), (msg * e).astype(bf16)], axis=1)
        res = jnp.dot(sdst, packed, preferred_element_type=f32)   # [N, 2C]
        aggr = safe_div(res[:, LANE:], res[:, :LANE])
        return gen_mlp(aggr + h, l)                               # residual + MLP

    # ---- n_linear:  x @ W + b ----
    h = (jnp.dot(x_ref[...].astype(bf16), wlin_ref[...],
                 preferred_element_type=f32) + blin_ref[...])

    # ---- encoder: n_aggr x (GENConv -> relu -> dropout[identity]) ----
    for l in range(n_aggr):
        h = jnp.maximum(gen_conv(h, l), 0.0)

    # ---- mu / logstd heads: share gather + message + shift statistics,
    #      single packed 512-wide scatter matmul for both heads ----
    xj = jnp.dot(gsrc, h.astype(bf16), preferred_element_type=f32)
    msg = jnp.maximum(xj, 0.0) + GEN_EPS
    msg_max = jnp.max(msg, axis=0, keepdims=True)
    msg_min = jnp.min(msg, axis=0, keepdims=True)

    t_mu = t_ref[n_aggr]
    t_ls = t_ref[n_aggr + 1]
    e_mu = jnp.exp(msg * t_mu - shift(msg_max, msg_min, t_mu))
    e_ls = jnp.exp(msg * t_ls - shift(msg_max, msg_min, t_ls))
    packed = jnp.concatenate(
        [e_mu.astype(bf16), (msg * e_mu).astype(bf16),
         e_ls.astype(bf16), (msg * e_ls).astype(bf16)], axis=1)      # [E, 4C]
    res = jnp.dot(sdst, packed, preferred_element_type=f32)          # [N, 4C]
    aggr_mu = safe_div(res[:, LANE:2 * LANE], res[:, :LANE])
    aggr_ls = safe_div(res[:, 3 * LANE:], res[:, 2 * LANE:3 * LANE])

    mu = gen_mlp(aggr_mu + h, n_aggr)
    logstd = jnp.minimum(gen_mlp(aggr_ls + h, n_aggr + 1), MAX_LOGSTD)  # clamp(max=10)

    # ---- reparametrize: z = mu + noise * exp(logstd) (fused, stays in VMEM) ----
    z = mu + noise_ref[...] * jnp.exp(logstd)
    z_ref[...] = z

    # ---- decoder: n_aggr x (GENConv -> relu -> dropout[identity]) ----
    xh = z
    for a in range(n_aggr):
        xh = jnp.maximum(gen_conv(xh, n_aggr + 2 + a), 0.0)
    zrec_ref[...] = xh


def _vmem_limit_bytes(n_pad, e_pad, num_layers):
    """Scoped-VMEM request sized from the actually-resident buffers."""
    szb, szf = 2, 4
    onehots = 2 * e_pad * n_pad * szb                       # gsrc + sdst (bf16)
    weights = (1 + 2 * num_layers) * LANE * LANE * szb + LANE * szf
    node_bufs = 4 * n_pad * LANE * szf                      # x, noise, z, z_reconst
    edge_tmps = 10 * e_pad * LANE * szf                     # msg / e / packed temporaries
    total = 2 * (onehots + weights + node_bufs) + edge_tmps + (4 << 20)
    return int(min(max(total, 32 << 20), 64 << 20))         # 64MiB cap: safe on v7x


def deepsad_gvae_fused(params, x_pad, gsrc, sdst, noise_pad, n_aggr):
    n_pad = x_pad.shape[0]
    e_pad = gsrc.shape[0]
    num_layers = params["w1"].shape[0]
    kernel = functools.partial(_fused_kernel, n_aggr)
    vm = pl.BlockSpec(memory_space=pltpu.MemorySpace.VMEM)
    sm = pl.BlockSpec(memory_space=pltpu.MemorySpace.SMEM)
    zrec_pad, z_pad = pl.pallas_call(
        kernel,
        out_shape=(jax.ShapeDtypeStruct((n_pad, LANE), jnp.float32),
                   jax.ShapeDtypeStruct((n_pad, LANE), jnp.float32)),
        in_specs=[vm, vm, vm, vm, vm, vm, vm, vm, sm],
        out_specs=(vm, vm),
        compiler_params=pltpu.CompilerParams(
            vmem_limit_bytes=_vmem_limit_bytes(n_pad, e_pad, num_layers)),
    )(x_pad, params["wlin"], params["blin"], gsrc, sdst,
      params["w1"], params["w2"], noise_pad, params["t"])
    return zrec_pad, z_pad


# --------------------------- parameter init (synthetic) ---------------------

def init_params(key, n_channels, hidden_channels, n_aggr, expansion=2):
    num_layers = 2 * n_aggr + 2                       # enc..., mu, logstd, dec...
    mid = hidden_channels * expansion
    assert max(n_channels, hidden_channels, mid) <= LANE, "channels must fit one lane tile"

    keys = jax.random.split(key, 1 + 2 * num_layers)
    wlin = (jax.random.normal(keys[0], (n_channels, hidden_channels), jnp.float32)
            / jnp.sqrt(n_channels))
    blin = jnp.zeros((1, hidden_channels), jnp.float32)

    w1s, w2s, ts = [], [], []
    for l in range(num_layers):
        cin = hidden_channels
        cout = n_channels if l == num_layers - 1 else hidden_channels
        w1 = (jax.random.normal(keys[1 + 2 * l], (cin, mid), jnp.float32)
              / jnp.sqrt(cin))
        w2 = (jax.random.normal(keys[2 + 2 * l], (mid, cout), jnp.float32)
              / jnp.sqrt(mid))
        w1s.append(_pad2(w1, LANE, LANE, jnp.bfloat16))
        w2s.append(_pad2(w2, LANE, LANE, jnp.bfloat16))
        ts.append(1.0)                                # learn_t init = 1.0

    return {
        "wlin": _pad2(wlin, LANE, LANE, jnp.bfloat16),
        "blin": _pad2(blin, 1, LANE, jnp.float32),
        "w1": jnp.stack(w1s),                         # [L, 128, 128] bf16
        "w2": jnp.stack(w2s),                         # [L, 128, 128] bf16
        "t": jnp.asarray(ts, jnp.float32),            # [L] in SMEM
    }


# --------------------------- host-side graph densify -------------------------

def build_dense_graph(src, dst, n_nodes):
    """Lane-dense (128-multiple) zero-padded one-hot gather/scatter matrices.

    Padded edges have all-zero rows/columns (never gathered from / scattered to),
    padded nodes are never referenced by real edges, so padding is inert.
    """
    e = src.shape[0]
    n_pad = max(_round_up(n_nodes, LANE), LANE)
    e_pad = max(_round_up(e, LANE), LANE)
    gsrc = jnp.zeros((e_pad, n_pad), jnp.bfloat16)
    gsrc = gsrc.at[:e].set(jax.nn.one_hot(src, n_pad, dtype=jnp.bfloat16))
    sdst = jnp.zeros((n_pad, e_pad), jnp.bfloat16)
    sdst = sdst.at[:, :e].set(jax.nn.one_hot(dst, n_pad, dtype=jnp.bfloat16).T)
    return gsrc, sdst, n_pad, e_pad


# ------------------------------- forward -------------------------------------

def deepsad_gvae_forward(params, x, src, dst, eps_key,
                         n_channels, hidden_channels, n_aggr, centers=None):
    n = x.shape[0]
    gsrc, sdst, n_pad, _ = build_dense_graph(src, dst, n)
    x_pad = _pad2(x, n_pad, LANE, jnp.float32)
    # reparametrization noise (padded rows/channels zero so they stay inert)
    noise = jax.random.normal(eps_key, (n, hidden_channels), jnp.float32)
    noise_pad = _pad2(noise, n_pad, LANE, jnp.float32)

    zrec_pad, z_pad = deepsad_gvae_fused(params, x_pad, gsrc, sdst,
                                         noise_pad, n_aggr)
    z = z_pad[:n, :hidden_channels]
    if centers is not None:
        return z
    return zrec_pad[:n, :n_channels], z


# --------------------------------- main ---------------------------------------

if __name__ == "__main__":
    key = jax.random.PRNGKey(0)
    N, E = 16, 32                              # nodes, edges (padded to 128 inside)
    n_channels, hidden_channels = 8, 32
    n_layers, n_aggr, dropout = 2, 2, 0.1      # n_layers=2 -> 2-layer MLP in each GENConv

    k_x, k_p, k_eps = jax.random.split(key, 3)
    x = jax.random.normal(k_x, (N, n_channels), jnp.float32)

    # deterministic edge_index: src = e % N, dst = (3e + 1) % N
    src = jnp.arange(E, dtype=jnp.int32) % N
    dst = (jnp.arange(E, dtype=jnp.int32) * 3 + 1) % N

    params = init_params(k_p, n_channels, hidden_channels, n_aggr)

    z_reconst, z = deepsad_gvae_forward(params, x, src, dst, k_eps,
                                        n_channels, hidden_channels, n_aggr,
                                        centers=None)
    jax.block_until_ready((z_reconst, z))

    assert z_reconst.shape == (N, n_channels)
    assert z.shape == (N, hidden_channels)
    assert bool(jnp.all(jnp.isfinite(z_reconst))) and bool(jnp.all(jnp.isfinite(z)))
    print("KERNEL_OK")
</pallas_src>

<mosaic_0001>
module attributes {stable_mosaic.version = 11 : i64} {
  func.func @_fused_kernel(%arg0: memref<128x128xf32, #tpu.memory_space<vmem>>, %arg1: memref<128x128xbf16, #tpu.memory_space<vmem>>, %arg2: memref<1x128xf32, #tpu.memory_space<vmem>>, %arg3: memref<128x128xbf16, #tpu.memory_space<vmem>>, %arg4: memref<128x128xbf16, #tpu.memory_space<vmem>>, %arg5: memref<6x128x128xbf16, #tpu.memory_space<vmem>>, %arg6: memref<6x128x128xbf16, #tpu.memory_space<vmem>>, %arg7: memref<128x128xf32, #tpu.memory_space<vmem>>, %arg8: memref<6xf32, #tpu.memory_space<smem>>, %arg9: memref<128x128xf32, #tpu.memory_space<vmem>>, %arg10: memref<128x128xf32, #tpu.memory_space<vmem>>) attributes {dimension_semantics = [], scalar_prefetch = 0 : i64, scratch_operands = 0 : i64, tpu.core_type = #tpu.core_type<tc>} {
    %c0 = arith.constant 0 : index
    %c0_0 = arith.constant 0 : index
    %0 = vector.load %arg3[%c0, %c0_0] : memref<128x128xbf16, #tpu.memory_space<vmem>>, vector<128x128xbf16>
    %c0_1 = arith.constant 0 : index
    %c0_2 = arith.constant 0 : index
    %1 = vector.load %arg4[%c0_1, %c0_2] : memref<128x128xbf16, #tpu.memory_space<vmem>>, vector<128x128xbf16>
    %c0_3 = arith.constant 0 : index
    %c0_4 = arith.constant 0 : index
    %2 = vector.load %arg0[%c0_3, %c0_4] : memref<128x128xf32, #tpu.memory_space<vmem>>, vector<128x128xf32>
    %3 = arith.truncf %2 : vector<128x128xf32> to vector<128x128xbf16>
    %c0_5 = arith.constant 0 : index
    %c0_6 = arith.constant 0 : index
    %4 = vector.load %arg1[%c0_5, %c0_6] : memref<128x128xbf16, #tpu.memory_space<vmem>>, vector<128x128xbf16>
    %cst = arith.constant dense<0.000000e+00> : vector<128x128xf32>
    %5 = tpu.matmul %3, %4, %cst {dimension_numbers = #tpu.dot_dimension_numbers<[1], [0], [0], [1], [0, 0, 1, 1], [], []>} : vector<128x128xbf16>, vector<128x128xbf16>, vector<128x128xf32> -> vector<128x128xf32>
    %c0_7 = arith.constant 0 : index
    %c0_8 = arith.constant 0 : index
    %6 = vector.load %arg2[%c0_7, %c0_8] : memref<1x128xf32, #tpu.memory_space<vmem>>, vector<1x128xf32>
    %7 = vector.broadcast %6 : vector<1x128xf32> to vector<128x128xf32>
    %8 = arith.addf %5, %7 : vector<128x128xf32>
    %9 = arith.truncf %8 : vector<128x128xf32> to vector<128x128xbf16>
    %cst_9 = arith.constant dense<0.000000e+00> : vector<128x128xf32>
    %10 = tpu.matmul %0, %9, %cst_9 {dimension_numbers = #tpu.dot_dimension_numbers<[1], [0], [0], [1], [0, 0, 1, 1], [], []>} : vector<128x128xbf16>, vector<128x128xbf16>, vector<128x128xf32> -> vector<128x128xf32>
    %cst_10 = arith.constant 0.000000e+00 : f32
    %11 = vector.broadcast %cst_10 : f32 to vector<128x128xf32>
    %12 = arith.maximumf %10, %11 : vector<128x128xf32>
    %cst_11 = arith.constant 1.000000e-07 : f32
    %13 = vector.broadcast %cst_11 : f32 to vector<128x128xf32>
    %14 = arith.addf %12, %13 : vector<128x128xf32>
    %c0_12 = arith.constant 0 : index
    %15 = memref.load %arg8[%c0_12] : memref<6xf32, #tpu.memory_space<smem>>
    %cst_13 = arith.constant dense<0xFF800000> : vector<128xf32>
    %16 = vector.multi_reduction <maximumf>, %14, %cst_13 [0] : vector<128x128xf32> to vector<128xf32>
    %17 = vector.shape_cast %16 : vector<128xf32> to vector<1x128xf32>
    %cst_14 = arith.constant dense<0x7F800000> : vector<128xf32>
    %18 = vector.multi_reduction <minimumf>, %14, %cst_14 [0] : vector<128x128xf32> to vector<128xf32>
    %19 = vector.shape_cast %18 : vector<128xf32> to vector<1x128xf32>
    %20 = vector.broadcast %15 : f32 to vector<1x128xf32>
    %21 = arith.mulf %20, %17 : vector<1x128xf32>
    %22 = vector.broadcast %15 : f32 to vector<1x128xf32>
    %23 = arith.mulf %22, %19 : vector<1x128xf32>
    %24 = arith.maximumf %21, %23 : vector<1x128xf32>
    %25 = vector.broadcast %15 : f32 to vector<128x128xf32>
    %26 = arith.mulf %14, %25 : vector<128x128xf32>
    %27 = vector.broadcast %24 : vector<1x128xf32> to vector<128x128xf32>
    %28 = arith.subf %26, %27 : vector<128x128xf32>
    %29 = math.exp %28 : vector<128x128xf32>
    %30 = arith.truncf %29 : vector<128x128xf32> to vector<128x128xbf16>
    %31 = arith.mulf %14, %29 : vector<128x128xf32>
    %32 = arith.truncf %31 : vector<128x128xf32> to vector<128x128xbf16>
    %33 = tpu.concatenate %30, %32 in 1 : vector<128x128xbf16>, vector<128x128xbf16> -> vector<128x256xbf16>
    %cst_15 = arith.constant dense<0.000000e+00> : vector<128x256xf32>
    %34 = tpu.matmul %1, %33, %cst_15 {dimension_numbers = #tpu.dot_dimension_numbers<[1], [0], [0], [1], [0, 0, 1, 1], [], []>} : vector<128x128xbf16>, vector<128x256xbf16>, vector<128x256xf32> -> vector<128x256xf32>
    %35 = vector.extract_strided_slice %34 {offsets = [0, 128], sizes = [128, 128], strides = [1, 1]} : vector<128x256xf32> to vector<128x128xf32>
    %36 = vector.extract_strided_slice %34 {offsets = [0, 0], sizes = [128, 128], strides = [1, 1]} : vector<128x256xf32> to vector<128x128xf32>
    %cst_16 = arith.constant 0.000000e+00 : f32
    %37 = vector.broadcast %cst_16 : f32 to vector<128x128xf32>
    %38 = arith.cmpf oeq, %36, %37 : vector<128x128xf32>
    %39 = arith.extui %38 : vector<128x128xi1> to vector<128x128xi32>
    %40 = arith.sitofp %39 : vector<128x128xi32> to vector<128x128xf32>
    %41 = arith.addf %36, %40 : vector<128x128xf32>
    %42 = tpu.reciprocal %41 {approx = true} : vector<128x128xf32> -> vector<128x128xf32>
    %43 = arith.mulf %35, %42 : vector<128x128xf32>
    %44 = arith.addf %43, %8 : vector<128x128xf32>
    %45 = arith.truncf %44 : vector<128x128xf32> to vector<128x128xbf16>
    %c0_17 = arith.constant 0 : index
    %c0_18 = arith.constant 0 : index
    %c0_19 = arith.constant 0 : index
    %46 = vector.load %arg5[%c0_17, %c0_18, %c0_19] : memref<6x128x128xbf16, #tpu.memory_space<vmem>>, vector<1x128x128xbf16>
    %47 = vector.shape_cast %46 : vector<1x128x128xbf16> to vector<128x128xbf16>
    %cst_20 = arith.constant dense<0.000000e+00> : vector<128x128xf32>
    %48 = tpu.matmul %45, %47, %cst_20 {dimension_numbers = #tpu.dot_dimension_numbers<[1], [0], [0], [1], [0, 0, 1, 1], [], []>} : vector<128x128xbf16>, vector<128x128xbf16>, vector<128x128xf32> -> vector<128x128xf32>
    %cst_21 = arith.constant 0.000000e+00 : f32
    %49 = vector.broadcast %cst_21 : f32 to vector<128x128xf32>
    %50 = arith.maximumf %48, %49 : vector<128x128xf32>
    %51 = arith.truncf %50 : vector<128x128xf32> to vector<128x128xbf16>
    %c0_22 = arith.constant 0 : index
    %c0_23 = arith.constant 0 : index
    %c0_24 = arith.constant 0 : index
    %52 = vector.load %arg6[%c0_22, %c0_23, %c0_24] : memref<6x128x128xbf16, #tpu.memory_space<vmem>>, vector<1x128x128xbf16>
    %53 = vector.shape_cast %52 : vector<1x128x128xbf16> to vector<128x128xbf16>
    %cst_25 = arith.constant dense<0.000000e+00> : vector<128x128xf32>
    %54 = tpu.matmul %51, %53, %cst_25 {dimension_numbers = #tpu.dot_dimension_numbers<[1], [0], [0], [1], [0, 0, 1, 1], [], []>} : vector<128x128xbf16>, vector<128x128xbf16>, vector<128x128xf32> -> vector<128x128xf32>
    %cst_26 = arith.constant 0.000000e+00 : f32
    %55 = vector.broadcast %cst_26 : f32 to vector<128x128xf32>
    %56 = arith.maximumf %54, %55 : vector<128x128xf32>
    %57 = arith.truncf %56 : vector<128x128xf32> to vector<128x128xbf16>
    %cst_27 = arith.constant dense<0.000000e+00> : vector<128x128xf32>
    %58 = tpu.matmul %0, %57, %cst_27 {dimension_numbers = #tpu.dot_dimension_numbers<[1], [0], [0], [1], [0, 0, 1, 1], [], []>} : vector<128x128xbf16>, vector<128x128xbf16>, vector<128x128xf32> -> vector<128x128xf32>
    %cst_28 = arith.constant 0.000000e+00 : f32
    %59 = vector.broadcast %cst_28 : f32 to vector<128x128xf32>
    %60 = arith.maximumf %58, %59 : vector<128x128xf32>
    %cst_29 = arith.constant 1.000000e-07 : f32
    %61 = vector.broadcast %cst_29 : f32 to vector<128x128xf32>
    %62 = arith.addf %60, %61 : vector<128x128xf32>
    %c1 = arith.constant 1 : index
    %63 = memref.load %arg8[%c1] : memref<6xf32, #tpu.memory_space<smem>>
    %cst_30 = arith.constant dense<0xFF800000> : vector<128xf32>
    %64 = vector.multi_reduction <maximumf>, %62, %cst_30 [0] : vector<128x128xf32> to vector<128xf32>
    %65 = vector.shape_cast %64 : vector<128xf32> to vector<1x128xf32>
    %cst_31 = arith.constant dense<0x7F800000> : vector<128xf32>
    %66 = vector.multi_reduction <minimumf>, %62, %cst_31 [0] : vector<128x128xf32> to vector<128xf32>
    %67 = vector.shape_cast %66 : vector<128xf32> to vector<1x128xf32>
    %68 = vector.broadcast %63 : f32 to vector<1x128xf32>
    %69 = arith.mulf %68, %65 : vector<1x128xf32>
    %70 = vector.broadcast %63 : f32 to vector<1x128xf32>
    %71 = arith.mulf %70, %67 : vector<1x128xf32>
    %72 = arith.maximumf %69, %71 : vector<1x128xf32>
    %73 = vector.broadcast %63 : f32 to vector<128x128xf32>
    %74 = arith.mulf %62, %73 : vector<128x128xf32>
    %75 = vector.broadcast %72 : vector<1x128xf32> to vector<128x128xf32>
    %76 = arith.subf %74, %75 : vector<128x128xf32>
    %77 = math.exp %76 : vector<128x128xf32>
    %78 = arith.truncf %77 : vector<128x128xf32> to vector<128x128xbf16>
    %79 = arith.mulf %62, %77 : vector<128x128xf32>
    %80 = arith.truncf %79 : vector<128x128xf32> to vector<128x128xbf16>
    %81 = tpu.concatenate %78, %80 in 1 : vector<128x128xbf16>, vector<128x128xbf16> -> vector<128x256xbf16>
    %cst_32 = arith.constant dense<0.000000e+00> : vector<128x256xf32>
    %82 = tpu.matmul %1, %81, %cst_32 {dimension_numbers = #tpu.dot_dimension_numbers<[1], [0], [0], [1], [0, 0, 1, 1], [], []>} : vector<128x128xbf16>, vector<128x256xbf16>, vector<128x256xf32> -> vector<128x256xf32>
    %83 = vector.extract_strided_slice %82 {offsets = [0, 128], sizes = [128, 128], strides = [1, 1]} : vector<128x256xf32> to vector<128x128xf32>
    %84 = vector.extract_strided_slice %82 {offsets = [0, 0], sizes = [128, 128], strides = [1, 1]} : vector<128x256xf32> to vector<128x128xf32>
    %cst_33 = arith.constant 0.000000e+00 : f32
    %85 = vector.broadcast %cst_33 : f32 to vector<128x128xf32>
    %86 = arith.cmpf oeq, %84, %85 : vector<128x128xf32>
    %87 = arith.extui %86 : vector<128x128xi1> to vector<128x128xi32>
    %88 = arith.sitofp %87 : vector<128x128xi32> to vector<128x128xf32>
    %89 = arith.addf %84, %88 : vector<128x128xf32>
    %90 = tpu.reciprocal %89 {approx = true} : vector<128x128xf32> -> vector<128x128xf32>
    %91 = arith.mulf %83, %90 : vector<128x128xf32>
    %92 = arith.addf %91, %56 : vector<128x128xf32>
    %93 = arith.truncf %92 : vector<128x128xf32> to vector<128x128xbf16>
    %c1_34 = arith.constant 1 : index
    %c0_35 = arith.constant 0 : index
    %c0_36 = arith.constant 0 : index
    %94 = vector.load %arg5[%c1_34, %c0_35, %c0_36] : memref<6x128x128xbf16, #tpu.memory_space<vmem>>, vector<1x128x128xbf16>
    %95 = vector.shape_cast %94 : vector<1x128x128xbf16> to vector<128x128xbf16>
    %cst_37 = arith.constant dense<0.000000e+00> : vector<128x128xf32>
    %96 = tpu.matmul %93, %95, %cst_37 {dimension_numbers = #tpu.dot_dimension_numbers<[1], [0], [0], [1], [0, 0, 1, 1], [], []>} : vector<128x128xbf16>, vector<128x128xbf16>, vector<128x128xf32> -> vector<128x128xf32>
    %cst_38 = arith.constant 0.000000e+00 : f32
    %97 = vector.broadcast %cst_38 : f32 to vector<128x128xf32>
    %98 = arith.maximumf %96, %97 : vector<128x128xf32>
    %99 = arith.truncf %98 : vector<128x128xf32> to vector<128x128xbf16>
    %c1_39 = arith.constant 1 : index
    %c0_40 = arith.constant 0 : index
    %c0_41 = arith.constant 0 : index
    %100 = vector.load %arg6[%c1_39, %c0_40, %c0_41] : memref<6x128x128xbf16, #tpu.memory_space<vmem>>, vector<1x128x128xbf16>
    %101 = vector.shape_cast %100 : vector<1x128x128xbf16> to vector<128x128xbf16>
    %cst_42 = arith.constant dense<0.000000e+00> : vector<128x128xf32>
    %102 = tpu.matmul %99, %101, %cst_42 {dimension_numbers = #tpu.dot_dimension_numbers<[1], [0], [0], [1], [0, 0, 1, 1], [], []>} : vector<128x128xbf16>, vector<128x128xbf16>, vector<128x128xf32> -> vector<128x128xf32>
    %cst_43 = arith.constant 0.000000e+00 : f32
    %103 = vector.broadcast %cst_43 : f32 to vector<128x128xf32>
    %104 = arith.maximumf %102, %103 : vector<128x128xf32>
    %105 = arith.truncf %104 : vector<128x128xf32> to vector<128x128xbf16>
    %cst_44 = arith.constant dense<0.000000e+00> : vector<128x128xf32>
    %106 = tpu.matmul %0, %105, %cst_44 {dimension_numbers = #tpu.dot_dimension_numbers<[1], [0], [0], [1], [0, 0, 1, 1], [], []>} : vector<128x128xbf16>, vector<128x128xbf16>, vector<128x128xf32> -> vector<128x128xf32>
    %cst_45 = arith.constant 0.000000e+00 : f32
    %107 = vector.broadcast %cst_45 : f32 to vector<128x128xf32>
    %108 = arith.maximumf %106, %107 : vector<128x128xf32>
    %cst_46 = arith.constant 1.000000e-07 : f32
    %109 = vector.broadcast %cst_46 : f32 to vector<128x128xf32>
    %110 = arith.addf %108, %109 : vector<128x128xf32>
    %cst_47 = arith.constant dense<0xFF800000> : vector<128xf32>
    %111 = vector.multi_reduction <maximumf>, %110, %cst_47 [0] : vector<128x128xf32> to vector<128xf32>
    %112 = vector.shape_cast %111 : vector<128xf32> to vector<1x128xf32>
    %cst_48 = arith.constant dense<0x7F800000> : vector<128xf32>
    %113 = vector.multi_reduction <minimumf>, %110, %cst_48 [0] : vector<128x128xf32> to vector<128xf32>
    %114 = vector.shape_cast %113 : vector<128xf32> to vector<1x128xf32>
    %c2 = arith.constant 2 : index
    %115 = memref.load %arg8[%c2] : memref<6xf32, #tpu.memory_space<smem>>
    %c3 = arith.constant 3 : index
    %116 = memref.load %arg8[%c3] : memref<6xf32, #tpu.memory_space<smem>>
    %117 = vector.broadcast %115 : f32 to vector<128x128xf32>
    %118 = arith.mulf %110, %117 : vector<128x128xf32>
    %119 = vector.broadcast %115 : f32 to vector<1x128xf32>
    %120 = arith.mulf %119, %112 : vector<1x128xf32>
    %121 = vector.broadcast %115 : f32 to vector<1x128xf32>
    %122 = arith.mulf %121, %114 : vector<1x128xf32>
    %123 = arith.maximumf %120, %122 : vector<1x128xf32>
    %124 = vector.broadcast %123 : vector<1x128xf32> to vector<128x128xf32>
    %125 = arith.subf %118, %124 : vector<128x128xf32>
    %126 = math.exp %125 : vector<128x128xf32>
    %127 = vector.broadcast %116 : f32 to vector<128x128xf32>
    %128 = arith.mulf %110, %127 : vector<128x128xf32>
    %129 = vector.broadcast %116 : f32 to vector<1x128xf32>
    %130 = arith.mulf %129, %112 : vector<1x128xf32>
    %131 = vector.broadcast %116 : f32 to vector<1x128xf32>
    %132 = arith.mulf %131, %114 : vector<1x128xf32>
    %133 = arith.maximumf %130, %132 : vector<1x128xf32>
    %134 = vector.broadcast %133 : vector<1x128xf32> to vector<128x128xf32>
    %135 = arith.subf %128, %134 : vector<128x128xf32>
    %136 = math.exp %135 : vector<128x128xf32>
    %137 = arith.truncf %126 : vector<128x128xf32> to vector<128x128xbf16>
    %138 = arith.mulf %110, %126 : vector<128x128xf32>
    %139 = arith.truncf %138 : vector<128x128xf32> to vector<128x128xbf16>
    %140 = arith.truncf %136 : vector<128x128xf32> to vector<128x128xbf16>
    %141 = arith.mulf %110, %136 : vector<128x128xf32>
    %142 = arith.truncf %141 : vector<128x128xf32> to vector<128x128xbf16>
    %143 = tpu.concatenate %137, %139, %140, %142 in 1 : vector<128x128xbf16>, vector<128x128xbf16>, vector<128x128xbf16>, vector<128x128xbf16> -> vector<128x512xbf16>
    %cst_49 = arith.constant dense<0.000000e+00> : vector<128x512xf32>
    %144 = tpu.matmul %1, %143, %cst_49 {dimension_numbers = #tpu.dot_dimension_numbers<[1], [0], [0], [1], [0, 0, 1, 1], [], []>} : vector<128x128xbf16>, vector<128x512xbf16>, vector<128x512xf32> -> vector<128x512xf32>
    %145 = vector.extract_strided_slice %144 {offsets = [0, 128], sizes = [128, 128], strides = [1, 1]} : vector<128x512xf32> to vector<128x128xf32>
    %146 = vector.extract_strided_slice %144 {offsets = [0, 0], sizes = [128, 128], strides = [1, 1]} : vector<128x512xf32> to vector<128x128xf32>
    %cst_50 = arith.constant 0.000000e+00 : f32
    %147 = vector.broadcast %cst_50 : f32 to vector<128x128xf32>
    %148 = arith.cmpf oeq, %146, %147 : vector<128x128xf32>
    %149 = arith.extui %148 : vector<128x128xi1> to vector<128x128xi32>
    %150 = arith.sitofp %149 : vector<128x128xi32> to vector<128x128xf32>
    %151 = arith.addf %146, %150 : vector<128x128xf32>
    %152 = tpu.reciprocal %151 {approx = true} : vector<128x128xf32> -> vector<128x128xf32>
    %153 = arith.mulf %145, %152 : vector<128x128xf32>
    %154 = vector.extract_strided_slice %144 {offsets = [0, 384], sizes = [128, 128], strides = [1, 1]} : vector<128x512xf32> to vector<128x128xf32>
    %155 = vector.extract_strided_slice %144 {offsets = [0, 256], sizes = [128, 128], strides = [1, 1]} : vector<128x512xf32> to vector<128x128xf32>
    %cst_51 = arith.constant 0.000000e+00 : f32
    %156 = vector.broadcast %cst_51 : f32 to vector<128x128xf32>
    %157 = arith.cmpf oeq, %155, %156 : vector<128x128xf32>
    %158 = arith.extui %157 : vector<128x128xi1> to vector<128x128xi32>
    %159 = arith.sitofp %158 : vector<128x128xi32> to vector<128x128xf32>
    %160 = arith.addf %155, %159 : vector<128x128xf32>
    %161 = tpu.reciprocal %160 {approx = true} : vector<128x128xf32> -> vector<128x128xf32>
    %162 = arith.mulf %154, %161 : vector<128x128xf32>
    %163 = arith.addf %153, %104 : vector<128x128xf32>
    %164 = arith.truncf %163 : vector<128x128xf32> to vector<128x128xbf16>
    %c2_52 = arith.constant 2 : index
    %c0_53 = arith.constant 0 : index
    %c0_54 = arith.constant 0 : index
    %165 = vector.load %arg5[%c2_52, %c0_53, %c0_54] : memref<6x128x128xbf16, #tpu.memory_space<vmem>>, vector<1x128x128xbf16>
    %166 = vector.shape_cast %165 : vector<1x128x128xbf16> to vector<128x128xbf16>
    %cst_55 = arith.constant dense<0.000000e+00> : vector<128x128xf32>
    %167 = tpu.matmul %164, %166, %cst_55 {dimension_numbers = #tpu.dot_dimension_numbers<[1], [0], [0], [1], [0, 0, 1, 1], [], []>} : vector<128x128xbf16>, vector<128x128xbf16>, vector<128x128xf32> -> vector<128x128xf32>
    %cst_56 = arith.constant 0.000000e+00 : f32
    %168 = vector.broadcast %cst_56 : f32 to vector<128x128xf32>
    %169 = arith.maximumf %167, %168 : vector<128x128xf32>
    %170 = arith.truncf %169 : vector<128x128xf32> to vector<128x128xbf16>
    %c2_57 = arith.constant 2 : index
    %c0_58 = arith.constant 0 : index
    %c0_59 = arith.constant 0 : index
    %171 = vector.load %arg6[%c2_57, %c0_58, %c0_59] : memref<6x128x128xbf16, #tpu.memory_space<vmem>>, vector<1x128x128xbf16>
    %172 = vector.shape_cast %171 : vector<1x128x128xbf16> to vector<128x128xbf16>
    %cst_60 = arith.constant dense<0.000000e+00> : vector<128x128xf32>
    %173 = tpu.matmul %170, %172, %cst_60 {dimension_numbers = #tpu.dot_dimension_numbers<[1], [0], [0], [1], [0, 0, 1, 1], [], []>} : vector<128x128xbf16>, vector<128x128xbf16>, vector<128x128xf32> -> vector<128x128xf32>
    %174 = arith.addf %162, %104 : vector<128x128xf32>
    %175 = arith.truncf %174 : vector<128x128xf32> to vector<128x128xbf16>
    %c3_61 = arith.constant 3 : index
    %c0_62 = arith.constant 0 : index
    %c0_63 = arith.constant 0 : index
    %176 = vector.load %arg5[%c3_61, %c0_62, %c0_63] : memref<6x128x128xbf16, #tpu.memory_space<vmem>>, vector<1x128x128xbf16>
    %177 = vector.shape_cast %176 : vector<1x128x128xbf16> to vector<128x128xbf16>
    %cst_64 = arith.constant dense<0.000000e+00> : vector<128x128xf32>
    %178 = tpu.matmul %175, %177, %cst_64 {dimension_numbers = #tpu.dot_dimension_numbers<[1], [0], [0], [1], [0, 0, 1, 1], [], []>} : vector<128x128xbf16>, vector<128x128xbf16>, vector<128x128xf32> -> vector<128x128xf32>
    %cst_65 = arith.constant 0.000000e+00 : f32
    %179 = vector.broadcast %cst_65 : f32 to vector<128x128xf32>
    %180 = arith.maximumf %178, %179 : vector<128x128xf32>
    %181 = arith.truncf %180 : vector<128x128xf32> to vector<128x128xbf16>
    %c3_66 = arith.constant 3 : index
    %c0_67 = arith.constant 0 : index
    %c0_68 = arith.constant 0 : index
    %182 = vector.load %arg6[%c3_66, %c0_67, %c0_68] : memref<6x128x128xbf16, #tpu.memory_space<vmem>>, vector<1x128x128xbf16>
    %183 = vector.shape_cast %182 : vector<1x128x128xbf16> to vector<128x128xbf16>
    %cst_69 = arith.constant dense<0.000000e+00> : vector<128x128xf32>
    %184 = tpu.matmul %181, %183, %cst_69 {dimension_numbers = #tpu.dot_dimension_numbers<[1], [0], [0], [1], [0, 0, 1, 1], [], []>} : vector<128x128xbf16>, vector<128x128xbf16>, vector<128x128xf32> -> vector<128x128xf32>
    %cst_70 = arith.constant 1.000000e+01 : f32
    %185 = vector.broadcast %cst_70 : f32 to vector<128x128xf32>
    %186 = arith.minimumf %184, %185 : vector<128x128xf32>
    %c0_71 = arith.constant 0 : index
    %c0_72 = arith.constant 0 : index
    %187 = vector.load %arg7[%c0_71, %c0_72] : memref<128x128xf32, #tpu.memory_space<vmem>>, vector<128x128xf32>
    %188 = math.exp %186 : vector<128x128xf32>
    %189 = arith.mulf %187, %188 : vector<128x128xf32>
    %190 = arith.addf %173, %189 : vector<128x128xf32>
    %c0_73 = arith.constant 0 : index
    %c0_74 = arith.constant 0 : index
    %191 = vector.load %arg10[%c0_73, %c0_74] : memref<128x128xf32, #tpu.memory_space<vmem>>, vector<128x128xf32>
    tpu.vector_store %arg10[%c0_73, %c0_74], %190 {strides = array<i32>} : memref<128x128xf32, #tpu.memory_space<vmem>>, vector<128x128xf32>,
    %192 = arith.truncf %190 : vector<128x128xf32> to vector<128x128xbf16>
    %cst_75 = arith.constant dense<0.000000e+00> : vector<128x128xf32>
    %193 = tpu.matmul %0, %192, %cst_75 {dimension_numbers = #tpu.dot_dimension_numbers<[1], [0], [0], [1], [0, 0, 1, 1], [], []>} : vector<128x128xbf16>, vector<128x128xbf16>, vector<128x128xf32> -> vector<128x128xf32>
    %cst_76 = arith.constant 0.000000e+00 : f32
    %194 = vector.broadcast %cst_76 : f32 to vector<128x128xf32>
    %195 = arith.maximumf %193, %194 : vector<128x128xf32>
    %cst_77 = arith.constant 1.000000e-07 : f32
    %196 = vector.broadcast %cst_77 : f32 to vector<128x128xf32>
    %197 = arith.addf %195, %196 : vector<128x128xf32>
    %c4 = arith.constant 4 : index
    %198 = memref.load %arg8[%c4] : memref<6xf32, #tpu.memory_space<smem>>
    %cst_78 = arith.constant dense<0xFF800000> : vector<128xf32>
    %199 = vector.multi_reduction <maximumf>, %197, %cst_78 [0] : vector<128x128xf32> to vector<128xf32>
    %200 = vector.shape_cast %199 : vector<128xf32> to vector<1x128xf32>
    %cst_79 = arith.constant dense<0x7F800000> : vector<128xf32>
    %201 = vector.multi_reduction <minimumf>, %197, %cst_79 [0] : vector<128x128xf32> to vector<128xf32>
    %202 = vector.shape_cast %201 : vector<128xf32> to vector<1x128xf32>
    %203 = vector.broadcast %198 : f32 to vector<1x128xf32>
    %204 = arith.mulf %203, %200 : vector<1x128xf32>
    %205 = vector.broadcast %198 : f32 to vector<1x128xf32>
    %206 = arith.mulf %205, %202 : vector<1x128xf32>
    %207 = arith.maximumf %204, %206 : vector<1x128xf32>
    %208 = vector.broadcast %198 : f32 to vector<128x128xf32>
    %209 = arith.mulf %197, %208 : vector<128x128xf32>
    %210 = vector.broadcast %207 : vector<1x128xf32> to vector<128x128xf32>
    %211 = arith.subf %209, %210 : vector<128x128xf32>
    %212 = math.exp %211 : vector<128x128xf32>
    %213 = arith.truncf %212 : vector<128x128xf32> to vector<128x128xbf16>
    %214 = arith.mulf %197, %212 : vector<128x128xf32>
    %215 = arith.truncf %214 : vector<128x128xf32> to vector<128x128xbf16>
    %216 = tpu.concatenate %213, %215 in 1 : vector<128x128xbf16>, vector<128x128xbf16> -> vector<128x256xbf16>
    %cst_80 = arith.constant dense<0.000000e+00> : vector<128x256xf32>
    %217 = tpu.matmul %1, %216, %cst_80 {dimension_numbers = #tpu.dot_dimension_numbers<[1], [0], [0], [1], [0, 0, 1, 1], [], []>} : vector<128x128xbf16>, vector<128x256xbf16>, vector<128x256xf32> -> vector<128x256xf32>
    %218 = vector.extract_strided_slice %217 {offsets = [0, 128], sizes = [128, 128], strides = [1, 1]} : vector<128x256xf32> to vector<128x128xf32>
    %219 = vector.extract_strided_slice %217 {offsets = [0, 0], sizes = [128, 128], strides = [1, 1]} : vector<128x256xf32> to vector<128x128xf32>
    %cst_81 = arith.constant 0.000000e+00 : f32
    %220 = vector.broadcast %cst_81 : f32 to vector<128x128xf32>
    %221 = arith.cmpf oeq, %219, %220 : vector<128x128xf32>
    %222 = arith.extui %221 : vector<128x128xi1> to vector<128x128xi32>
    %223 = arith.sitofp %222 : vector<128x128xi32> to vector<128x128xf32>
    %224 = arith.addf %219, %223 : vector<128x128xf32>
    %225 = tpu.reciprocal %224 {approx = true} : vector<128x128xf32> -> vector<128x128xf32>
    %226 = arith.mulf %218, %225 : vector<128x128xf32>
    %227 = arith.addf %226, %190 : vector<128x128xf32>
    %228 = arith.truncf %227 : vector<128x128xf32> to vector<128x128xbf16>
    %c4_82 = arith.constant 4 : index
    %c0_83 = arith.constant 0 : index
    %c0_84 = arith.constant 0 : index
    %229 = vector.load %arg5[%c4_82, %c0_83, %c0_84] : memref<6x128x128xbf16, #tpu.memory_space<vmem>>, vector<1x128x128xbf16>
    %230 = vector.shape_cast %229 : vector<1x128x128xbf16> to vector<128x128xbf16>
    %cst_85 = arith.constant dense<0.000000e+00> : vector<128x128xf32>
    %231 = tpu.matmul %228, %230, %cst_85 {dimension_numbers = #tpu.dot_dimension_numbers<[1], [0], [0], [1], [0, 0, 1, 1], [], []>} : vector<128x128xbf16>, vector<128x128xbf16>, vector<128x128xf32> -> vector<128x128xf32>
    %cst_86 = arith.constant 0.000000e+00 : f32
    %232 = vector.broadcast %cst_86 : f32 to vector<128x128xf32>
    %233 = arith.maximumf %231, %232 : vector<128x128xf32>
    %234 = arith.truncf %233 : vector<128x128xf32> to vector<128x128xbf16>
    %c4_87 = arith.constant 4 : index
    %c0_88 = arith.constant 0 : index
    %c0_89 = arith.constant 0 : index
    %235 = vector.load %arg6[%c4_87, %c0_88, %c0_89] : memref<6x128x128xbf16, #tpu.memory_space<vmem>>, vector<1x128x128xbf16>
    %236 = vector.shape_cast %235 : vector<1x128x128xbf16> to vector<128x128xbf16>
    %cst_90 = arith.constant dense<0.000000e+00> : vector<128x128xf32>
    %237 = tpu.matmul %234, %236, %cst_90 {dimension_numbers = #tpu.dot_dimension_numbers<[1], [0], [0], [1], [0, 0, 1, 1], [], []>} : vector<128x128xbf16>, vector<128x128xbf16>, vector<128x128xf32> -> vector<128x128xf32>
    %cst_91 = arith.constant 0.000000e+00 : f32
    %238 = vector.broadcast %cst_91 : f32 to vector<128x128xf32>
    %239 = arith.maximumf %237, %238 : vector<128x128xf32>
    %240 = arith.truncf %239 : vector<128x128xf32> to vector<128x128xbf16>
    %cst_92 = arith.constant dense<0.000000e+00> : vector<128x128xf32>
    %241 = tpu.matmul %0, %240, %cst_92 {dimension_numbers = #tpu.dot_dimension_numbers<[1], [0], [0], [1], [0, 0, 1, 1], [], []>} : vector<128x128xbf16>, vector<128x128xbf16>, vector<128x128xf32> -> vector<128x128xf32>
    %cst_93 = arith.constant 0.000000e+00 : f32
    %242 = vector.broadcast %cst_93 : f32 to vector<128x128xf32>
    %243 = arith.maximumf %241, %242 : vector<128x128xf32>
    %cst_94 = arith.constant 1.000000e-07 : f32
    %244 = vector.broadcast %cst_94 : f32 to vector<128x128xf32>
    %245 = arith.addf %243, %244 : vector<128x128xf32>
    %c5 = arith.constant 5 : index
    %246 = memref.load %arg8[%c5] : memref<6xf32, #tpu.memory_space<smem>>
    %cst_95 = arith.constant dense<0xFF800000> : vector<128xf32>
    %247 = vector.multi_reduction <maximumf>, %245, %cst_95 [0] : vector<128x128xf32> to vector<128xf32>
    %248 = vector.shape_cast %247 : vector<128xf32> to vector<1x128xf32>
    %cst_96 = arith.constant dense<0x7F800000> : vector<128xf32>
    %249 = vector.multi_reduction <minimumf>, %245, %cst_96 [0] : vector<128x128xf32> to vector<128xf32>
    %250 = vector.shape_cast %249 : vector<128xf32> to vector<1x128xf32>
    %251 = vector.broadcast %246 : f32 to vector<1x128xf32>
    %252 = arith.mulf %251, %248 : vector<1x128xf32>
    %253 = vector.broadcast %246 : f32 to vector<1x128xf32>
    %254 = arith.mulf %253, %250 : vector<1x128xf32>
    %255 = arith.maximumf %252, %254 : vector<1x128xf32>
    %256 = vector.broadcast %246 : f32 to vector<128x128xf32>
    %257 = arith.mulf %245, %256 : vector<128x128xf32>
    %258 = vector.broadcast %255 : vector<1x128xf32> to vector<128x128xf32>
    %259 = arith.subf %257, %258 : vector<128x128xf32>
    %260 = math.exp %259 : vector<128x128xf32>
    %261 = arith.truncf %260 : vector<128x128xf32> to vector<128x128xbf16>
    %262 = arith.mulf %245, %260 : vector<128x128xf32>
    %263 = arith.truncf %262 : vector<128x128xf32> to vector<128x128xbf16>
    %264 = tpu.concatenate %261, %263 in 1 : vector<128x128xbf16>, vector<128x128xbf16> -> vector<128x256xbf16>
    %cst_97 = arith.constant dense<0.000000e+00> : vector<128x256xf32>
    %265 = tpu.matmul %1, %264, %cst_97 {dimension_numbers = #tpu.dot_dimension_numbers<[1], [0], [0], [1], [0, 0, 1, 1], [], []>} : vector<128x128xbf16>, vector<128x256xbf16>, vector<128x256xf32> -> vector<128x256xf32>
    %266 = vector.extract_strided_slice %265 {offsets = [0, 128], sizes = [128, 128], strides = [1, 1]} : vector<128x256xf32> to vector<128x128xf32>
    %267 = vector.extract_strided_slice %265 {offsets = [0, 0], sizes = [128, 128], strides = [1, 1]} : vector<128x256xf32> to vector<128x128xf32>
    %cst_98 = arith.constant 0.000000e+00 : f32
    %268 = vector.broadcast %cst_98 : f32 to vector<128x128xf32>
    %269 = arith.cmpf oeq, %267, %268 : vector<128x128xf32>
    %270 = arith.extui %269 : vector<128x128xi1> to vector<128x128xi32>
    %271 = arith.sitofp %270 : vector<128x128xi32> to vector<128x128xf32>
    %272 = arith.addf %267, %271 : vector<128x128xf32>
    %273 = tpu.reciprocal %272 {approx = true} : vector<128x128xf32> -> vector<128x128xf32>
    %274 = arith.mulf %266, %273 : vector<128x128xf32>
    %275 = arith.addf %274, %239 : vector<128x128xf32>
    %276 = arith.truncf %275 : vector<128x128xf32> to vector<128x128xbf16>
    %c5_99 = arith.constant 5 : index
    %c0_100 = arith.constant 0 : index
    %c0_101 = arith.constant 0 : index
    %277 = vector.load %arg5[%c5_99, %c0_100, %c0_101] : memref<6x128x128xbf16, #tpu.memory_space<vmem>>, vector<1x128x128xbf16>
    %278 = vector.shape_cast %277 : vector<1x128x128xbf16> to vector<128x128xbf16>
    %cst_102 = arith.constant dense<0.000000e+00> : vector<128x128xf32>
    %279 = tpu.matmul %276, %278, %cst_102 {dimension_numbers = #tpu.dot_dimension_numbers<[1], [0], [0], [1], [0, 0, 1, 1], [], []>} : vector<128x128xbf16>, vector<128x128xbf16>, vector<128x128xf32> -> vector<128x128xf32>
    %cst_103 = arith.constant 0.000000e+00 : f32
    %280 = vector.broadcast %cst_103 : f32 to vector<128x128xf32>
    %281 = arith.maximumf %279, %280 : vector<128x128xf32>
    %282 = arith.truncf %281 : vector<128x128xf32> to vector<128x128xbf16>
    %c5_104 = arith.constant 5 : index
    %c0_105 = arith.constant 0 : index
    %c0_106 = arith.constant 0 : index
    %283 = vector.load %arg6[%c5_104, %c0_105, %c0_106] : memref<6x128x128xbf16, #tpu.memory_space<vmem>>, vector<1x128x128xbf16>
    %284 = vector.shape_cast %283 : vector<1x128x128xbf16> to vector<128x128xbf16>
    %cst_107 = arith.constant dense<0.000000e+00> : vector<128x128xf32>
    %285 = tpu.matmul %282, %284, %cst_107 {dimension_numbers = #tpu.dot_dimension_numbers<[1], [0], [0], [1], [0, 0, 1, 1], [], []>} : vector<128x128xbf16>, vector<128x128xbf16>, vector<128x128xf32> -> vector<128x128xf32>
    %cst_108 = arith.constant 0.000000e+00 : f32
    %286 = vector.broadcast %cst_108 : f32 to vector<128x128xf32>
    %287 = arith.maximumf %285, %286 : vector<128x128xf32>
    %c0_109 = arith.constant 0 : index
    %c0_110 = arith.constant 0 : index
    %288 = vector.load %arg9[%c0_109, %c0_110] : memref<128x128xf32, #tpu.memory_space<vmem>>, vector<128x128xf32>
    tpu.vector_store %arg9[%c0_109, %c0_110], %287 {strides = array<i32>} : memref<128x128xf32, #tpu.memory_space<vmem>>, vector<128x128xf32>,
    return
  }
}

</mosaic_0001>

<bundles_post_ra>
// kernel: tpu_custom_call.1
= control target key start
LH: loop header
LB: loop body
LE: loop exit
PB: predicated region body
PF: predicated region fallthrough
CT: control target
= control target key end

     0   :  { %16 = vsyncpa [#allocation3], 0  ;;  %s9095_s0 = inlined_call_operand.hbm [shape: f32[128,128], index: 0, kind: input, shape index: {}]   ;;  %s9096_s1 = inlined_call_operand.hbm [shape: bf16[128,128], index: 1, kind: input, shape index: {}]   ;;  %s9097_s2 = inlined_call_operand.vmem [shape: f32[1,128], index: 2, kind: input, shape index: {}]   ;;  %s9098_s3 = inlined_call_operand.hbm [shape: bf16[128,128], index: 3, kind: input, shape index: {}]   ;;  %s9099_s4 = inlined_call_operand.hbm [shape: bf16[128,128], index: 4, kind: input, shape index: {}]   ;;  %s9100_s5 = inlined_call_operand.hbm [shape: bf16[6,128,128], index: 5, kind: input, shape index: {}]   ;;  %s9101_s6 = inlined_call_operand.hbm [shape: bf16[6,128,128], index: 6, kind: input, shape index: {}]   ;;  %s9102_s7 = inlined_call_operand.hbm [shape: f32[128,128], index: 7, kind: input, shape index: {}]   ;;  %s9103_s8 = inlined_call_operand.vmem [shape: f32[6], index: 8, kind: input, shape index: {}]   ;;  %s9104_s9 = inlined_call_operand.hbm [shape: f32[128,128], index: 9, kind: output, shape index: {0}]   ;;  %s9105_s10 = inlined_call_operand.hbm [shape: f32[128,128], index: 10, kind: output, shape index: {1}]  }
   0x1   :  { %17 = vsyncpa [#allocation7], 0 }
   0x2   :  { %18 = vsyncpa [#allocation10], 0 }
   0x3   :  { %19 = vsyncpa [#allocation13], 0 }
   0x4   :  { %20 = vsyncpa [#allocation5], 0 }
   0x5   :  { %21 = vsyncpa [#allocation4], 0 }
   0x6   :  { %22 = vsyncpa [#allocation18], 0  ;;  %s7569_s13 = smov [#allocation6]  }
   0x7   :  { %s40_s14 = sshll.u32 %s7569_s13, 4  ;;  %s41_s14 = int_to_ptr.vmem [resolvable:$true] %s40_s14 }
   0x8   :  { %s7371_s15 = scalar_lea.vmem %s41_s14, 1024  ;;  %p7376_p1 = scmp.lt.s32.totalorder %s41_s14, %s41_s14 }
   0x9   :  { %p7372_p0 = scmp.ne.s32.totalorder %s41_s14, %s7371_s15  ;;  %p7377_p2 = scmp.lt.s32.totalorder %s7371_s15, %s7371_s15 }
   0xb   :  { %p7378_p3 = por %p7377_p2, %p7376_p1 }
   0xd   :  { %p7379_p4 = pnand %p7378_p3, %p7372_p0 }
   0xf   :  { %7382 = shalt.err (!%p7379_p4)
}
  0x10   :  { %s7570_s16 = smov 64   ;;  %s7571_s17 = smov 4  }
  0x11   :  { %46 = dma.hbm_to_vmem [thread:$0]  %s9096_s1, 1024, %s41_s14, [#allocation7], %s7570_s16, %s7570_s16, %s7571_s17  }
  0x12   :  { %s7572_s20 = smov [#allocation9]   ;;  %s7573_s22 = smov [#allocation12]  }
  0x13   :  { %s66_s21 = sshll.u32 %s7572_s20, 4  ;;  %s90_s23 = sshll.u32 %s7573_s22, 4  ;;  %s67_s21 = int_to_ptr.vmem [resolvable:$true] %s66_s21  ;;  %s91_s23 = int_to_ptr.vmem [resolvable:$true] %s90_s23 }
  0x14   :  { %s7391_s24 = scalar_lea.vmem %s67_s21, 1024  ;;  %p7396_p6 = scmp.lt.s32.totalorder %s67_s21, %s67_s21 }
  0x15   :  { %p7392_p5 = scmp.ne.s32.totalorder %s67_s21, %s7391_s24  ;;  %p7397_p7 = scmp.lt.s32.totalorder %s7391_s24, %s7391_s24 }
  0x17   :  { %p7398_p8 = por %p7397_p7, %p7396_p6 }
  0x19   :  { %p7399_p9 = pnand %p7398_p8, %p7392_p5 }
  0x1b   :  { %7402 = shalt.err (!%p7399_p9)
}
  0x1c   :  { %72 = dma.hbm_to_vmem [thread:$0]  %s9099_s4, 1024, %s67_s21, [#allocation10], %s7570_s16, %s7570_s16, %s7571_s17  }
  0x1d   :  { %s7411_s1 = scalar_lea.vmem %s91_s23, 6144  ;;  %p7416_p11 = scmp.lt.s32.totalorder %s91_s23, %s91_s23 }
  0x1e   :  { %p7412_p10 = scmp.ne.s32.totalorder %s91_s23, %s7411_s1  ;;  %p7417_p12 = scmp.lt.s32.totalorder %s7411_s1, %s7411_s1 }
  0x20   :  { %p7418_p13 = por %p7417_p12, %p7416_p11 }
  0x22   :  { %p7419_p0 = pnand %p7418_p13, %p7412_p10 }
  0x24   :  { %7422 = shalt.err (!%p7419_p0)
}
  0x25   :  { %96 = dma.hbm_to_vmem [thread:$0]  %s9101_s6, 6144, %s91_s23, [#allocation13], %s7570_s16, %s7570_s16, %s7571_s17  }
  0x26   :  { %s7574_s29 = smov [#allocation2]  }
  0x27   :  { %s28_s30 = sshll.u32 %s7574_s29, 4  ;;  %s29_s30 = int_to_ptr.vmem [resolvable:$true] %s28_s30 }
  0x28   :  { %s7431_s11 = scalar_lea.vmem %s29_s30, 2048  ;;  %p7436_p2 = scmp.lt.s32.totalorder %s29_s30, %s29_s30 }
  0x29   :  { %p7432_p1 = scmp.ne.s32.totalorder %s29_s30, %s7431_s11  ;;  %p7437_p3 = scmp.lt.s32.totalorder %s7431_s11, %s7431_s11 }
  0x2b   :  { %p7438_p4 = por %p7437_p3, %p7436_p2 }
  0x2d   :  { %p7439_p5 = pnand %p7438_p4, %p7432_p1 }
  0x2f   :  { %7442 = shalt.err (!%p7439_p5)
}
  0x30   :  { %s7575_s4 = smov 128   ;;  %s7576_s12 = smov 8  }
  0x31   :  { %34 = dma.hbm_to_vmem [thread:$0]  %s9095_s0, 2048, %s29_s30, [#allocation3], %s7575_s4, %s7575_s4, %s7576_s12  }
  0x32   :  { %s7577_s6 = smov [#allocation8]   ;;  %s7578_s18 = smov [#allocation11]  }
  0x33   :  { %s54_s15 = sshll.u32 %s7577_s6, 4  ;;  %s78_s19 = sshll.u32 %s7578_s18, 4  ;;  %s55_s15 = int_to_ptr.vmem [resolvable:$true] %s54_s15  ;;  %s79_s19 = int_to_ptr.vmem [resolvable:$true] %s78_s19 }
  0x34   :  { %s7451_s20 = scalar_lea.vmem %s55_s15, 1024  ;;  %p7456_p7 = scmp.lt.s32.totalorder %s55_s15, %s55_s15 }
  0x35   :  { %p7452_p6 = scmp.ne.s32.totalorder %s55_s15, %s7451_s20  ;;  %p7457_p8 = scmp.lt.s32.totalorder %s7451_s20, %s7451_s20 }
  0x37   :  { %p7458_p9 = por %p7457_p8, %p7456_p7 }
  0x39   :  { %p7459_p10 = pnand %p7458_p9, %p7452_p6 }
  0x3b   :  { %7462 = shalt.err (!%p7459_p10)
}
  0x3c   :  { %60 = dma.hbm_to_vmem [thread:$0]  %s9098_s3, 1024, %s55_s15, [#allocation7], %s7570_s16, %s7570_s16, %s7571_s17  }
  0x3d   :  { %s7471_s0 = scalar_lea.vmem %s79_s19, 6144  ;;  %p7476_p12 = scmp.lt.s32.totalorder %s79_s19, %s79_s19 }
  0x3e   :  { %p7472_p11 = scmp.ne.s32.totalorder %s79_s19, %s7471_s0  ;;  %p7477_p13 = scmp.lt.s32.totalorder %s7471_s0, %s7471_s0 }
  0x40   :  { %p7478_p0 = por %p7477_p13, %p7476_p12 }
  0x42   :  { %p7479_p1 = pnand %p7478_p0, %p7472_p11 }
  0x44   :  { %7482 = shalt.err (!%p7479_p1)
}
  0x45   :  { %84 = dma.hbm_to_vmem [thread:$0]  %s9100_s5, 6144, %s79_s19, [#allocation10], %s7570_s16, %s7570_s16, %s7571_s17  }
  0x46   :  { %s115_s1 = sshll.u32 %s9103_s8, 4  ;;  %s7579_s27 = smov [#allocation14]   ;;  %s116_s1 = int_to_ptr.vmem [resolvable:$true] %s115_s1 }
  0x47   :  { %s102_s3 = sshll.u32 %s7579_s27, 4  ;;  %s103_s3 = int_to_ptr.vmem [resolvable:$true] %s102_s3 }
  0x48   :  { %s7491_s28 = scalar_lea.vmem %s103_s3, 2048  ;;  %p7496_p3 = scmp.lt.s32.totalorder %s103_s3, %s103_s3 }
  0x49   :  { %p7492_p2 = scmp.ne.s32.totalorder %s103_s3, %s7491_s28  ;;  %p7497_p4 = scmp.lt.s32.totalorder %s7491_s28, %s7491_s28 }
  0x4b   :  { %p7498_p5 = por %p7497_p4, %p7496_p3 }
  0x4d   :  { %p7499_p6 = pnand %p7498_p5, %p7492_p2 }
  0x4f   :  { %7502 = shalt.err (!%p7499_p6)
}
  0x50   :  { %108 = dma.hbm_to_vmem [thread:$0]  %s9102_s7, 2048, %s103_s3, [#allocation13], %s7575_s4, %s7575_s4, %s7576_s12  }
  0x51   :  { %s7503_s16 = scalar_lea.vmem %s116_s1, 16  ;;  %p7508_p8 = scmp.lt.s32.totalorder %s116_s1, %s116_s1 }
  0x52   :  { %p7504_p7 = scmp.ne.s32.totalorder %s116_s1, %s7503_s16  ;;  %p7509_p9 = scmp.lt.s32.totalorder %s7503_s16, %s7503_s16 }
  0x54   :  { %p7510_p10 = por %p7509_p9, %p7508_p8 }
  0x56   :  { %p7511_p11 = pnand %p7510_p10, %p7504_p7 }
  0x58   :  { %7514 = shalt.err (!%p7511_p11)
}
  0x59   :  { %s7580_s8 = smov [#allocation15]  }
  0x5a   :  { %118 = dma.vmem_to_smem %s116_s1, 16, %s7580_s8, [#allocation5]  }
  0x5b   :  { %7555 = dma.done.wait [#allocation3], 2048  }
  0x5c   :  { %7556 = vsyncadd [#allocation3], 4294965248 }
  0x5d   :  { %7557 = dma.done.wait [#allocation7], 2048  }
  0x5e   :  { %7558 = vsyncadd [#allocation7], 4294965248 }
  0x5f   :  { %7559 = dma.done.wait [#allocation10], 7168  }
  0x60   :  { %7560 = vsyncadd [#allocation10], 4294960128 }
  0x61   :  { %7561 = dma.done.wait [#allocation13], 8192  }
  0x62   :  { %7562 = vsyncadd [#allocation13], 4294959104 }
  0x63   :  { %7563 = dma.done.wait [#allocation5], 16  }
  0x64   :  { %7564 = vsyncadd [#allocation5], 4294967280 }
  0x65   :  { %143 = sfence }
  0x66   :  { %v6765_v0 = vld [vmem:[#allocation6 + $0x38] sm:$0xff]   ;;  %v6766_v1 = vld [vmem:[#allocation6 + $0x30] sm:$0xff]   ;;  %v6767_v2 = vld [vmem:[#allocation6 + $0x28] sm:$0xff]   ;;  %s5720_s30 = sld [smem:[#allocation15 + $0x1]]  ;;  %s7583_s15 = smov [#allocation17]  }
  0x67   :  { %6173 = vmatprep.subr.bf16.mxu0 %v6765_v0  ;;  %v6768_v3 = vld [vmem:[#allocation6 + $0x20] sm:$0xff]   ;;  %v178_v5 = vld [vmem:[#allocation2 + $0x8] sm:$0xff]  ;;  %v6769_v7 = vld [vmem:[#allocation6 + $0x18] sm:$0xff]   ;;  %s5753_s11 = sld [smem:[#allocation15 + $0x2]]  ;;  %s5643_s18 = sshll.u32 %s7583_s15, 4  ;;  %s5644_s18 = int_to_ptr.vmem [resolvable:$true] %s5643_s18 }
  0x68   :  { %6174 = vmatpush3.bf16.msra.mxu0 %v6765_v0  ;;  %v177_v4 = vld [vmem:[#allocation2] sm:$0xff]  ;;  %v6770_v8 = vld [vmem:[#allocation6 + $0x10] sm:$0xff]   ;;  %v6771_v9 = vld [vmem:[#allocation6 + $0x8] sm:$0xff]   ;;  %s5754_s13 = sld [smem:[#allocation15 + $0x3]]  ;;  %s7515_s19 = scalar_lea.vmem %s5644_s18, 2048 }
  0x69   :  { %6175 = vmatprep.subr.bf16.mxu0 %v6766_v1  ;;  %v193_v6 = vpack.c.bf16 %v178_v5, %v177_v4  ;;  %v6772_v10 = vld [vmem:[#allocation6] sm:$0xff]   ;;  %v179_v11 = vld [vmem:[#allocation2 + $0x10] sm:$0xff]  ;;  %v180_v12 = vld [vmem:[#allocation2 + $0x18] sm:$0xff]  ;;  %s5819_s14 = sld [smem:[#allocation15 + $0x4]]  ;;  %p7516_p12 = scmp.ne.s32.totalorder %s5644_s18, %s7515_s19 }
  0x6a   :  { %v181_v13 = vld [vmem:[#allocation2 + $0x20] sm:$0xff]  ;;  %v182_v14 = vld [vmem:[#allocation2 + $0x28] sm:$0xff]  ;;  %v194_v15 = vpack.c.bf16 %v180_v12, %v179_v11  ;;  %v183_v17 = vld [vmem:[#allocation2 + $0x30] sm:$0xff]  ;;  %s5852_s6 = sld [smem:[#allocation15 + $0x5]]  ;;  %p7520_p13 = scmp.lt.s32.totalorder %s5644_s18, %s5644_s18 }
  0x6b   :  { %6189 = vmatprep.mubr.bf16.mxu0 %v193_v6  ;;  %v195_v16 = vpack.c.bf16 %v182_v14, %v181_v13  ;;  %v184_v18 = vld [vmem:[#allocation2 + $0x38] sm:$0xff]  ;;  %v185_v19 = vld [vmem:[#allocation2 + $0x40] sm:$0xff]  ;;  %v186_v20 = vld [vmem:[#allocation2 + $0x48] sm:$0xff]  ;;  %p7521_p0 = scmp.lt.s32.totalorder %s7515_s19, %s7515_s19 }
  0x6c   :  { %6176 = vmatpush3.bf16.msra.mxu0 %v6766_v1  ;;  %v196_v21 = vpack.c.bf16 %v184_v18, %v183_v17  ;;  %v197_v22 = vpack.c.bf16 %v186_v20, %v185_v19  ;;  %v187_v23 = vld [vmem:[#allocation2 + $0x50] sm:$0xff]  ;;  %v188_v24 = vld [vmem:[#allocation2 + $0x58] sm:$0xff]  ;;  %v189_v25 = vld [vmem:[#allocation2 + $0x60] sm:$0xff]  ;;  %v9121_v17 = vmov 0  }
  0x6d   :  { %6177 = vmatprep.subr.bf16.mxu0 %v6767_v2  ;;  %v190_v26 = vld [vmem:[#allocation2 + $0x68] sm:$0xff]  ;;  %v198_v27 = vpack.c.bf16 %v188_v24, %v187_v23  ;;  %v191_v29 = vld [vmem:[#allocation2 + $0x70] sm:$0xff]  ;;  %v192_v30 = vld [vmem:[#allocation2 + $0x78] sm:$0xff]  ;;  %p7522_p1 = por %p7521_p0, %p7520_p13 }
  0x6e   :  { %v199_v28 = vpack.c.bf16 %v190_v26, %v189_v25  ;;  %v200_v31 = vpack.c.bf16 %v192_v30, %v191_v29  ;;  %v7685_v32 = vld [vmem:[#allocation8] sm:$0xff]   ;;  %v6775_v11 = vld [vmem:[#allocation8 + $0x10] sm:$0xff]   ;;  %v6776_v12 = vld [vmem:[#allocation8 + $0x18] sm:$0xff]  }
  0x6f   :  { %6221 = vmatprep.mubr.bf16.mxu1 %v7685_v32  ;;  %v5663_v47 = vld [vmem:[%s9097_s2] ss:$0 sm:$0xff]  ;;  %v6778_v14 = vld [vmem:[#allocation8 + $0x28] sm:$0xff]   ;;  %s554_s2 = sld [smem:[#allocation15]]  ;;  %p7523_p2 = pnand %p7522_p1, %p7516_p12 }
  0x70   :  { %6178 = vmatpush3.bf16.msra.mxu0 %v6767_v2  ;;  %v6777_v13 = vld [vmem:[#allocation8 + $0x20] sm:$0xff]  }
  0x71   :  { %6179 = vmatprep.subr.bf16.mxu0 %v6768_v3 }
  0x74   :  { %6180 = vmatpush3.bf16.msra.mxu0 %v6768_v3 }
  0x75   :  { %6181 = vmatprep.subr.bf16.mxu0 %v6769_v7 }
  0x78   :  { %6182 = vmatpush3.bf16.msra.mxu0 %v6769_v7 }
  0x79   :  { %6183 = vmatprep.subr.bf16.mxu0 %v6770_v8 }
  0x7c   :  { %6184 = vmatpush3.bf16.msra.mxu0 %v6770_v8 }
  0x7d   :  { %6185 = vmatprep.subr.bf16.mxu0 %v6771_v9 }
  0x80   :  { %6186 = vmatpush3.bf16.msra.mxu0 %v6771_v9 }
  0x81   :  { %6187 = vmatprep.subr.bf16.mxu0 %v6772_v10 }
  0x84   :  { %6188 = vmatpush3.bf16.msra.mxu0 %v6772_v10  ;;  %v6774_v10 = vld [vmem:[#allocation8 + $0x8] sm:$0xff]  }
  0x87   :  { %6190 = vmatmul.mubr.bf16.vlgmr.msra.gmra.mxu0 %v194_v15  ;;  %v6779_v15 = vld [vmem:[#allocation8 + $0x30] sm:$0xff]  }
  0x88   :  { %6193 = vmatprep.mubr.bf16.mxu0 %v195_v16  ;;  %v6780_v16 = vld [vmem:[#allocation8 + $0x38] sm:$0xff]  }
  0x8f   :  { %6194 = vmatmul.mubr.bf16.gmra.mxu0 %v196_v21 }
  0x90   :  { %6197 = vmatprep.mubr.bf16.mxu0 %v197_v22 }
  0x97   :  { %6198 = vmatmul.mubr.bf16.gmra.mxu0 %v198_v27 }
  0x98   :  { %6201 = vmatprep.mubr.bf16.mxu0 %v199_v28 }
  0x9f   :  { %6202 = vmatmul.mubr.bf16.gmra.mxu0 %v200_v31 }
  0xa0   :  { %777 = vmatprep.mubr.bf16.mxu0 %v9121_v17 }
 0x147   :  { %v6191_v33 = vpop.f32.mrf.mxu0 }
 0x148   :  { %v7729_v5 = vadd.f32 %v6191_v33, %v5663_v47 }
 0x149   :  { %v306_v34 = vpop.f32.mrf.mxu0 }
 0x14a   :  { %v7735_v8 = vadd.f32 %v5663_v47, %v306_v34 }
 0x14b   :  { %v6192_v35 = vpop.f32.mrf.mxu0 }
 0x14c   :  { %v7725_v3 = vadd.f32 %v6192_v35, %v5663_v47 }
 0x14d   :  { %v309_v36 = vpop.f32.mrf.mxu0 }
 0x14e   :  { %v370_v6 = vpack.c.bf16 %v7725_v3, %v7729_v5  ;;  %v7733_v7 = vadd.f32 %v5663_v47, %v309_v36 }
 0x14f   :  { %v6195_v37 = vpop.f32.mrf.mxu0 }
 0x150   :  { %v7717_v63 = vadd.f32 %v6195_v37, %v5663_v47  ;;  %v369_v9 = vpack.c.bf16 %v7733_v7, %v7735_v8 }
 0x151   :  { %v322_v38 = vpop.f32.mrf.mxu0 }
 0x152   :  { %v7723_v2 = vadd.f32 %v5663_v47, %v322_v38 }
 0x153   :  { %v6196_v39 = vpop.f32.mrf.mxu0 }
 0x154   :  { %v7713_v61 = vadd.f32 %v6196_v39, %v5663_v47 }
 0x155   :  { %v325_v40 = vpop.f32.mrf.mxu0 }
 0x156   :  { %v372_v0 = vpack.c.bf16 %v7713_v61, %v7717_v63  ;;  %v7721_v1 = vadd.f32 %v5663_v47, %v325_v40 }
 0x157   :  { %v6199_v41 = vpop.f32.mrf.mxu0 }
 0x158   :  { %v7705_v57 = vadd.f32 %v6199_v41, %v5663_v47  ;;  %v371_v4 = vpack.c.bf16 %v7721_v1, %v7723_v2 }
 0x159   :  { %v338_v42 = vpop.f32.mrf.mxu0 }
 0x15a   :  { %v7711_v60 = vadd.f32 %v5663_v47, %v338_v42 }
 0x15b   :  { %v6200_v43 = vpop.f32.mrf.mxu0 }
 0x15c   :  { %v7701_v55 = vadd.f32 %v6200_v43, %v5663_v47 }
 0x15d   :  { %v341_v44 = vpop.f32.mrf.mxu0 }
 0x15e   :  { %v374_v58 = vpack.c.bf16 %v7701_v55, %v7705_v57  ;;  %v7709_v59 = vadd.f32 %v5663_v47, %v341_v44 }
 0x15f   :  { %v6203_v45 = vpop.f32.mrf.mxu0 }
 0x160   :  { %v7691_v49 = vadd.f32 %v6203_v45, %v5663_v47  ;;  %v373_v62 = vpack.c.bf16 %v7709_v59, %v7711_v60 }
 0x161   :  { %v354_v46 = vpop.f32.mrf.mxu0 }
 0x162   :  { %v7695_v52 = vadd.f32 %v5663_v47, %v354_v46 }
 0x163   :  { %v6204_v48 = vpop.f32.mrf.mxu0 }
 0x164   :  { %v7693_v50 = vadd.f32 %v6204_v48, %v5663_v47 }
 0x165   :  { %v357_v51 = vpop.f32.mrf.mxu0 }
 0x166   :  { %v7697_v53 = vadd.f32 %v5663_v47, %v357_v51  ;;  %v376_v54 = vpack.c.bf16 %v7693_v50, %v7691_v49 }
 0x168   :  { %v375_v56 = vpack.c.bf16 %v7697_v53, %v7695_v52  ;;  %6205 = vmatprep.subr.bf16.mxu1 %v376_v54 }
 0x169   :  { %6206 = vmatpush3.bf16.msra.mxu1 %v376_v54 }
 0x16a   :  { %6207 = vmatprep.subr.bf16.mxu1 %v375_v56 }
 0x16d   :  { %6208 = vmatpush3.bf16.msra.mxu1 %v375_v56 }
 0x16e   :  { %6209 = vmatprep.subr.bf16.mxu1 %v374_v58 }
 0x171   :  { %6210 = vmatpush3.bf16.msra.mxu1 %v374_v58 }
 0x172   :  { %6211 = vmatprep.subr.bf16.mxu1 %v373_v62 }
 0x175   :  { %6212 = vmatpush3.bf16.msra.mxu1 %v373_v62 }
 0x176   :  { %6213 = vmatprep.subr.bf16.mxu1 %v372_v0 }
 0x179   :  { %6214 = vmatpush3.bf16.msra.mxu1 %v372_v0 }
 0x17a   :  { %6215 = vmatprep.subr.bf16.mxu1 %v371_v4 }
 0x17d   :  { %6216 = vmatpush3.bf16.msra.mxu1 %v371_v4 }
 0x17e   :  { %6217 = vmatprep.subr.bf16.mxu1 %v370_v6 }
 0x181   :  { %6218 = vmatpush3.bf16.msra.mxu1 %v370_v6 }
 0x182   :  { %6219 = vmatprep.subr.bf16.mxu1 %v369_v9 }
 0x185   :  { %6220 = vmatpush3.bf16.msra.mxu1 %v369_v9 }
 0x188   :  { %6222 = vmatmul.mubr.bf16.vlgmr.msra.gmra.mxu1 %v6774_v10 }
 0x189   :  { %6225 = vmatprep.mubr.bf16.mxu1 %v6775_v11 }
 0x190   :  { %6226 = vmatmul.mubr.bf16.gmra.mxu1 %v6776_v12 }
 0x191   :  { %6229 = vmatprep.mubr.bf16.mxu1 %v6777_v13 }
 0x198   :  { %6230 = vmatmul.mubr.bf16.gmra.mxu1 %v6778_v14 }
 0x199   :  { %6233 = vmatprep.mubr.bf16.mxu1 %v6779_v15 }
 0x1a0   :  { %6234 = vmatmul.mubr.bf16.gmra.mxu1 %v6780_v16 }
 0x248   :  { %v6223_v18 = vpop.f32.mrf.mxu1 }
 0x249   :  { %v524_v28 = vmax.f32 %v6223_v18, 0.0 }
 0x24a   :  { %v459_v19 = vpop.f32.mrf.mxu1 }
 0x24b   :  { %v522_v31 = vmax.f32 %v459_v19, 0.0  ;;  %v7740_v40 = vadd.f32 1e-07, %v524_v28 }
 0x24c   :  { %v6224_v20 = vpop.f32.mrf.mxu1 }
 0x24d   :  { %v525_v34 = vmax.f32 %v6224_v20, 0.0  ;;  %v7744_v44 = vadd.f32 1e-07, %v522_v31 }
 0x24e   :  { %v462_v21 = vpop.f32.mrf.mxu1 }
 0x24f   :  { %v523_v38 = vmax.f32 %v462_v21, 0.0  ;;  %v7748_v48 = vadd.f32 1e-07, %v525_v34 }
 0x250   :  { %v6227_v22 = vpop.f32.mrf.mxu1 }
 0x251   :  { %v528_v29 = vmax.f32 %v6227_v22, 0.0  ;;  %v7754_v58 = vadd.f32 1e-07, %v523_v38 }
 0x252   :  { %v475_v23 = vpop.f32.mrf.mxu1 }
 0x253   :  { %v526_v33 = vmax.f32 %v475_v23, 0.0  ;;  %v7742_v41 = vadd.f32 1e-07, %v528_v29 }
 0x254   :  { %v6228_v24 = vpop.f32.mrf.mxu1 }
 0x255   :  { %v529_v35 = vmax.f32 %v6228_v24, 0.0  ;;  %v7746_v45 = vadd.f32 1e-07, %v526_v33  ;;  %v557_v4 = vmax.f32 %v7740_v40, %v7742_v41  ;;  %v578_v6 = vmin.f32 %v7740_v40, %v7742_v41 }
 0x256   :  { %v478_v25 = vpop.f32.mrf.mxu1 }
 0x257   :  { %v527_v36 = vmax.f32 %v478_v25, 0.0  ;;  %v7750_v51 = vadd.f32 1e-07, %v529_v35  ;;  %v555_v12 = vmax.f32 %v7744_v44, %v7746_v45  ;;  %v576_v16 = vmin.f32 %v7744_v44, %v7746_v45 }
 0x258   :  { %v6231_v26 = vpop.f32.mrf.mxu1 }
 0x259   :  { %v532_v39 = vmax.f32 %v6231_v26, 0.0  ;;  %v7752_v54 = vadd.f32 1e-07, %v527_v36  ;;  %v558_v18 = vmax.f32 %v7748_v48, %v7750_v51  ;;  %v579_v19 = vmin.f32 %v7748_v48, %v7750_v51 }
 0x25a   :  { %v491_v27 = vpop.f32.mrf.mxu1 }
 0x25b   :  { %v530_v46 = vmax.f32 %v491_v27, 0.0  ;;  %v7756_v62 = vadd.f32 1e-07, %v532_v39  ;;  %v556_v20 = vmax.f32 %v7754_v58, %v7752_v54  ;;  %v577_v22 = vmin.f32 %v7754_v58, %v7752_v54 }
 0x25c   :  { %v6232_v30 = vpop.f32.mrf.mxu1 }
 0x25d   :  { %v533_v42 = vmax.f32 %v6232_v30, 0.0  ;;  %v7766_v13 = vadd.f32 1e-07, %v530_v46  ;;  %v561_v23 = vmax.f32 %v557_v4, %v7756_v62  ;;  %v582_v30 = vmin.f32 %v578_v6, %v7756_v62 }
 0x25e   :  { %v494_v37 = vpop.f32.mrf.mxu1 }
 0x25f   :  { %v531_v47 = vmax.f32 %v494_v37, 0.0  ;;  %v7762_v9 = vadd.f32 1e-07, %v533_v42  ;;  %v559_v31 = vmax.f32 %v555_v12, %v7766_v13  ;;  %v580_v33 = vmin.f32 %v576_v16, %v7766_v13 }
 0x260   :  { %v6235_v43 = vpop.f32.mrf.mxu1 }
 0x261   :  { %v536_v0 = vmax.f32 %v6235_v43, 0.0  ;;  %v7768_v14 = vadd.f32 1e-07, %v531_v47  ;;  %v562_v26 = vmax.f32 %v558_v18, %v7762_v9  ;;  %v583_v27 = vmin.f32 %v579_v19, %v7762_v9 }
 0x262   :  { %v507_v56 = vpop.f32.mrf.mxu1 }
 0x263   :  { %v534_v10 = vmax.f32 %v507_v56, 0.0  ;;  %v7781_v24 = vadd.f32 1e-07, %v536_v0  ;;  %v560_v34 = vmax.f32 %v556_v20, %v7768_v14  ;;  %v581_v35 = vmin.f32 %v577_v22, %v7768_v14 }
 0x264   :  { %v6236_v11 = vpop.f32.mrf.mxu1 }
 0x265   :  { %v537_v15 = vmax.f32 %v6236_v11, 0.0  ;;  %v7787_v28 = vadd.f32 1e-07, %v534_v10  ;;  %v565_v39 = vmax.f32 %v561_v23, %v7781_v24  ;;  %v586_v42 = vmin.f32 %v582_v30, %v7781_v24 }
 0x266   :  { %v510_v21 = vpop.f32.mrf.mxu1 }
 0x267   :  { %v7783_v25 = vadd.f32 1e-07, %v537_v15  ;;  %v535_v29 = vmax.f32 %v510_v21, 0.0  ;;  %v563_v43 = vmax.f32 %v559_v31, %v7787_v28  ;;  %v584_v46 = vmin.f32 %v580_v33, %v7787_v28 }
 0x268   :  { %v597_v31 = vstv %s554_s2 }
 0x269   :  { %v566_v36 = vmax.f32 %v562_v26, %v7783_v25  ;;  %v587_v37 = vmin.f32 %v583_v27, %v7783_v25  ;;  %v7796_v38 = vadd.f32 1e-07, %v535_v29 }
 0x26b   :  { %v564_v47 = vmax.f32 %v560_v34, %v7796_v38  ;;  %v585_v56 = vmin.f32 %v581_v35, %v7796_v38  ;;  %v568_v0 = vmax.f32 %v565_v39, %v566_v36  ;;  %v589_v4 = vmin.f32 %v586_v42, %v587_v37 }
 0x26c   :  { %v615_v35 = vmul.f32 %v597_v31, %v7781_v24  ;;  %v613_v36 = vmul.f32 %v597_v31, %v7787_v28  ;;  %v616_v37 = vmul.f32 %v597_v31, %v7783_v25  ;;  %v614_v42 = vmul.f32 %v597_v31, %v7796_v38 }
 0x26d   :  { %v567_v6 = vmax.f32 %v563_v43, %v564_v47  ;;  %v588_v10 = vmin.f32 %v584_v46, %v585_v56  ;;  %v611_v43 = vmul.f32 %v597_v31, %v7756_v62  ;;  %v612_v46 = vmul.f32 %v597_v31, %v7762_v9 }
 0x26f   :  { %v569_v11 = vmax.f32 %v567_v6, %v568_v0  ;;  %v590_v12 = vmin.f32 %v588_v10, %v589_v4  ;;  %v609_v6 = vmul.f32 %v597_v31, %v7766_v13 }
 0x271   :  { %v570_v15 = vrot.slane %v569_v11, 4  ;;  %v591_v16 = vrot.slane %v590_v12, 4 }
 0x273   :  { %v571_v18 = vmax.f32 %v569_v11, %v570_v15  ;;  %v592_v19 = vmin.f32 %v590_v12, %v591_v16  ;;  %v610_v12 = vmul.f32 %v597_v31, %v7768_v14 }
 0x275   :  { %v572_v20 = vrot.slane %v571_v18, 2  ;;  %v593_v21 = vrot.slane %v592_v19, 2 }
 0x277   :  { %v573_v22 = vmax.f32 %v571_v18, %v572_v20  ;;  %v594_v23 = vmin.f32 %v592_v19, %v593_v21 }
 0x279   :  { %v574_v26 = vrot.slane %v573_v22, 1  ;;  %v595_v27 = vrot.slane %v594_v23, 1 }
 0x27b   :  { %v575_v29 = vmax.f32 %v573_v22, %v574_v26  ;;  %v596_v30 = vmin.f32 %v594_v23, %v595_v27  ;;  %v607_v23 = vmul.f32 %v597_v31, %v7742_v41  ;;  %v608_v27 = vmul.f32 %v597_v31, %v7750_v51 }
 0x27d   :  { %v598_v33 = vmul.f32 %v597_v31, %v575_v29  ;;  %v599_v34 = vmul.f32 %v597_v31, %v596_v30 }
 0x27f   :  { %v7807_v39 = vmax.f32 %v598_v33, %v599_v34 }
 0x281   :  { %v630_v47 = vsub.f32 %v614_v42, %v7807_v39  ;;  %v631_v56 = vsub.f32 %v615_v35, %v7807_v39  ;;  %v632_v0 = vsub.f32 %v616_v37, %v7807_v39  ;;  %v629_v4 = vsub.f32 %v613_v36, %v7807_v39 }
 0x282   :  { %v627_v10 = vsub.f32 %v611_v43, %v7807_v39  ;;  %v628_v11 = vsub.f32 %v612_v46, %v7807_v39  ;;  %v625_v20 = vsub.f32 %v609_v6, %v7807_v39  ;;  %v626_v22 = vsub.f32 %v610_v12, %v7807_v39 }
 0x283   :  { %v659_v15 = vmul.f32 1.442695, %v630_v47  ;;  %v661_v16 = vmul.f32 1.442695, %v631_v56  ;;  %v663_v18 = vmul.f32 1.442695, %v632_v0  ;;  %v623_v30 = vsub.f32 %v607_v23, %v7807_v39 }
 0x284   :  { %v657_v19 = vmul.f32 1.442695, %v629_v4  ;;  %v653_v21 = vmul.f32 1.442695, %v627_v10  ;;  %v655_v26 = vmul.f32 1.442695, %v628_v11  ;;  %v624_v34 = vsub.f32 %v608_v27, %v7807_v39 }
 0x285   :  { %6885 = vpow2.f32 %v659_v15  ;;  %v649_v29 = vmul.f32 1.442695, %v625_v20  ;;  %v651_v33 = vmul.f32 1.442695, %v626_v22  ;;  %v605_v35 = vmul.f32 %v597_v31, %v7746_v45 }
 0x286   :  { %6887 = vpow2.f32 %v661_v16  ;;  %v606_v36 = vmul.f32 %v597_v31, %v7752_v54  ;;  %v645_v37 = vmul.f32 1.442695, %v623_v30  ;;  %v647_v43 = vmul.f32 1.442695, %v624_v34 }
 0x287   :  { %6889 = vpow2.f32 %v663_v18  ;;  %v621_v42 = vsub.f32 %v605_v35, %v7807_v39  ;;  %v603_v47 = vmul.f32 %v597_v31, %v7740_v40  ;;  %v604_v56 = vmul.f32 %v597_v31, %v7748_v48 }
 0x288   :  { %6891 = vpow2.f32 %v657_v19  ;;  %v622_v46 = vsub.f32 %v606_v36, %v7807_v39  ;;  %v601_v6 = vmul.f32 %v597_v31, %v7744_v44  ;;  %v602_v15 = vmul.f32 %v597_v31, %v7754_v58 }
 0x289   :  { %6893 = vpow2.f32 %v653_v21  ;;  %v641_v0 = vmul.f32 1.442695, %v621_v42  ;;  %v619_v4 = vsub.f32 %v603_v47, %v7807_v39  ;;  %v620_v11 = vsub.f32 %v604_v56, %v7807_v39 }
 0x28a   :  { %6895 = vpow2.f32 %v655_v26  ;;  %v643_v10 = vmul.f32 1.442695, %v622_v46  ;;  %v617_v18 = vsub.f32 %v601_v6, %v7807_v39  ;;  %v618_v22 = vsub.f32 %v602_v15, %v7807_v39 }
 0x28b   :  { %6897 = vpow2.f32 %v649_v29  ;;  %v637_v21 = vmul.f32 1.442695, %v619_v4  ;;  %v639_v29 = vmul.f32 1.442695, %v620_v11 }
 0x28c   :  { %6899 = vpow2.f32 %v651_v33  ;;  %v633_v36 = vmul.f32 1.442695, %v617_v18 }
 0x28d   :  { %6901 = vpow2.f32 %v645_v37 }
 0x28e   :  { %6903 = vpow2.f32 %v647_v43 }
 0x28f   :  { %6905 = vpow2.f32 %v641_v0 }
 0x290   :  { %6907 = vpow2.f32 %v643_v10 }
 0x291   :  { %6909 = vpow2.f32 %v637_v21 }
 0x292   :  { %v6886_v12 = vpop.eup %6885  ;;  %6911 = vpow2.f32 %v639_v29 }
 0x293   :  { %v6888_v16 = vpop.eup %6887  ;;  %v686_v27 = vmul.f32 %v6886_v12, %v7796_v38  ;;  %6913 = vpow2.f32 %v633_v36  ;;  %v6789_v36 = vld [vmem:[#allocation11 + $0x38] sm:$0xff]  }
 0x294   :  { %v6890_v19 = vpop.eup %6889  ;;  %v687_v20 = vmul.f32 %v6888_v16, %v7781_v24  ;;  %v635_v24 = vmul.f32 1.442695, %v618_v22  ;;  %6237 = vmatprep.subr.bf16.mxu1 %v6789_v36 }
 0x295   :  { %v6892_v23 = vpop.eup %6891  ;;  %v688_v26 = vmul.f32 %v6890_v19, %v7783_v25  ;;  %v672_v35 = vpack.c.bf16 %v6890_v19, %v6888_v16  ;;  %6238 = vmatpush3.bf16.msra.mxu1 %v6789_v36 }
 0x296   :  { %v6894_v30 = vpop.eup %6893  ;;  %v685_v31 = vmul.f32 %v6892_v23, %v7787_v28  ;;  %v671_v43 = vpack.c.bf16 %v6886_v12, %v6892_v23  ;;  %6915 = vpow2.f32 %v635_v24  ;;  %v6790_v24 = vld [vmem:[#allocation11 + $0x30] sm:$0xff]  }
 0x297   :  { %v6896_v33 = vpop.eup %6895  ;;  %v696_v34 = vpack.c.bf16 %v688_v26, %v687_v20  ;;  %v683_v39 = vmul.f32 %v6894_v30, %v7756_v62  ;;  %6239 = vmatprep.subr.bf16.mxu1 %v6790_v24 }
 0x298   :  { %v6898_v37 = vpop.eup %6897  ;;  %v695_v42 = vpack.c.bf16 %v686_v27, %v685_v31  ;;  %v684_v25 = vmul.f32 %v6896_v33, %v7762_v9  ;;  %v670_v4 = vpack.c.bf16 %v6896_v33, %v6894_v30  ;;  %v6781_v31 = vld [vmem:[#allocation9] sm:$0xff]   ;;  %v6786_v33 = vld [vmem:[#allocation9 + $0x28] sm:$0xff]  }
 0x299   :  { %745 = vmatprep.subr.bf16.mxu0 %v696_v34  ;;  %v6900_v38 = vpop.eup %6899  ;;  %v681_v47 = vmul.f32 %v6898_v37, %v7766_v13  ;;  %v6787_v34 = vld [vmem:[#allocation9 + $0x30] sm:$0xff]   ;;  %6240 = vmatpush3.bf16.msra.mxu1 %v6790_v24 }
 0x29a   :  { %746 = vmatpush1.bf16.msra.mxu0 %v672_v35  ;;  %v6902_v28 = vpop.eup %6901  ;;  %v694_v46 = vpack.c.bf16 %v684_v25, %v683_v39  ;;  %v682_v56 = vmul.f32 %v6900_v38, %v7768_v14  ;;  %v669_v12 = vpack.c.bf16 %v6900_v38, %v6898_v37  ;;  %v6788_v35 = vld [vmem:[#allocation9 + $0x38] sm:$0xff]   ;;  %v6791_v37 = vld [vmem:[#allocation11 + $0x28] sm:$0xff]   ;;  %v6794_v25 = vld [vmem:[#allocation11 + $0x10] sm:$0xff]  }
 0x29b   :  { %747 = vmatprep.subr.bf16.mxu0 %v695_v42  ;;  %v6904_v0 = vpop.eup %6903  ;;  %v679_v9 = vmul.f32 %v6902_v28, %v7742_v41  ;;  %6241 = vmatprep.subr.bf16.mxu1 %v6791_v37  ;;  %v6792_v42 = vld [vmem:[#allocation11 + $0x20] sm:$0xff]   ;;  %v6793_v39 = vld [vmem:[#allocation11 + $0x18] sm:$0xff]   ;;  %v6795_v38 = vld [vmem:[#allocation11 + $0x8] sm:$0xff]  }
 0x29c   :  { %v6906_v62 = vpop.eup %6905  ;;  %v693_v6 = vpack.c.bf16 %v682_v56, %v681_v47  ;;  %v680_v10 = vmul.f32 %v6904_v0, %v7750_v51  ;;  %v668_v19 = vpack.c.bf16 %v6904_v0, %v6902_v28 }
 0x29d   :  { %v6908_v11 = vpop.eup %6907  ;;  %v677_v13 = vmul.f32 %v6906_v62, %v7746_v45  ;;  %6242 = vmatpush3.bf16.msra.mxu1 %v6791_v37 }
 0x29e   :  { %748 = vmatpush1.bf16.msra.mxu0 %v671_v43  ;;  %v6910_v15 = vpop.eup %6909  ;;  %v692_v16 = vpack.c.bf16 %v680_v10, %v679_v9  ;;  %v678_v14 = vmul.f32 %v6908_v11, %v7752_v54  ;;  %v667_v23 = vpack.c.bf16 %v6908_v11, %v6906_v62  ;;  %6243 = vmatprep.subr.bf16.mxu1 %v6792_v42  ;;  %v7862_v43 = vld [vmem:[#allocation12 + $0x38] sm:$0xff]  }
 0x29f   :  { %749 = vmatprep.subr.bf16.mxu0 %v694_v46  ;;  %v6912_v18 = vpop.eup %6911  ;;  %v675_v41 = vmul.f32 %v6910_v15, %v7740_v40  ;;  %v6782_v40 = vld [vmem:[#allocation9 + $0x8] sm:$0xff]   ;;  %v9119_v46 = vmov 0.0  }
 0x2a0   :  { %v6914_v20 = vpop.eup %6913  ;;  %v691_v21 = vpack.c.bf16 %v678_v14, %v677_v13  ;;  %v676_v51 = vmul.f32 %v6912_v18, %v7748_v48  ;;  %v666_v54 = vpack.c.bf16 %v6912_v18, %v6910_v15  ;;  %v6783_v48 = vld [vmem:[#allocation9 + $0x10] sm:$0xff]  }
 0x2a1   :  { %v673_v27 = vmul.f32 %v6914_v20, %v7744_v44  ;;  %v6784_v44 = vld [vmem:[#allocation9 + $0x18] sm:$0xff]   ;;  %6244 = vmatpush3.bf16.msra.mxu1 %v6792_v42 }
 0x2a2   :  { %750 = vmatpush1.bf16.msra.mxu0 %v670_v4  ;;  %v690_v26 = vpack.c.bf16 %v676_v51, %v675_v41  ;;  %6245 = vmatprep.subr.bf16.mxu1 %v6793_v39 }
 0x2a3   :  { %751 = vmatprep.subr.bf16.mxu0 %v693_v6  ;;  %v6916_v22 = vpop.eup %6915 }
 0x2a4   :  { %v674_v45 = vmul.f32 %v6916_v22, %v7754_v58  ;;  %v665_v30 = vpack.c.bf16 %v6916_v22, %v6914_v20  ;;  %v6785_v58 = vld [vmem:[#allocation9 + $0x20] sm:$0xff]  }
 0x2a5   :  { %6246 = vmatpush3.bf16.msra.mxu1 %v6793_v39 }
 0x2a6   :  { %752 = vmatpush1.bf16.msra.mxu0 %v669_v12  ;;  %v689_v29 = vpack.c.bf16 %v674_v45, %v673_v27  ;;  %6247 = vmatprep.subr.bf16.mxu1 %v6794_v25 }
 0x2a7   :  { %753 = vmatprep.subr.bf16.mxu0 %v692_v16 }
 0x2a9   :  { %6248 = vmatpush3.bf16.msra.mxu1 %v6794_v25 }
 0x2aa   :  { %754 = vmatpush1.bf16.msra.mxu0 %v668_v19  ;;  %6249 = vmatprep.subr.bf16.mxu1 %v6795_v38 }
 0x2ab   :  { %755 = vmatprep.subr.bf16.mxu0 %v691_v21 }
 0x2ad   :  { %6250 = vmatpush3.bf16.msra.mxu1 %v6795_v38 }
 0x2ae   :  { %756 = vmatpush1.bf16.msra.mxu0 %v667_v23 }
 0x2af   :  { %757 = vmatprep.subr.bf16.mxu0 %v690_v26 }
 0x2b2   :  { %758 = vmatpush1.bf16.msra.mxu0 %v666_v54 }
 0x2b3   :  { %759 = vmatprep.subr.bf16.mxu0 %v689_v29 }
 0x2b6   :  { %760 = vmatpush1.bf16.msra.mxu0 %v665_v30 }
 0x2b9   :  { %778 = vmatmul.mubr.bf16.vlgmr.msra.gmra.mxu0 %v6781_v31 }
 0x2ba   :  { %787 = vmatprep.mubr.bf16.mxu0 %v9121_v17 }
 0x2c1   :  { %788 = vmatmul.mubr.bf16.gmra.mxu0 %v6782_v40 }
 0x2c2   :  { %797 = vmatprep.mubr.bf16.mxu0 %v9121_v17 }
 0x2c9   :  { %798 = vmatmul.mubr.bf16.gmra.mxu0 %v6783_v48 }
 0x2ca   :  { %807 = vmatprep.mubr.bf16.mxu0 %v9121_v17 }
 0x2d1   :  { %808 = vmatmul.mubr.bf16.gmra.mxu0 %v6784_v44 }
 0x2d2   :  { %817 = vmatprep.mubr.bf16.mxu0 %v9121_v17 }
 0x2d9   :  { %818 = vmatmul.mubr.bf16.gmra.mxu0 %v6785_v58 }
 0x2da   :  { %827 = vmatprep.mubr.bf16.mxu0 %v9121_v17 }
 0x2e1   :  { %828 = vmatmul.mubr.bf16.gmra.mxu0 %v6786_v33 }
 0x2e2   :  { %837 = vmatprep.mubr.bf16.mxu0 %v9121_v17 }
 0x2e9   :  { %838 = vmatmul.mubr.bf16.gmra.mxu0 %v6787_v34 }
 0x2ea   :  { %847 = vmatprep.mubr.bf16.mxu0 %v9121_v17 }
 0x2f1   :  { %848 = vmatmul.mubr.bf16.gmra.mxu0 %v6788_v35 }
 0x2f2   :  { %6317 = vmatprep.mubr.bf16.mxu0 %v7685_v32  ;;  %v6796_v32 = vld [vmem:[#allocation11] sm:$0xff]  }
 0x2f3   :  { %6251 = vmatprep.subr.bf16.mxu1 %v6796_v32 }
 0x2f4   :  { %6252 = vmatpush3.bf16.msra.mxu1 %v6796_v32 }
 0x2f5   :  { %6269 = vmatprep.subr.bf16.mxu1 %v7862_v43 }
 0x379   :  { %v779_v28 = vpop.f32.mrf.mxu0 }
 0x37a   :  { %vm858_vm0 = vcmp.eq.f32.partialorder %v779_v28, 0.0 }
 0x37b   :  { %v5688_v47 = vsel %vm858_vm0, 1.0, %v9119_v46  ;;  %v781_v56 = vpop.f32.mrf.mxu0 }
 0x37c   :  { %v906_v0 = vadd.f32 %v5688_v47, %v779_v28 }
 0x37d   :  { %v783_v4 = vpop.f32.mrf.mxu0 }
 0x37e   :  { %6917 = vrcp.f32 %v906_v0  ;;  %vm859_vm1 = vcmp.eq.f32.partialorder %v783_v4, 0.0 }
 0x37f   :  { %v5689_v62 = vsel %vm859_vm1, 1.0, %v9119_v46  ;;  %v785_v6 = vpop.f32.mrf.mxu0 }
 0x380   :  { %v907_v9 = vadd.f32 %v5689_v62, %v783_v4  ;;  %v6798_v4 = vld [vmem:[#allocation12 + $0x30] sm:$0xff]  }
 0x381   :  { %v789_v10 = vpop.f32.mrf.mxu0 }
 0x382   :  { %6919 = vrcp.f32 %v907_v9  ;;  %vm860_vm2 = vcmp.eq.f32.partialorder %v789_v10, 0.0 }
 0x383   :  { %v5690_v11 = vsel %vm860_vm2, 1.0, %v9119_v46  ;;  %v791_v12 = vpop.f32.mrf.mxu0 }
 0x384   :  { %v908_v15 = vadd.f32 %v5690_v11, %v789_v10 }
 0x385   :  { %v793_v16 = vpop.f32.mrf.mxu0 }
 0x386   :  { %6921 = vrcp.f32 %v908_v15  ;;  %vm861_vm3 = vcmp.eq.f32.partialorder %v793_v16, 0.0 }
 0x387   :  { %v5691_v13 = vsel %vm861_vm3, 1.0, %v9119_v46  ;;  %v795_v14 = vpop.f32.mrf.mxu0 }
 0x388   :  { %v909_v18 = vadd.f32 %v5691_v13, %v793_v16 }
 0x389   :  { %v799_v19 = vpop.f32.mrf.mxu0 }
 0x38a   :  { %6923 = vrcp.f32 %v909_v18  ;;  %vm862_vm4 = vcmp.eq.f32.partialorder %v799_v19, 0.0 }
 0x38b   :  { %v6918_v20 = vpop.eup %6917  ;;  %v5692_v21 = vsel %vm862_vm4, 1.0, %v9119_v46  ;;  %v801_v41 = vpop.f32.mrf.mxu0 }
 0x38c   :  { %v910_v51 = vadd.f32 %v5692_v21, %v799_v19  ;;  %v938_v23 = vmul.f32 %v6918_v20, %v781_v56 }
 0x38d   :  { %v803_v22 = vpop.f32.mrf.mxu0 }
 0x38e   :  { %6925 = vrcp.f32 %v910_v51  ;;  %vm863_vm5 = vcmp.eq.f32.partialorder %v803_v22, 0.0  ;;  %v954_v31 = vadd.f32 %v938_v23, %v7735_v8 }
 0x38f   :  { %v6920_v26 = vpop.eup %6919  ;;  %v5693_v27 = vsel %vm863_vm5, 1.0, %v9119_v46  ;;  %v805_v45 = vpop.f32.mrf.mxu0 }
 0x390   :  { %v939_v54 = vmul.f32 %v6920_v26, %v785_v6  ;;  %v911_v29 = vadd.f32 %v5693_v27, %v803_v22  ;;  %v6801_v27 = vld [vmem:[#allocation12 + $0x18] sm:$0xff]  }
 0x391   :  { %v809_v30 = vpop.f32.mrf.mxu0 }
 0x392   :  { %v955_v40 = vadd.f32 %v939_v54, %v7733_v7  ;;  %6927 = vrcp.f32 %v911_v29  ;;  %vm864_vm6 = vcmp.eq.f32.partialorder %v809_v30, 0.0 }
 0x393   :  { %v6922_v48 = vpop.eup %6921  ;;  %v5694_v44 = vsel %vm864_vm6, 1.0, %v9119_v46  ;;  %v811_v58 = vpop.f32.mrf.mxu0 }
 0x394   :  { %v912_v33 = vadd.f32 %v5694_v44, %v809_v30  ;;  %v970_v34 = vpack.c.bf16 %v955_v40, %v954_v31  ;;  %v940_v36 = vmul.f32 %v6922_v48, %v791_v12  ;;  %v6799_v12 = vld [vmem:[#allocation12 + $0x28] sm:$0xff]  }
 0x395   :  { %v813_v35 = vpop.f32.mrf.mxu0 }
 0x396   :  { %6929 = vrcp.f32 %v912_v33  ;;  %vm865_vm7 = vcmp.eq.f32.partialorder %v813_v35, 0.0  ;;  %6253 = vmatprep.mubr.bf16.mxu1 %v970_v34  ;;  %v956_v25 = vadd.f32 %v940_v36, %v7729_v5 }
 0x397   :  { %v6924_v24 = vpop.eup %6923  ;;  %v5695_v37 = vsel %vm865_vm7, 1.0, %v9119_v46  ;;  %v815_v42 = vpop.f32.mrf.mxu0 }
 0x398   :  { %v941_v8 = vmul.f32 %v6924_v24, %v795_v14  ;;  %v913_v39 = vadd.f32 %v5695_v37, %v813_v35 }
 0x399   :  { %v819_v7 = vpop.f32.mrf.mxu0 }
 0x39a   :  { %v957_v38 = vadd.f32 %v941_v8, %v7725_v3  ;;  %6931 = vrcp.f32 %v913_v39  ;;  %vm866_vm8 = vcmp.eq.f32.partialorder %v819_v7, 0.0 }
 0x39b   :  { %v6926_v32 = vpop.eup %6925  ;;  %v5696_v28 = vsel %vm866_vm8, 1.0, %v9119_v46  ;;  %v821_v47 = vpop.f32.mrf.mxu0 }
 0x39c   :  { %v971_v56 = vpack.c.bf16 %v957_v38, %v956_v25  ;;  %v914_v0 = vadd.f32 %v5696_v28, %v819_v7  ;;  %v942_v6 = vmul.f32 %v6926_v32, %v801_v41 }
 0x39d   :  { %v823_v62 = vpop.f32.mrf.mxu0 }
 0x39e   :  { %6933 = vrcp.f32 %v914_v0  ;;  %vm867_vm9 = vcmp.eq.f32.partialorder %v823_v62, 0.0  ;;  %6254 = vmatmul.mubr.bf16.vlgmr.msra.gmra.mxu1 %v971_v56  ;;  %v958_v16 = vadd.f32 %v942_v6, %v7723_v2 }
 0x39f   :  { %v6928_v9 = vpop.eup %6927  ;;  %v5697_v10 = vsel %vm867_vm9, 1.0, %v9119_v46  ;;  %v825_v5 = vpop.f32.mrf.mxu0  ;;  %6270 = vmatpush3.bf16.msra.mxu1 %v7862_v43  ;;  %v6800_v43 = vld [vmem:[#allocation12 + $0x20] sm:$0xff]  }
 0x3a0   :  { %v943_v3 = vmul.f32 %v6928_v9, %v805_v45  ;;  %v915_v11 = vadd.f32 %v5697_v10, %v823_v62  ;;  %6271 = vmatprep.subr.bf16.mxu1 %v6798_v4 }
 0x3a1   :  { %v829_v15 = vpop.f32.mrf.mxu0 }
 0x3a2   :  { %v959_v13 = vadd.f32 %v943_v3, %v7721_v1  ;;  %6935 = vrcp.f32 %v915_v11  ;;  %vm868_vm10 = vcmp.eq.f32.partialorder %v829_v15, 0.0 }
 0x3a3   :  { %v6930_v14 = vpop.eup %6929  ;;  %v5698_v18 = vsel %vm868_vm10, 1.0, %v9119_v46  ;;  %v831_v19 = vpop.f32.mrf.mxu0  ;;  %6272 = vmatpush3.bf16.msra.mxu1 %v6798_v4 }
 0x3a4   :  { %v916_v20 = vadd.f32 %v5698_v18, %v829_v15  ;;  %v972_v21 = vpack.c.bf16 %v959_v13, %v958_v16  ;;  %6273 = vmatprep.subr.bf16.mxu1 %v6799_v12  ;;  %v944_v51 = vmul.f32 %v6930_v14, %v811_v58 }
 0x3a5   :  { %v833_v41 = vpop.f32.mrf.mxu0 }
 0x3a6   :  { %6937 = vrcp.f32 %v916_v20  ;;  %vm869_vm11 = vcmp.eq.f32.partialorder %v833_v41, 0.0  ;;  %6257 = vmatprep.mubr.bf16.mxu1 %v972_v21  ;;  %v960_v54 = vadd.f32 %v944_v51, %v7717_v63  ;;  %v6802_v20 = vld [vmem:[#allocation12 + $0x10] sm:$0xff]   ;;  %v6803_v21 = vld [vmem:[#allocation12 + $0x8] sm:$0xff]  }
 0x3a7   :  { %v6932_v22 = vpop.eup %6931  ;;  %v5699_v2 = vsel %vm869_vm11, 1.0, %v9119_v46  ;;  %v835_v1 = vpop.f32.mrf.mxu0  ;;  %6274 = vmatpush3.bf16.msra.mxu1 %v6799_v12 }
 0x3a8   :  { %v945_v23 = vmul.f32 %v6932_v22, %v815_v42  ;;  %v917_v26 = vadd.f32 %v5699_v2, %v833_v41  ;;  %6275 = vmatprep.subr.bf16.mxu1 %v6800_v43 }
 0x3a9   :  { %v839_v45 = vpop.f32.mrf.mxu0 }
 0x3aa   :  { %v961_v29 = vadd.f32 %v945_v23, %v7713_v61  ;;  %6939 = vrcp.f32 %v917_v26  ;;  %vm870_vm12 = vcmp.eq.f32.partialorder %v839_v45, 0.0 }
 0x3ab   :  { %v6934_v30 = vpop.eup %6933  ;;  %v5700_v31 = vsel %vm870_vm12, 1.0, %v9119_v46  ;;  %v841_v40 = vpop.f32.mrf.mxu0  ;;  %6276 = vmatpush3.bf16.msra.mxu1 %v6800_v43 }
 0x3ac   :  { %v918_v48 = vadd.f32 %v5700_v31, %v839_v45  ;;  %v973_v44 = vpack.c.bf16 %v961_v29, %v960_v54  ;;  %6277 = vmatprep.subr.bf16.mxu1 %v6801_v27  ;;  %v946_v33 = vmul.f32 %v6934_v30, %v821_v47 }
 0x3ad   :  { %v843_v58 = vpop.f32.mrf.mxu0 }
 0x3ae   :  { %6941 = vrcp.f32 %v918_v48  ;;  %vm871_vm13 = vcmp.eq.f32.partialorder %v843_v58, 0.0  ;;  %6258 = vmatmul.mubr.bf16.gmra.mxu1 %v973_v44  ;;  %v962_v37 = vadd.f32 %v946_v33, %v7711_v60 }
 0x3af   :  { %v6936_v34 = vpop.eup %6935  ;;  %v5701_v63 = vsel %vm871_vm13, 1.0, %v9119_v46  ;;  %v845_v35 = vpop.f32.mrf.mxu0  ;;  %6278 = vmatpush3.bf16.msra.mxu1 %v6801_v27 }
 0x3b0   :  { %v947_v61 = vmul.f32 %v6936_v34, %v825_v5  ;;  %v919_v36 = vadd.f32 %v5701_v63, %v843_v58  ;;  %6279 = vmatprep.subr.bf16.mxu1 %v6802_v20 }
 0x3b1   :  { %v849_v24 = vpop.f32.mrf.mxu0 }
 0x3b2   :  { %v963_v42 = vadd.f32 %v947_v61, %v7709_v59  ;;  %6943 = vrcp.f32 %v919_v36  ;;  %vm872_vm14 = vcmp.eq.f32.partialorder %v849_v24, 0.0 }
 0x3b3   :  { %v6938_v8 = vpop.eup %6937  ;;  %v5702_v39 = vsel %vm872_vm14, 1.0, %v9119_v46  ;;  %v851_v7 = vpop.f32.mrf.mxu0  ;;  %6280 = vmatpush3.bf16.msra.mxu1 %v6802_v20 }
 0x3b4   :  { %v920_v25 = vadd.f32 %v5702_v39, %v849_v24  ;;  %v974_v38 = vpack.c.bf16 %v963_v42, %v962_v37  ;;  %v948_v28 = vmul.f32 %v6938_v8, %v831_v19  ;;  %6281 = vmatprep.subr.bf16.mxu1 %v6803_v21 }
 0x3b5   :  { %v853_v32 = vpop.f32.mrf.mxu0 }
 0x3b6   :  { %6945 = vrcp.f32 %v920_v25  ;;  %vm873_vm15 = vcmp.eq.f32.partialorder %v853_v32, 0.0  ;;  %6261 = vmatprep.mubr.bf16.mxu1 %v974_v38  ;;  %v964_v59 = vadd.f32 %v948_v28, %v7705_v57 }
 0x3b7   :  { %v6940_v47 = vpop.eup %6939  ;;  %v5703_v56 = vsel %vm873_vm15, 1.0, %v9119_v46  ;;  %v855_v14 = vpop.f32.mrf.mxu0  ;;  %6282 = vmatpush3.bf16.msra.mxu1 %v6803_v21 }
 0x3b8   :  { %v949_v0 = vmul.f32 %v6940_v47, %v835_v1  ;;  %v921_v60 = vadd.f32 %v5703_v56, %v853_v32 }
 0x3ba   :  { %v965_v4 = vadd.f32 %v949_v0, %v7701_v55  ;;  %6947 = vrcp.f32 %v921_v60 }
 0x3bb   :  { %v6942_v62 = vpop.eup %6941 }
 0x3bc   :  { %v975_v6 = vpack.c.bf16 %v965_v4, %v964_v59  ;;  %v950_v9 = vmul.f32 %v6942_v62, %v841_v40 }
 0x3be   :  { %6262 = vmatmul.mubr.bf16.gmra.mxu1 %v975_v6  ;;  %v966_v3 = vadd.f32 %v950_v9, %v7695_v52  ;;  %v6804_v52 = vld [vmem:[#allocation12] sm:$0xff]  }
 0x3bf   :  { %v6944_v10 = vpop.eup %6943  ;;  %6283 = vmatprep.subr.bf16.mxu1 %v6804_v52 }
 0x3c0   :  { %v951_v5 = vmul.f32 %v6944_v10, %v845_v35  ;;  %6284 = vmatpush3.bf16.msra.mxu1 %v6804_v52 }
 0x3c2   :  { %v967_v11 = vadd.f32 %v951_v5, %v7697_v53 }
 0x3c3   :  { %v6946_v12 = vpop.eup %6945 }
 0x3c4   :  { %v976_v15 = vpack.c.bf16 %v967_v11, %v966_v3  ;;  %v952_v16 = vmul.f32 %v6946_v12, %v851_v7 }
 0x3c6   :  { %6265 = vmatprep.mubr.bf16.mxu1 %v976_v15  ;;  %v968_v55 = vadd.f32 %v952_v16, %v7691_v49 }
 0x3c7   :  { %v6948_v13 = vpop.eup %6947 }
 0x3c8   :  { %v953_v57 = vmul.f32 %v6948_v13, %v855_v14 }
 0x3ca   :  { %v969_v18 = vadd.f32 %v953_v57, %v7693_v50 }
 0x3cc   :  { %v977_v19 = vpack.c.bf16 %v969_v18, %v968_v55 }
 0x3ce   :  { %6266 = vmatmul.mubr.bf16.gmra.mxu1 %v977_v19 }
 0x45e   :  { %v6255_v53 = vpop.f32.mrf.mxu1 }
 0x45f   :  { %v1141_v1 = vmax.f32 %v6255_v53, 0.0 }
 0x460   :  { %v1076_v43 = vpop.f32.mrf.mxu1 }
 0x461   :  { %v1139_v2 = vmax.f32 %v1076_v43, 0.0 }
 0x462   :  { %v6256_v41 = vpop.f32.mrf.mxu1 }
 0x463   :  { %v1142_v51 = vmax.f32 %v6256_v41, 0.0 }
 0x464   :  { %v1079_v22 = vpop.f32.mrf.mxu1 }
 0x465   :  { %v1140_v49 = vmax.f32 %v1079_v22, 0.0  ;;  %v1156_v23 = vpack.c.bf16 %v1142_v51, %v1141_v1 }
 0x467   :  { %v1155_v50 = vpack.c.bf16 %v1140_v49, %v1139_v2 }
 0x469   :  { %6285 = vmatprep.mubr.bf16.mxu1 %v1155_v50 }
 0x46a   :  { %6286 = vmatmul.mubr.bf16.vlgmr.msra.gmra.mxu1 %v1156_v23 }
 0x46e   :  { %v6259_v26 = vpop.f32.mrf.mxu1 }
 0x46f   :  { %v1145_v40 = vmax.f32 %v6259_v26, 0.0 }
 0x470   :  { %v1092_v27 = vpop.f32.mrf.mxu1 }
 0x471   :  { %v1143_v30 = vmax.f32 %v1092_v27, 0.0 }
 0x472   :  { %v6260_v45 = vpop.f32.mrf.mxu1 }
 0x473   :  { %v1146_v54 = vmax.f32 %v6260_v45, 0.0 }
 0x474   :  { %v1095_v29 = vpop.f32.mrf.mxu1 }
 0x475   :  { %v1144_v31 = vmax.f32 %v1095_v29, 0.0  ;;  %v1158_v44 = vpack.c.bf16 %v1146_v54, %v1145_v40 }
 0x477   :  { %v1157_v48 = vpack.c.bf16 %v1144_v31, %v1143_v30 }
 0x479   :  { %6289 = vmatprep.mubr.bf16.mxu1 %v1157_v48  ;;  %v7301_v48 = vld [vmem:[#allocation8 + $0x8] sm:$0xff]  }
 0x47a   :  { %6290 = vmatmul.mubr.bf16.gmra.mxu1 %v1158_v44  ;;  %v7302_v44 = vld [vmem:[#allocation8 + $0x10] sm:$0xff]  }
 0x47e   :  { %v6263_v58 = vpop.f32.mrf.mxu1 }
 0x47f   :  { %v1149_v24 = vmax.f32 %v6263_v58, 0.0  ;;  %v7303_v58 = vld [vmem:[#allocation8 + $0x18] sm:$0xff]  }
 0x480   :  { %v1108_v33 = vpop.f32.mrf.mxu1 }
 0x481   :  { %v1147_v61 = vmax.f32 %v1108_v33, 0.0  ;;  %v7304_v33 = vld [vmem:[#allocation8 + $0x20] sm:$0xff]  }
 0x482   :  { %v6264_v34 = vpop.f32.mrf.mxu1 }
 0x483   :  { %v1150_v63 = vmax.f32 %v6264_v34, 0.0  ;;  %v7305_v34 = vld [vmem:[#allocation8 + $0x28] sm:$0xff]  }
 0x484   :  { %v1111_v35 = vpop.f32.mrf.mxu1 }
 0x485   :  { %v1148_v36 = vmax.f32 %v1111_v35, 0.0  ;;  %v1160_v42 = vpack.c.bf16 %v1150_v63, %v1149_v24  ;;  %v7306_v63 = vld [vmem:[#allocation8 + $0x30] sm:$0xff]   ;;  %v7307_v35 = vld [vmem:[#allocation8 + $0x38] sm:$0xff]  }
 0x487   :  { %v1159_v37 = vpack.c.bf16 %v1148_v36, %v1147_v61 }
 0x489   :  { %6293 = vmatprep.mubr.bf16.mxu1 %v1159_v37 }
 0x48a   :  { %6294 = vmatmul.mubr.bf16.gmra.mxu1 %v1160_v42 }
 0x48e   :  { %v6267_v8 = vpop.f32.mrf.mxu1 }
 0x48f   :  { %v1153_v47 = vmax.f32 %v6267_v8, 0.0 }
 0x490   :  { %v1124_v39 = vpop.f32.mrf.mxu1 }
 0x491   :  { %v1151_v32 = vmax.f32 %v1124_v39, 0.0 }
 0x492   :  { %v6268_v7 = vpop.f32.mrf.mxu1 }
 0x493   :  { %v1154_v25 = vmax.f32 %v6268_v7, 0.0 }
 0x494   :  { %v1127_v38 = vpop.f32.mrf.mxu1 }
 0x495   :  { %v1152_v28 = vmax.f32 %v1127_v38, 0.0  ;;  %v1162_v0 = vpack.c.bf16 %v1154_v25, %v1153_v47 }
 0x497   :  { %v1161_v56 = vpack.c.bf16 %v1152_v28, %v1151_v32 }
 0x499   :  { %6297 = vmatprep.mubr.bf16.mxu1 %v1161_v56 }
 0x49a   :  { %6298 = vmatmul.mubr.bf16.gmra.mxu1 %v1162_v0 }
 0x49b   :  { %1652 = vmatprep.mubr.bf16.mxu1 %v9121_v17 }
 0x52a   :  { %v7899_v60 = vpop.f32.mrf.mxu1 }
 0x52b   :  { %v1326_v54 = vmax.f32 %v7899_v60, 0.0 }
 0x52c   :  { %v7901_v59 = vpop.f32.mrf.mxu1 }
 0x52d   :  { %v1324_v31 = vmax.f32 %v7901_v59, 0.0 }
 0x52e   :  { %v7903_v4 = vpop.f32.mrf.mxu1 }
 0x52f   :  { %v9118_v27 = vmax.f32 %v7903_v4, 0.0 }
 0x530   :  { %v7905_v62 = vpop.f32.mrf.mxu1 }
 0x531   :  { %v1341_v29 = vpack.c.bf16 %v9118_v27, %v1326_v54  ;;  %v1325_v30 = vmax.f32 %v7905_v62, 0.0 }
 0x533   :  { %v1340_v40 = vpack.c.bf16 %v1325_v30, %v1324_v31 }
 0x53a   :  { %v7907_v6 = vpop.f32.mrf.mxu1 }
 0x53b   :  { %v9115_v1 = vmax.f32 %v7907_v6, 0.0 }
 0x53c   :  { %v7909_v9 = vpop.f32.mrf.mxu1 }
 0x53d   :  { %v9117_v26 = vmax.f32 %v7909_v9, 0.0 }
 0x53e   :  { %v7911_v10 = vpop.f32.mrf.mxu1 }
 0x53f   :  { %v9114_v2 = vmax.f32 %v7911_v10, 0.0 }
 0x540   :  { %v7913_v5 = vpop.f32.mrf.mxu1 }
 0x541   :  { %v1343_v50 = vpack.c.bf16 %v9114_v2, %v9115_v1  ;;  %v9116_v23 = vmax.f32 %v7913_v5, 0.0 }
 0x543   :  { %v1342_v45 = vpack.c.bf16 %v9116_v23, %v9117_v26 }
 0x54a   :  { %v7915_v3 = vpop.f32.mrf.mxu1 }
 0x54b   :  { %v9111_v43 = vmax.f32 %v7915_v3, 0.0 }
 0x54c   :  { %v7917_v11 = vpop.f32.mrf.mxu1 }
 0x54d   :  { %v9113_v22 = vmax.f32 %v7917_v11, 0.0 }
 0x54e   :  { %v7919_v12 = vpop.f32.mrf.mxu1 }
 0x54f   :  { %v9110_v52 = vmax.f32 %v7919_v12, 0.0 }
 0x550   :  { %v7921_v15 = vpop.f32.mrf.mxu1 }
 0x551   :  { %v1345_v41 = vpack.c.bf16 %v9110_v52, %v9111_v43  ;;  %v9112_v51 = vmax.f32 %v7921_v15, 0.0 }
 0x553   :  { %v1344_v49 = vpack.c.bf16 %v9112_v51, %v9113_v22 }
 0x55a   :  { %v7923_v16 = vpop.f32.mrf.mxu1 }
 0x55b   :  { %v9107_v57 = vmax.f32 %v7923_v16, 0.0 }
 0x55c   :  { %v7925_v13 = vpop.f32.mrf.mxu1 }
 0x55d   :  { %v9109_v19 = vmax.f32 %v7925_v13, 0.0 }
 0x55e   :  { %v7927_v14 = vpop.f32.mrf.mxu1 }
 0x55f   :  { %v9106_v55 = vmax.f32 %v7927_v14, 0.0 }
 0x560   :  { %v7931_v18 = vpop.f32.mrf.mxu1 }
 0x561   :  { %v1347_v20 = vpack.c.bf16 %v9106_v55, %v9107_v57  ;;  %v9108_v21 = vmax.f32 %v7931_v18, 0.0 }
 0x563   :  { %v1346_v53 = vpack.c.bf16 %v9108_v21, %v9109_v19  ;;  %6301 = vmatprep.subr.bf16.mxu0 %v1347_v20 }
 0x564   :  { %6302 = vmatpush3.bf16.msra.mxu0 %v1347_v20 }
 0x565   :  { %6303 = vmatprep.subr.bf16.mxu0 %v1346_v53 }
 0x568   :  { %6304 = vmatpush3.bf16.msra.mxu0 %v1346_v53 }
 0x569   :  { %6305 = vmatprep.subr.bf16.mxu0 %v1345_v41 }
 0x56c   :  { %6306 = vmatpush3.bf16.msra.mxu0 %v1345_v41 }
 0x56d   :  { %6307 = vmatprep.subr.bf16.mxu0 %v1344_v49 }
 0x570   :  { %6308 = vmatpush3.bf16.msra.mxu0 %v1344_v49 }
 0x571   :  { %6309 = vmatprep.subr.bf16.mxu0 %v1343_v50 }
 0x574   :  { %6310 = vmatpush3.bf16.msra.mxu0 %v1343_v50 }
 0x575   :  { %6311 = vmatprep.subr.bf16.mxu0 %v1342_v45 }
 0x578   :  { %6312 = vmatpush3.bf16.msra.mxu0 %v1342_v45 }
 0x579   :  { %6313 = vmatprep.subr.bf16.mxu0 %v1341_v29 }
 0x57c   :  { %6314 = vmatpush3.bf16.msra.mxu0 %v1341_v29 }
 0x57d   :  { %6315 = vmatprep.subr.bf16.mxu0 %v1340_v40 }
 0x580   :  { %6316 = vmatpush3.bf16.msra.mxu0 %v1340_v40 }
 0x583   :  { %6318 = vmatmul.mubr.bf16.vlgmr.msra.gmra.mxu0 %v7301_v48 }
 0x584   :  { %6321 = vmatprep.mubr.bf16.mxu0 %v7302_v44 }
 0x58b   :  { %6322 = vmatmul.mubr.bf16.gmra.mxu0 %v7303_v58 }
 0x58c   :  { %6325 = vmatprep.mubr.bf16.mxu0 %v7304_v33 }
 0x593   :  { %6326 = vmatmul.mubr.bf16.gmra.mxu0 %v7305_v34 }
 0x594   :  { %6329 = vmatprep.mubr.bf16.mxu0 %v7306_v63 }
 0x59b   :  { %6330 = vmatmul.mubr.bf16.gmra.mxu0 %v7307_v35 }
 0x643   :  { %v6319_v61 = vpop.f32.mrf.mxu0 }
 0x644   :  { %v1447_v32 = vmax.f32 %v6319_v61, 0.0 }
 0x645   :  { %v1382_v36 = vpop.f32.mrf.mxu0 }
 0x646   :  { %v1445_v56 = vmax.f32 %v1382_v36, 0.0  ;;  %v7979_v29 = vadd.f32 1e-07, %v1447_v32 }
 0x647   :  { %v6320_v24 = vpop.f32.mrf.mxu0 }
 0x648   :  { %v1448_v20 = vmax.f32 %v6320_v24, 0.0  ;;  %v7983_v58 = vadd.f32 1e-07, %v1445_v56 }
 0x649   :  { %v1385_v37 = vpop.f32.mrf.mxu0 }
 0x64a   :  { %v1446_v50 = vmax.f32 %v1385_v37, 0.0  ;;  %v7987_v35 = vadd.f32 1e-07, %v1448_v20 }
 0x64b   :  { %v6323_v42 = vpop.f32.mrf.mxu0 }
 0x64c   :  { %v1451_v28 = vmax.f32 %v6323_v42, 0.0  ;;  %v7993_v37 = vadd.f32 1e-07, %v1446_v50 }
 0x64d   :  { %v1398_v8 = vpop.f32.mrf.mxu0 }
 0x64e   :  { %v1449_v0 = vmax.f32 %v1398_v8, 0.0  ;;  %v7981_v40 = vadd.f32 1e-07, %v1451_v28 }
 0x64f   :  { %v6324_v39 = vpop.f32.mrf.mxu0 }
 0x650   :  { %v1452_v53 = vmax.f32 %v6324_v39, 0.0  ;;  %v7985_v33 = vadd.f32 1e-07, %v1449_v0  ;;  %v1480_v39 = vmax.f32 %v7979_v29, %v7981_v40 }
 0x651   :  { %v1401_v7 = vpop.f32.mrf.mxu0 }
 0x652   :  { %v1450_v41 = vmax.f32 %v1401_v7, 0.0  ;;  %v7989_v61 = vadd.f32 1e-07, %v1452_v53  ;;  %v1501_v7 = vmin.f32 %v7979_v29, %v7981_v40  ;;  %v1478_v28 = vmax.f32 %v7983_v58, %v7985_v33 }
 0x653   :  { %v6327_v25 = vpop.f32.mrf.mxu0  ;;  %v1499_v20 = vmin.f32 %v7983_v58, %v7985_v33 }
 0x654   :  { %v1455_v45 = vmax.f32 %v6327_v25, 0.0  ;;  %v7991_v36 = vadd.f32 1e-07, %v1450_v41  ;;  %v1481_v53 = vmax.f32 %v7987_v35, %v7989_v61  ;;  %v1502_v41 = vmin.f32 %v7987_v35, %v7989_v61 }
 0x655   :  { %v1414_v38 = vpop.f32.mrf.mxu0 }
 0x656   :  { %v1453_v34 = vmax.f32 %v1414_v38, 0.0  ;;  %v7995_v42 = vadd.f32 1e-07, %v1455_v45  ;;  %v1500_v45 = vmin.f32 %v7993_v37, %v7991_v36 }
 0x657   :  { %v6328_v47 = vpop.f32.mrf.mxu0 }
 0x658   :  { %v1456_v48 = vmax.f32 %v6328_v47, 0.0  ;;  %v8005_v47 = vadd.f32 1e-07, %v1453_v34  ;;  %v1505_v57 = vmin.f32 %v1501_v7, %v7995_v42 }
 0x659   :  { %v1417_v49 = vpop.f32.mrf.mxu0 }
 0x65a   :  { %v1454_v63 = vmax.f32 %v1417_v49, 0.0  ;;  %v8001_v25 = vadd.f32 1e-07, %v1456_v48  ;;  %v1479_v49 = vmax.f32 %v7993_v37, %v7991_v36  ;;  %v1484_v48 = vmax.f32 %v1480_v39, %v7995_v42 }
 0x65b   :  { %v6331_v44 = vpop.f32.mrf.mxu0  ;;  %v1482_v21 = vmax.f32 %v1478_v28, %v8005_v47  ;;  %v1503_v19 = vmin.f32 %v1499_v20, %v8005_v47 }
 0x65c   :  { %v1459_v8 = vmax.f32 %v6331_v44, 0.0  ;;  %v8007_v56 = vadd.f32 1e-07, %v1454_v63  ;;  %v1485_v63 = vmax.f32 %v1481_v53, %v8001_v25 }
 0x65d   :  { %v1430_v24 = vpop.f32.mrf.mxu0 }
 0x65e   :  { %v1457_v38 = vmax.f32 %v1430_v24, 0.0  ;;  %v8020_v44 = vadd.f32 1e-07, %v1459_v8  ;;  %v1506_v24 = vmin.f32 %v1502_v41, %v8001_v25  ;;  %v1483_v52 = vmax.f32 %v1479_v49, %v8007_v56 }
 0x65f   :  { %v6332_v32 = vpop.f32.mrf.mxu0  ;;  %v1504_v8 = vmin.f32 %v1500_v45, %v8007_v56 }
 0x660   :  { %v1460_v0 = vmax.f32 %v6332_v32, 0.0  ;;  %v8026_v32 = vadd.f32 1e-07, %v1457_v38  ;;  %v1488_v38 = vmax.f32 %v1484_v48, %v8020_v44  ;;  %v1509_v41 = vmin.f32 %v1505_v57, %v8020_v44 }
 0x661   :  { %v1433_v50 = vpop.f32.mrf.mxu0 }
 0x662   :  { %v8022_v34 = vadd.f32 1e-07, %v1460_v0  ;;  %v1458_v55 = vmax.f32 %v1433_v50, 0.0  ;;  %v1486_v7 = vmax.f32 %v1482_v21, %v8026_v32  ;;  %v1507_v28 = vmin.f32 %v1503_v19, %v8026_v32 }
 0x664   :  { %v1489_v39 = vmax.f32 %v1485_v63, %v8022_v34  ;;  %v1510_v0 = vmin.f32 %v1506_v24, %v8022_v34  ;;  %v8035_v53 = vadd.f32 1e-07, %v1458_v55 }
 0x666   :  { %v1487_v20 = vmax.f32 %v1483_v52, %v8035_v53  ;;  %v1508_v49 = vmin.f32 %v1504_v8, %v8035_v53  ;;  %v1491_v50 = vmax.f32 %v1488_v38, %v1489_v39  ;;  %v1512_v45 = vmin.f32 %v1509_v41, %v1510_v0 }
 0x667   :  { %v1520_v8 = vstv %s5720_s30 }
 0x668   :  { %v1490_v43 = vmax.f32 %v1486_v7, %v1487_v20  ;;  %v1511_v63 = vmin.f32 %v1507_v28, %v1508_v49  ;;  %v1538_v38 = vmul.f32 %v1520_v8, %v8020_v44  ;;  %v1539_v41 = vmul.f32 %v1520_v8, %v8022_v34 }
 0x669   :  { %v1532_v28 = vmul.f32 %v1520_v8, %v8005_v47 }
 0x66a   :  { %v1492_v51 = vmax.f32 %v1490_v43, %v1491_v50  ;;  %v1513_v24 = vmin.f32 %v1511_v63, %v1512_v45  ;;  %v1536_v43 = vmul.f32 %v1520_v8, %v8026_v32  ;;  %v1533_v50 = vmul.f32 %v1520_v8, %v8007_v56 }
 0x66c   :  { %v1493_v55 = vrot.slane %v1492_v51, 4  ;;  %v1514_v22 = vrot.slane %v1513_v24, 4 }
 0x66e   :  { %v1494_v2 = vmax.f32 %v1492_v51, %v1493_v55  ;;  %v1515_v48 = vmin.f32 %v1513_v24, %v1514_v22  ;;  %v1537_v22 = vmul.f32 %v1520_v8, %v8035_v53 }
 0x670   :  { %v1495_v57 = vrot.slane %v1494_v2, 2  ;;  %v1516_v1 = vrot.slane %v1515_v48, 2 }
 0x672   :  { %v1496_v21 = vmax.f32 %v1494_v2, %v1495_v57  ;;  %v1517_v23 = vmin.f32 %v1515_v48, %v1516_v1  ;;  %v1534_v2 = vmul.f32 %v1520_v8, %v7995_v42  ;;  %v1535_v1 = vmul.f32 %v1520_v8, %v8001_v25 }
 0x674   :  { %v1497_v19 = vrot.slane %v1496_v21, 1  ;;  %v1518_v26 = vrot.slane %v1517_v23, 1 }
 0x676   :  { %v1498_v52 = vmax.f32 %v1496_v21, %v1497_v19  ;;  %v1519_v27 = vmin.f32 %v1517_v23, %v1518_v26  ;;  %v1530_v19 = vmul.f32 %v1520_v8, %v7981_v40 }
 0x678   :  { %v1521_v39 = vmul.f32 %v1520_v8, %v1498_v52  ;;  %v1522_v0 = vmul.f32 %v1520_v8, %v1519_v27 }
 0x67a   :  { %v8046_v51 = vmax.f32 %v1521_v39, %v1522_v0  ;;  %v1531_v39 = vmul.f32 %v1520_v8, %v7989_v61 }
 0x67c   :  { %v1553_v7 = vsub.f32 %v1537_v22, %v8046_v51  ;;  %v1554_v23 = vsub.f32 %v1538_v38, %v8046_v51  ;;  %v1555_v26 = vsub.f32 %v1539_v41, %v8046_v51  ;;  %v1552_v27 = vsub.f32 %v1536_v43, %v8046_v51 }
 0x67d   :  { %v1550_v20 = vsub.f32 %v1534_v2, %v8046_v51  ;;  %v1551_v49 = vsub.f32 %v1535_v1, %v8046_v51  ;;  %v1548_v48 = vsub.f32 %v1532_v28, %v8046_v51  ;;  %v1549_v21 = vsub.f32 %v1533_v50, %v8046_v51 }
 0x67e   :  { %v1582_v45 = vmul.f32 1.442695, %v1553_v7  ;;  %v1584_v63 = vmul.f32 1.442695, %v1554_v23  ;;  %v1586_v24 = vmul.f32 1.442695, %v1555_v26  ;;  %v1546_v38 = vsub.f32 %v1530_v19, %v8046_v51 }
 0x67f   :  { %v1580_v55 = vmul.f32 1.442695, %v1552_v27  ;;  %v1576_v57 = vmul.f32 1.442695, %v1550_v20  ;;  %v1578_v52 = vmul.f32 1.442695, %v1551_v49  ;;  %v1547_v41 = vsub.f32 %v1531_v39, %v8046_v51 }
 0x680   :  { %6949 = vpow2.f32 %v1582_v45  ;;  %v1572_v0 = vmul.f32 1.442695, %v1548_v48  ;;  %v1574_v43 = vmul.f32 1.442695, %v1549_v21  ;;  %v1528_v22 = vmul.f32 %v1520_v8, %v7985_v33 }
 0x681   :  { %6951 = vpow2.f32 %v1584_v63  ;;  %v1529_v2 = vmul.f32 %v1520_v8, %v7991_v36  ;;  %v1568_v1 = vmul.f32 1.442695, %v1546_v38  ;;  %v1570_v23 = vmul.f32 1.442695, %v1547_v41 }
 0x682   :  { %6953 = vpow2.f32 %v1586_v24  ;;  %v1544_v7 = vsub.f32 %v1528_v22, %v8046_v51  ;;  %v1526_v27 = vmul.f32 %v1520_v8, %v7979_v29  ;;  %v1527_v28 = vmul.f32 %v1520_v8, %v7987_v35 }
 0x683   :  { %6955 = vpow2.f32 %v1580_v55  ;;  %v1545_v26 = vsub.f32 %v1529_v2, %v8046_v51  ;;  %v1524_v50 = vmul.f32 %v1520_v8, %v7983_v58  ;;  %v1525_v55 = vmul.f32 %v1520_v8, %v7993_v37 }
 0x684   :  { %6957 = vpow2.f32 %v1576_v57  ;;  %v1564_v20 = vmul.f32 1.442695, %v1544_v7  ;;  %v1542_v49 = vsub.f32 %v1526_v27, %v8046_v51  ;;  %v1543_v63 = vsub.f32 %v1527_v28, %v8046_v51 }
 0x685   :  { %6959 = vpow2.f32 %v1578_v52  ;;  %v1566_v45 = vmul.f32 1.442695, %v1545_v26  ;;  %v1540_v57 = vsub.f32 %v1524_v50, %v8046_v51  ;;  %v1541_v39 = vsub.f32 %v1525_v55, %v8046_v51 }
 0x686   :  { %6961 = vpow2.f32 %v1572_v0  ;;  %v1560_v52 = vmul.f32 1.442695, %v1542_v49  ;;  %v1562_v41 = vmul.f32 1.442695, %v1543_v63 }
 0x687   :  { %6963 = vpow2.f32 %v1574_v43 }
 0x688   :  { %6965 = vpow2.f32 %v1568_v1 }
 0x689   :  { %6967 = vpow2.f32 %v1570_v23  ;;  %v1556_v23 = vmul.f32 1.442695, %v1540_v57 }
 0x68a   :  { %6969 = vpow2.f32 %v1564_v20 }
 0x68b   :  { %6971 = vpow2.f32 %v1566_v45 }
 0x68c   :  { %6973 = vpow2.f32 %v1560_v52 }
 0x68d   :  { %v6950_v24 = vpop.eup %6949  ;;  %6975 = vpow2.f32 %v1562_v41 }
 0x68e   :  { %v6952_v48 = vpop.eup %6951  ;;  %v1609_v43 = vmul.f32 %v6950_v24, %v8035_v53  ;;  %6977 = vpow2.f32 %v1556_v23  ;;  %v7313_v23 = vld [vmem:[#allocation9 + $0x28] sm:$0xff]  }
 0x68f   :  { %v6954_v21 = vpop.eup %6953  ;;  %v1610_v19 = vmul.f32 %v6952_v48, %v8020_v44  ;;  %v1558_v44 = vmul.f32 1.442695, %v1541_v39 }
 0x690   :  { %v6956_v0 = vpop.eup %6955  ;;  %v1611_v38 = vmul.f32 %v6954_v21, %v8022_v34  ;;  %v1595_v7 = vpack.c.bf16 %v6954_v21, %v6952_v48 }
 0x691   :  { %v6958_v22 = vpop.eup %6957  ;;  %v1608_v8 = vmul.f32 %v6956_v0, %v8026_v32  ;;  %v1594_v28 = vpack.c.bf16 %v6950_v24, %v6956_v0  ;;  %6979 = vpow2.f32 %v1558_v44  ;;  %v7314_v44 = vld [vmem:[#allocation9 + $0x30] sm:$0xff]  }
 0x692   :  { %v6960_v2 = vpop.eup %6959  ;;  %v1619_v1 = vpack.c.bf16 %v1611_v38, %v1610_v19  ;;  %v1606_v51 = vmul.f32 %v6958_v22, %v7995_v42 }
 0x693   :  { %v6962_v26 = vpop.eup %6961  ;;  %v1618_v27 = vpack.c.bf16 %v1609_v43, %v1608_v8  ;;  %v1607_v34 = vmul.f32 %v6960_v2, %v8001_v25  ;;  %v1593_v63 = vpack.c.bf16 %v6960_v2, %v6958_v22 }
 0x694   :  { %1620 = vmatprep.subr.bf16.mxu1 %v1619_v1  ;;  %v6964_v53 = vpop.eup %6963  ;;  %v1604_v49 = vmul.f32 %v6962_v26, %v8005_v47 }
 0x695   :  { %1621 = vmatpush1.bf16.msra.mxu1 %v1595_v7  ;;  %v6966_v32 = vpop.eup %6965  ;;  %v1617_v20 = vpack.c.bf16 %v1607_v34, %v1606_v51  ;;  %v1605_v50 = vmul.f32 %v6964_v53, %v8007_v56  ;;  %v1592_v24 = vpack.c.bf16 %v6964_v53, %v6962_v26  ;;  %v7310_v7 = vld [vmem:[#allocation9 + $0x10] sm:$0xff]   ;;  %v7315_v26 = vld [vmem:[#allocation9 + $0x38] sm:$0xff]   ;;  %v6807_v53 = vld [vmem:[#allocation11 + $0x68] sm:$0xff]  }
 0x696   :  { %1622 = vmatprep.subr.bf16.mxu1 %v1618_v27  ;;  %v6968_v45 = vpop.eup %6967  ;;  %v1602_v25 = vmul.f32 %v6966_v32, %v7981_v40  ;;  %v7316_v27 = vld [vmem:[#allocation8] sm:$0xff]   ;;  %v6805_v51 = vld [vmem:[#allocation11 + $0x78] sm:$0xff]   ;;  %v6806_v34 = vld [vmem:[#allocation11 + $0x70] sm:$0xff]  }
 0x697   :  { %v6970_v42 = vpop.eup %6969  ;;  %v1616_v55 = vpack.c.bf16 %v1605_v50, %v1604_v49  ;;  %v1603_v48 = vmul.f32 %v6968_v45, %v7989_v61  ;;  %v1591_v39 = vpack.c.bf16 %v6968_v45, %v6966_v32  ;;  %6333 = vmatprep.subr.bf16.mxu0 %v6805_v51  ;;  %v6809_v32 = vld [vmem:[#allocation11 + $0x58] sm:$0xff]   ;;  %v6811_v49 = vld [vmem:[#allocation11 + $0x48] sm:$0xff]   ;;  %v6812_v50 = vld [vmem:[#allocation11 + $0x40] sm:$0xff]  }
 0x698   :  { %v6972_v57 = vpop.eup %6971  ;;  %v1600_v47 = vmul.f32 %v6970_v42, %v7985_v33  ;;  %6334 = vmatpush3.bf16.msra.mxu0 %v6805_v51  ;;  %v8100_v45 = vld [vmem:[#allocation12 + $0x78] sm:$0xff]  }
 0x699   :  { %1623 = vmatpush1.bf16.msra.mxu1 %v1594_v28  ;;  %v6974_v21 = vpop.eup %6973  ;;  %v1615_v19 = vpack.c.bf16 %v1603_v48, %v1602_v25  ;;  %v1601_v56 = vmul.f32 %v6972_v57, %v7991_v36  ;;  %v1590_v41 = vpack.c.bf16 %v6972_v57, %v6970_v42  ;;  %6335 = vmatprep.subr.bf16.mxu0 %v6806_v34  ;;  %v6808_v28 = vld [vmem:[#allocation11 + $0x60] sm:$0xff]  }
 0x69a   :  { %1624 = vmatprep.subr.bf16.mxu1 %v1617_v20  ;;  %v6976_v52 = vpop.eup %6975  ;;  %v1598_v40 = vmul.f32 %v6974_v21, %v7979_v29  ;;  %v7308_v29 = vld [vmem:[#allocation9] sm:$0xff]   ;;  %v6810_v20 = vld [vmem:[#allocation11 + $0x50] sm:$0xff]  }
 0x69b   :  { %v6978_v0 = vpop.eup %6977  ;;  %v1614_v38 = vpack.c.bf16 %v1601_v56, %v1600_v47  ;;  %v1599_v61 = vmul.f32 %v6976_v52, %v7987_v35  ;;  %v1589_v36 = vpack.c.bf16 %v6976_v52, %v6974_v21  ;;  %v7309_v35 = vld [vmem:[#allocation9 + $0x8] sm:$0xff]  }
 0x69c   :  { %v1596_v8 = vmul.f32 %v6978_v0, %v7983_v58  ;;  %v7311_v58 = vld [vmem:[#allocation9 + $0x18] sm:$0xff]   ;;  %6336 = vmatpush3.bf16.msra.mxu0 %v6806_v34 }
 0x69d   :  { %1625 = vmatpush1.bf16.msra.mxu1 %v1593_v63  ;;  %v1613_v22 = vpack.c.bf16 %v1599_v61, %v1598_v40  ;;  %6337 = vmatprep.subr.bf16.mxu0 %v6807_v53 }
 0x69e   :  { %1626 = vmatprep.subr.bf16.mxu1 %v1616_v55  ;;  %v6980_v43 = vpop.eup %6979 }
 0x69f   :  { %v1597_v33 = vmul.f32 %v6980_v43, %v7993_v37  ;;  %v1588_v1 = vpack.c.bf16 %v6980_v43, %v6978_v0  ;;  %v7312_v37 = vld [vmem:[#allocation9 + $0x20] sm:$0xff]  }
 0x6a0   :  { %6338 = vmatpush3.bf16.msra.mxu0 %v6807_v53 }
 0x6a1   :  { %1627 = vmatpush1.bf16.msra.mxu1 %v1592_v24  ;;  %v1612_v2 = vpack.c.bf16 %v1597_v33, %v1596_v8  ;;  %6339 = vmatprep.subr.bf16.mxu0 %v6808_v28 }
 0x6a2   :  { %1628 = vmatprep.subr.bf16.mxu1 %v1615_v19 }
 0x6a4   :  { %6340 = vmatpush3.bf16.msra.mxu0 %v6808_v28 }
 0x6a5   :  { %1629 = vmatpush1.bf16.msra.mxu1 %v1591_v39  ;;  %6341 = vmatprep.subr.bf16.mxu0 %v6809_v32 }
 0x6a6   :  { %1630 = vmatprep.subr.bf16.mxu1 %v1614_v38 }
 0x6a8   :  { %6342 = vmatpush3.bf16.msra.mxu0 %v6809_v32 }
 0x6a9   :  { %1631 = vmatpush1.bf16.msra.mxu1 %v1590_v41  ;;  %6343 = vmatprep.subr.bf16.mxu0 %v6810_v20 }
 0x6aa   :  { %1632 = vmatprep.subr.bf16.mxu1 %v1613_v22 }
 0x6ac   :  { %6344 = vmatpush3.bf16.msra.mxu0 %v6810_v20 }
 0x6ad   :  { %1633 = vmatpush1.bf16.msra.mxu1 %v1589_v36  ;;  %6345 = vmatprep.subr.bf16.mxu0 %v6811_v49 }
 0x6ae   :  { %1634 = vmatprep.subr.bf16.mxu1 %v1612_v2 }
 0x6b0   :  { %6346 = vmatpush3.bf16.msra.mxu0 %v6811_v49 }
 0x6b1   :  { %1635 = vmatpush1.bf16.msra.mxu1 %v1588_v1  ;;  %6347 = vmatprep.subr.bf16.mxu0 %v6812_v50 }
 0x6b4   :  { %1653 = vmatmul.mubr.bf16.vlgmr.msra.gmra.mxu1 %v7308_v29  ;;  %6348 = vmatpush3.bf16.msra.mxu0 %v6812_v50  ;;  %v9150_v50 = vmax.f32 %v7903_v4, 0.0 }
 0x6b5   :  { %1662 = vmatprep.mubr.bf16.mxu1 %v9121_v17  ;;  %6365 = vmatprep.subr.bf16.mxu0 %v8100_v45 }
 0x6bc   :  { %1663 = vmatmul.mubr.bf16.gmra.mxu1 %v7309_v35 }
 0x6bd   :  { %1672 = vmatprep.mubr.bf16.mxu1 %v9121_v17 }
 0x6c4   :  { %1673 = vmatmul.mubr.bf16.gmra.mxu1 %v7310_v7 }
 0x6c5   :  { %1682 = vmatprep.mubr.bf16.mxu1 %v9121_v17 }
 0x6cc   :  { %1683 = vmatmul.mubr.bf16.gmra.mxu1 %v7311_v58 }
 0x6cd   :  { %1692 = vmatprep.mubr.bf16.mxu1 %v9121_v17 }
 0x6d4   :  { %1693 = vmatmul.mubr.bf16.gmra.mxu1 %v7312_v37 }
 0x6d5   :  { %1702 = vmatprep.mubr.bf16.mxu1 %v9121_v17 }
 0x6dc   :  { %1703 = vmatmul.mubr.bf16.gmra.mxu1 %v7313_v23 }
 0x6dd   :  { %1712 = vmatprep.mubr.bf16.mxu1 %v9121_v17 }
 0x6e4   :  { %1713 = vmatmul.mubr.bf16.gmra.mxu1 %v7314_v44 }
 0x6e5   :  { %1722 = vmatprep.mubr.bf16.mxu1 %v9121_v17 }
 0x6ec   :  { %1723 = vmatmul.mubr.bf16.gmra.mxu1 %v7315_v26 }
 0x6ed   :  { %6413 = vmatprep.mubr.bf16.mxu1 %v7316_v27 }
 0x774   :  { %v1654_v63 = vpop.f32.mrf.mxu1 }
 0x775   :  { %vm1733_vm0 = vcmp.eq.f32.partialorder %v1654_v63, 0.0 }
 0x776   :  { %v5721_v42 = vsel %vm1733_vm0, 1.0, %v9119_v46  ;;  %v1656_v55 = vpop.f32.mrf.mxu1 }
 0x777   :  { %v1781_v25 = vadd.f32 %v5721_v42, %v1654_v63 }
 0x778   :  { %v1658_v48 = vpop.f32.mrf.mxu1 }
 0x779   :  { %6981 = vrcp.f32 %v1781_v25  ;;  %vm1734_vm1 = vcmp.eq.f32.partialorder %v1658_v48, 0.0 }
 0x77a   :  { %v5722_v57 = vsel %vm1734_vm1, 1.0, %v9119_v46  ;;  %v1660_v24 = vpop.f32.mrf.mxu1 }
 0x77b   :  { %v1782_v21 = vadd.f32 %v5722_v57, %v1658_v48 }
 0x77c   :  { %v1664_v19 = vpop.f32.mrf.mxu1 }
 0x77d   :  { %6983 = vrcp.f32 %v1782_v21  ;;  %vm1735_vm2 = vcmp.eq.f32.partialorder %v1664_v19, 0.0 }
 0x77e   :  { %v5723_v47 = vsel %vm1735_vm2, 1.0, %v9119_v46  ;;  %v1666_v56 = vpop.f32.mrf.mxu1 }
 0x77f   :  { %v1783_v52 = vadd.f32 %v5723_v47, %v1664_v19 }
 0x780   :  { %v1668_v39 = vpop.f32.mrf.mxu1 }
 0x781   :  { %6985 = vrcp.f32 %v1783_v52  ;;  %vm1736_vm3 = vcmp.eq.f32.partialorder %v1668_v39, 0.0  ;;  %v6815_v52 = vld [vmem:[#allocation12 + $0x68] sm:$0xff]  }
 0x782   :  { %v5724_v0 = vsel %vm1736_vm3, 1.0, %v9119_v46  ;;  %v1670_v38 = vpop.f32.mrf.mxu1 }
 0x783   :  { %v1784_v40 = vadd.f32 %v5724_v0, %v1668_v39  ;;  %v9151_v0 = vmax.f32 %v7909_v9, 0.0 }
 0x784   :  { %v1674_v61 = vpop.f32.mrf.mxu1 }
 0x785   :  { %6987 = vrcp.f32 %v1784_v40  ;;  %vm1737_vm4 = vcmp.eq.f32.partialorder %v1674_v61, 0.0  ;;  %v9152_v40 = vmax.f32 %v7913_v5, 0.0 }
 0x786   :  { %v6982_v43 = vpop.eup %6981  ;;  %v5725_v41 = vsel %vm1737_vm4, 1.0, %v9119_v46  ;;  %v1676_v22 = vpop.f32.mrf.mxu1 }
 0x787   :  { %v1785_v8 = vadd.f32 %v5725_v41, %v1674_v61  ;;  %v1813_v36 = vmul.f32 %v6982_v43, %v1656_v55 }
 0x788   :  { %v1678_v33 = vpop.f32.mrf.mxu1 }
 0x789   :  { %6989 = vrcp.f32 %v1785_v8  ;;  %vm1738_vm5 = vcmp.eq.f32.partialorder %v1678_v33, 0.0  ;;  %v1829_v37 = vadd.f32 %v1813_v36, %v1324_v31 }
 0x78a   :  { %v6984_v2 = vpop.eup %6983  ;;  %v5726_v1 = vsel %vm1738_vm5, 1.0, %v9119_v46  ;;  %v1680_v29 = vpop.f32.mrf.mxu1 }
 0x78b   :  { %v1814_v35 = vmul.f32 %v6984_v2, %v1660_v24  ;;  %v1786_v7 = vadd.f32 %v5726_v1, %v1678_v33  ;;  %v6814_v24 = vld [vmem:[#allocation12 + $0x70] sm:$0xff]   ;;  %v6816_v33 = vld [vmem:[#allocation12 + $0x60] sm:$0xff]  }
 0x78c   :  { %v1684_v58 = vpop.f32.mrf.mxu1 }
 0x78d   :  { %v1830_v23 = vadd.f32 %v1814_v35, %v1325_v30  ;;  %6991 = vrcp.f32 %v1786_v7  ;;  %vm1739_vm6 = vcmp.eq.f32.partialorder %v1684_v58, 0.0  ;;  %v6817_v7 = vld [vmem:[#allocation12 + $0x58] sm:$0xff]  }
 0x78e   :  { %v6986_v44 = vpop.eup %6985  ;;  %v5727_v26 = vsel %vm1739_vm6, 1.0, %v9119_v46  ;;  %v1686_v27 = vpop.f32.mrf.mxu1 }
 0x78f   :  { %v1787_v51 = vadd.f32 %v5727_v26, %v1684_v58  ;;  %v1845_v34 = vpack.c.bf16 %v1830_v23, %v1829_v37  ;;  %v1815_v28 = vmul.f32 %v6986_v44, %v1666_v56  ;;  %v9153_v37 = vmax.f32 %v7907_v6, 0.0 }
 0x790   :  { %v1688_v53 = vpop.f32.mrf.mxu1  ;;  %v9154_v44 = vmax.f32 %v7911_v10, 0.0 }
 0x791   :  { %6993 = vrcp.f32 %v1787_v51  ;;  %vm1740_vm7 = vcmp.eq.f32.partialorder %v1688_v53, 0.0  ;;  %6349 = vmatprep.mubr.bf16.mxu0 %v1845_v34  ;;  %v1831_v49 = vadd.f32 %v1815_v28, %v1326_v54 }
 0x792   :  { %v6988_v32 = vpop.eup %6987  ;;  %v5728_v59 = vsel %vm1740_vm7, 1.0, %v9119_v46  ;;  %v1690_v31 = vpop.f32.mrf.mxu1 }
 0x793   :  { %v1816_v20 = vmul.f32 %v6988_v32, %v1670_v38  ;;  %v1788_v62 = vadd.f32 %v5728_v59, %v1688_v53 }
 0x794   :  { %v1694_v30 = vpop.f32.mrf.mxu1 }
 0x795   :  { %v1832_v63 = vadd.f32 %v1816_v20, %v9150_v50  ;;  %6995 = vrcp.f32 %v1788_v62  ;;  %vm1741_vm8 = vcmp.eq.f32.partialorder %v1694_v30, 0.0 }
 0x796   :  { %v6990_v42 = vpop.eup %6989  ;;  %v5729_v55 = vsel %vm1741_vm8, 1.0, %v9119_v46  ;;  %v1696_v25 = vpop.f32.mrf.mxu1 }
 0x797   :  { %v1846_v48 = vpack.c.bf16 %v1832_v63, %v1831_v49  ;;  %v1789_v57 = vadd.f32 %v5729_v55, %v1694_v30  ;;  %v1817_v19 = vmul.f32 %v6990_v42, %v1676_v22  ;;  %v9155_v49 = vmax.f32 %v7917_v11, 0.0 }
 0x798   :  { %v1698_v21 = vpop.f32.mrf.mxu1  ;;  %v9156_v63 = vmax.f32 %v7921_v15, 0.0  ;;  %v9157_v15 = vmax.f32 %v7915_v3, 0.0 }
 0x799   :  { %6997 = vrcp.f32 %v1789_v57  ;;  %vm1742_vm9 = vcmp.eq.f32.partialorder %v1698_v21, 0.0  ;;  %6350 = vmatmul.mubr.bf16.vlgmr.msra.gmra.mxu0 %v1846_v48  ;;  %v1833_v38 = vadd.f32 %v1817_v19, %v9151_v0 }
 0x79a   :  { %v6992_v47 = vpop.eup %6991  ;;  %v5730_v60 = vsel %vm1742_vm9, 1.0, %v9119_v46  ;;  %v1700_v54 = vpop.f32.mrf.mxu1  ;;  %6366 = vmatpush3.bf16.msra.mxu0 %v8100_v45 }
 0x79b   :  { %v1818_v4 = vmul.f32 %v6992_v47, %v1680_v29  ;;  %v1790_v56 = vadd.f32 %v5730_v60, %v1698_v21  ;;  %6367 = vmatprep.subr.bf16.mxu0 %v6814_v24 }
 0x79c   :  { %v1704_v39 = vpop.f32.mrf.mxu1 }
 0x79d   :  { %v1834_v61 = vadd.f32 %v1818_v4, %v9152_v40  ;;  %6999 = vrcp.f32 %v1790_v56  ;;  %vm1743_vm10 = vcmp.eq.f32.partialorder %v1704_v39, 0.0  ;;  %v9158_v56 = vmax.f32 %v7919_v12, 0.0 }
 0x79e   :  { %v6994_v43 = vpop.eup %6993  ;;  %v5731_v41 = vsel %vm1743_vm10, 1.0, %v9119_v46  ;;  %v1706_v22 = vpop.f32.mrf.mxu1  ;;  %6368 = vmatpush3.bf16.msra.mxu0 %v6814_v24 }
 0x79f   :  { %v1791_v8 = vadd.f32 %v5731_v41, %v1704_v39  ;;  %v1847_v45 = vpack.c.bf16 %v1834_v61, %v1833_v38  ;;  %6369 = vmatprep.subr.bf16.mxu0 %v6815_v52  ;;  %v1819_v2 = vmul.f32 %v6994_v43, %v1686_v27  ;;  %v9159_v43 = vmax.f32 %v7925_v13, 0.0  ;;  %v6818_v13 = vld [vmem:[#allocation12 + $0x50] sm:$0xff]  }
 0x7a0   :  { %v1708_v36 = vpop.f32.mrf.mxu1 }
 0x7a1   :  { %7001 = vrcp.f32 %v1791_v8  ;;  %vm1744_vm11 = vcmp.eq.f32.partialorder %v1708_v36, 0.0  ;;  %6353 = vmatprep.mubr.bf16.mxu0 %v1847_v45  ;;  %v1835_v23 = vadd.f32 %v1819_v2, %v9153_v37 }
 0x7a2   :  { %v6996_v9 = vpop.eup %6995  ;;  %v5732_v5 = vsel %vm1744_vm11, 1.0, %v9119_v46  ;;  %v1710_v1 = vpop.f32.mrf.mxu1  ;;  %6370 = vmatpush3.bf16.msra.mxu0 %v6815_v52 }
 0x7a3   :  { %v1820_v29 = vmul.f32 %v6996_v9, %v1690_v31  ;;  %v1792_v35 = vadd.f32 %v5732_v5, %v1708_v36  ;;  %6371 = vmatprep.subr.bf16.mxu0 %v6816_v33  ;;  %v9161_v9 = vmax.f32 %v7923_v16, 0.0 }
 0x7a4   :  { %v1714_v58 = vpop.f32.mrf.mxu1 }
 0x7a5   :  { %v1836_v26 = vadd.f32 %v1820_v29, %v9154_v44  ;;  %7003 = vrcp.f32 %v1792_v35  ;;  %vm1745_vm12 = vcmp.eq.f32.partialorder %v1714_v58, 0.0 }
 0x7a6   :  { %v6998_v27 = vpop.eup %6997  ;;  %v5733_v51 = vsel %vm1745_vm12, 1.0, %v9119_v46  ;;  %v1716_v34 = vpop.f32.mrf.mxu1  ;;  %6372 = vmatpush3.bf16.msra.mxu0 %v6816_v33 }
 0x7a7   :  { %v1793_v53 = vadd.f32 %v5733_v51, %v1714_v58  ;;  %v1848_v28 = vpack.c.bf16 %v1836_v26, %v1835_v23  ;;  %6373 = vmatprep.subr.bf16.mxu0 %v6817_v7  ;;  %v1821_v59 = vmul.f32 %v6998_v27, %v1696_v25 }
 0x7a8   :  { %v1718_v32 = vpop.f32.mrf.mxu1 }
 0x7a9   :  { %7005 = vrcp.f32 %v1793_v53  ;;  %vm1746_vm13 = vcmp.eq.f32.partialorder %v1718_v32, 0.0  ;;  %6354 = vmatmul.mubr.bf16.gmra.mxu0 %v1848_v28  ;;  %v1837_v50 = vadd.f32 %v1821_v59, %v9155_v49 }
 0x7aa   :  { %v7000_v6 = vpop.eup %6999  ;;  %v5734_v31 = vsel %vm1746_vm13, 1.0, %v9119_v46  ;;  %v1720_v10 = vpop.f32.mrf.mxu1  ;;  %6374 = vmatpush3.bf16.msra.mxu0 %v6817_v7  ;;  %v6820_v7 = vld [vmem:[#allocation12 + $0x40] sm:$0xff]  }
 0x7ab   :  { %v1822_v20 = vmul.f32 %v7000_v6, %v1700_v54  ;;  %v1794_v62 = vadd.f32 %v5734_v31, %v1718_v32  ;;  %6375 = vmatprep.subr.bf16.mxu0 %v6818_v13 }
 0x7ac   :  { %v1724_v30 = vpop.f32.mrf.mxu1 }
 0x7ad   :  { %v1838_v42 = vadd.f32 %v1822_v20, %v9156_v63  ;;  %7007 = vrcp.f32 %v1794_v62  ;;  %vm1747_vm14 = vcmp.eq.f32.partialorder %v1724_v30, 0.0 }
 0x7ae   :  { %v7002_v55 = vpop.eup %7001  ;;  %v5735_v25 = vsel %vm1747_vm14, 1.0, %v9119_v46  ;;  %v1726_v48 = vpop.f32.mrf.mxu1  ;;  %6376 = vmatpush3.bf16.msra.mxu0 %v6818_v13 }
 0x7af   :  { %v1795_v57 = vadd.f32 %v5735_v25, %v1724_v30  ;;  %v1849_v24 = vpack.c.bf16 %v1838_v42, %v1837_v50  ;;  %v1823_v19 = vmul.f32 %v7002_v55, %v1706_v22  ;;  %v9160_v22 = vmax.f32 %v7931_v18, 0.0  ;;  %v6819_v18 = vld [vmem:[#allocation12 + $0x48] sm:$0xff]  }
 0x7b0   :  { %v1728_v21 = vpop.f32.mrf.mxu1  ;;  %6377 = vmatprep.subr.bf16.mxu0 %v6819_v18 }
 0x7b1   :  { %7009 = vrcp.f32 %v1795_v57  ;;  %vm1748_vm15 = vcmp.eq.f32.partialorder %v1728_v21, 0.0  ;;  %6357 = vmatprep.mubr.bf16.mxu0 %v1849_v24  ;;  %v1839_v4 = vadd.f32 %v1823_v19, %v9157_v15 }
 0x7b2   :  { %v7004_v47 = vpop.eup %7003  ;;  %v5736_v11 = vsel %vm1748_vm15, 1.0, %v9119_v46  ;;  %v1730_v12 = vpop.f32.mrf.mxu1  ;;  %6378 = vmatpush3.bf16.msra.mxu0 %v6819_v18 }
 0x7b3   :  { %v1824_v60 = vmul.f32 %v7004_v47, %v1710_v1  ;;  %v1796_v54 = vadd.f32 %v5736_v11, %v1728_v21  ;;  %v9162_v1 = vmax.f32 %v7927_v14, 0.0  ;;  %6379 = vmatprep.subr.bf16.mxu0 %v6820_v7 }
 0x7b5   :  { %v1840_v52 = vadd.f32 %v1824_v60, %v9158_v56  ;;  %7011 = vrcp.f32 %v1796_v54 }
 0x7b6   :  { %v7006_v39 = vpop.eup %7005  ;;  %6380 = vmatpush3.bf16.msra.mxu0 %v6820_v7 }
 0x7b7   :  { %v1850_v0 = vpack.c.bf16 %v1840_v52, %v1839_v4  ;;  %v1825_v38 = vmul.f32 %v7006_v39, %v1716_v34 }
 0x7b9   :  { %6358 = vmatmul.mubr.bf16.gmra.mxu0 %v1850_v0  ;;  %v1841_v41 = vadd.f32 %v1825_v38, %v9159_v43 }
 0x7ba   :  { %v7008_v40 = vpop.eup %7007 }
 0x7bb   :  { %v1826_v61 = vmul.f32 %v7008_v40, %v1720_v10 }
 0x7bd   :  { %v1842_v8 = vadd.f32 %v1826_v61, %v9160_v22 }
 0x7be   :  { %v7010_v45 = vpop.eup %7009 }
 0x7bf   :  { %v1851_v33 = vpack.c.bf16 %v1842_v8, %v1841_v41  ;;  %v1827_v3 = vmul.f32 %v7010_v45, %v1726_v48 }
 0x7c1   :  { %6361 = vmatprep.mubr.bf16.mxu0 %v1851_v33  ;;  %v1843_v5 = vadd.f32 %v1827_v3, %v9161_v9 }
 0x7c2   :  { %v7012_v36 = vpop.eup %7011 }
 0x7c3   :  { %v1828_v2 = vmul.f32 %v7012_v36, %v1730_v12 }
 0x7c5   :  { %v1844_v29 = vadd.f32 %v1828_v2, %v9162_v1 }
 0x7c7   :  { %v1852_v35 = vpack.c.bf16 %v1844_v29, %v1843_v5 }
 0x7c9   :  { %6362 = vmatmul.mubr.bf16.gmra.mxu0 %v1852_v35 }
 0x859   :  { %v6351_v58 = vpop.f32.mrf.mxu0 }
 0x85a   :  { %v2017_v14 = vmax.f32 %v6351_v58, 0.0 }
 0x85b   :  { %v1952_v37 = vpop.f32.mrf.mxu0 }
 0x85c   :  { %v2015_v26 = vmax.f32 %v1952_v37, 0.0 }
 0x85d   :  { %v6352_v23 = vpop.f32.mrf.mxu0 }
 0x85e   :  { %v2018_v44 = vmax.f32 %v6352_v23, 0.0 }
 0x85f   :  { %v1955_v16 = vpop.f32.mrf.mxu0 }
 0x860   :  { %v2016_v27 = vmax.f32 %v1955_v16, 0.0  ;;  %v2032_v34 = vpack.c.bf16 %v2018_v44, %v2017_v14 }
 0x862   :  { %v2031_v51 = vpack.c.bf16 %v2016_v27, %v2015_v26 }
 0x864   :  { %6381 = vmatprep.mubr.bf16.mxu0 %v2031_v51 }
 0x865   :  { %6382 = vmatmul.mubr.bf16.vlgmr.msra.gmra.mxu0 %v2032_v34 }
 0x869   :  { %v6355_v53 = vpop.f32.mrf.mxu0 }
 0x86a   :  { %v2021_v20 = vmax.f32 %v6355_v53, 0.0 }
 0x86b   :  { %v1968_v28 = vpop.f32.mrf.mxu0 }
 0x86c   :  { %v2019_v31 = vmax.f32 %v1968_v28, 0.0 }
 0x86d   :  { %v6356_v32 = vpop.f32.mrf.mxu0 }
 0x86e   :  { %v2022_v59 = vmax.f32 %v6356_v32, 0.0 }
 0x86f   :  { %v1971_v6 = vpop.f32.mrf.mxu0 }
 0x870   :  { %v2020_v10 = vmax.f32 %v1971_v6, 0.0  ;;  %v2034_v30 = vpack.c.bf16 %v2022_v59, %v2021_v20 }
 0x872   :  { %v2033_v62 = vpack.c.bf16 %v2020_v10, %v2019_v31 }
 0x874   :  { %6385 = vmatprep.mubr.bf16.mxu0 %v2033_v62  ;;  %v7317_v62 = vld [vmem:[#allocation8 + $0x8] sm:$0xff]  }
 0x875   :  { %6386 = vmatmul.mubr.bf16.gmra.mxu0 %v2034_v30  ;;  %v7318_v30 = vld [vmem:[#allocation8 + $0x10] sm:$0xff]  }
 0x879   :  { %v6359_v49 = vpop.f32.mrf.mxu0 }
 0x87a   :  { %v2025_v57 = vmax.f32 %v6359_v49, 0.0  ;;  %v7319_v49 = vld [vmem:[#allocation8 + $0x18] sm:$0xff]  }
 0x87b   :  { %v1984_v50 = vpop.f32.mrf.mxu0 }
 0x87c   :  { %v2023_v25 = vmax.f32 %v1984_v50, 0.0  ;;  %v7320_v50 = vld [vmem:[#allocation8 + $0x20] sm:$0xff]  }
 0x87d   :  { %v6360_v63 = vpop.f32.mrf.mxu0 }
 0x87e   :  { %v2026_v42 = vmax.f32 %v6360_v63, 0.0  ;;  %v7321_v63 = vld [vmem:[#allocation8 + $0x28] sm:$0xff]  }
 0x87f   :  { %v1987_v55 = vpop.f32.mrf.mxu0 }
 0x880   :  { %v2024_v48 = vmax.f32 %v1987_v55, 0.0  ;;  %v2036_v21 = vpack.c.bf16 %v2026_v42, %v2025_v57  ;;  %v7322_v42 = vld [vmem:[#allocation8 + $0x30] sm:$0xff]   ;;  %v7323_v55 = vld [vmem:[#allocation8 + $0x38] sm:$0xff]  }
 0x882   :  { %v2035_v24 = vpack.c.bf16 %v2024_v48, %v2023_v25 }
 0x884   :  { %6389 = vmatprep.mubr.bf16.mxu0 %v2035_v24 }
 0x885   :  { %6390 = vmatmul.mubr.bf16.gmra.mxu0 %v2036_v21 }
 0x889   :  { %v6363_v19 = vpop.f32.mrf.mxu0 }
 0x88a   :  { %v2029_v56 = vmax.f32 %v6363_v19, 0.0 }
 0x88b   :  { %v2000_v47 = vpop.f32.mrf.mxu0 }
 0x88c   :  { %v2027_v15 = vmax.f32 %v2000_v47, 0.0 }
 0x88d   :  { %v6364_v11 = vpop.f32.mrf.mxu0 }
 0x88e   :  { %v2030_v60 = vmax.f32 %v6364_v11, 0.0 }
 0x88f   :  { %v2003_v54 = vpop.f32.mrf.mxu0 }
 0x890   :  { %v2028_v4 = vmax.f32 %v2003_v54, 0.0  ;;  %v2038_v39 = vpack.c.bf16 %v2030_v60, %v2029_v56 }
 0x892   :  { %v2037_v52 = vpack.c.bf16 %v2028_v4, %v2027_v15 }
 0x894   :  { %6393 = vmatprep.mubr.bf16.mxu0 %v2037_v52 }
 0x895   :  { %6394 = vmatmul.mubr.bf16.gmra.mxu0 %v2038_v39 }
 0x896   :  { %2630 = vmatprep.mubr.bf16.mxu0 %v9121_v17 }
 0x925   :  { %v6383_v0 = vpop.f32.mrf.mxu0 }
 0x926   :  { %v8191_v59 = vmax.f32 %v6383_v0, 0.0 }
 0x927   :  { %v2138_v38 = vpop.f32.mrf.mxu0 }
 0x928   :  { %v8197_v10 = vmax.f32 %v2138_v38, 0.0 }
 0x929   :  { %v6384_v40 = vpop.f32.mrf.mxu0 }
 0x92a   :  { %v8187_v28 = vmax.f32 %v6384_v40, 0.0 }
 0x92b   :  { %v2141_v61 = vpop.f32.mrf.mxu0 }
 0x92c   :  { %v8193_v6 = vmax.f32 %v2141_v61, 0.0  ;;  %v2218_v31 = vpack.c.bf16 %v8187_v28, %v8191_v59 }
 0x92e   :  { %v2217_v20 = vpack.c.bf16 %v8193_v6, %v8197_v10 }
 0x935   :  { %v6387_v43 = vpop.f32.mrf.mxu0 }
 0x936   :  { %v8179_v14 = vmax.f32 %v6387_v43, 0.0 }
 0x937   :  { %v2154_v41 = vpop.f32.mrf.mxu0 }
 0x938   :  { %v8185_v53 = vmax.f32 %v2154_v41, 0.0 }
 0x939   :  { %v6388_v22 = vpop.f32.mrf.mxu0 }
 0x93a   :  { %v8175_v26 = vmax.f32 %v6388_v22, 0.0 }
 0x93b   :  { %v2157_v8 = vpop.f32.mrf.mxu0 }
 0x93c   :  { %v8181_v51 = vmax.f32 %v2157_v8, 0.0  ;;  %v2220_v34 = vpack.c.bf16 %v8175_v26, %v8179_v14 }
 0x93e   :  { %v2219_v32 = vpack.c.bf16 %v8181_v51, %v8185_v53 }
 0x945   :  { %v6391_v45 = vpop.f32.mrf.mxu0 }
 0x946   :  { %v8167_v37 = vmax.f32 %v6391_v45, 0.0 }
 0x947   :  { %v2170_v33 = vpop.f32.mrf.mxu0 }
 0x948   :  { %9168 = vst [vmem:[#allocation31_spill] sm:$0xff] %v8167_v37  ;;  %v8173_v16 = vmax.f32 %v2170_v33, 0.0 }
 0x949   :  { %v6392_v3 = vpop.f32.mrf.mxu0 }
 0x94a   :  { %v8163_v7 = vmax.f32 %v6392_v3, 0.0 }
 0x94b   :  { %v2173_v36 = vpop.f32.mrf.mxu0 }
 0x94c   :  { %9167 = vst [vmem:[#allocation30_spill] sm:$0xff] %v8163_v7  ;;  %v8169_v23 = vmax.f32 %v2173_v36, 0.0  ;;  %v2222_v44 = vpack.c.bf16 %v8163_v7, %v8167_v37 }
 0x94e   :  { %9169 = vst [vmem:[#allocation32_spill] sm:$0xff] %v8169_v23  ;;  %v2221_v27 = vpack.c.bf16 %v8169_v23, %v8173_v16 }
 0x955   :  { %v6395_v12 = vpop.f32.mrf.mxu0 }
 0x956   :  { %v8153_v5 = vmax.f32 %v6395_v12, 0.0 }
 0x957   :  { %v2186_v2 = vpop.f32.mrf.mxu0 }
 0x958   :  { %9163 = vst [vmem:[#allocation26_spill] sm:$0xff] %v8153_v5  ;;  %v8157_v35 = vmax.f32 %v2186_v2, 0.0 }
 0x959   :  { %v6396_v9 = vpop.f32.mrf.mxu0 }
 0x95a   :  { %v8155_v1 = vmax.f32 %v6396_v9, 0.0  ;;  %9165 = vst [vmem:[#allocation28_spill] sm:$0xff] %v8157_v35 }
 0x95b   :  { %v2189_v29 = vpop.f32.mrf.mxu0 }
 0x95c   :  { %9164 = vst [vmem:[#allocation27_spill] sm:$0xff] %v8155_v1  ;;  %v8159_v13 = vmax.f32 %v2189_v29, 0.0  ;;  %v2224_v18 = vpack.c.bf16 %v8155_v1, %v8153_v5 }
 0x95e   :  { %9166 = vst [vmem:[#allocation29_spill] sm:$0xff] %v8159_v13  ;;  %6397 = vmatprep.subr.bf16.mxu1 %v2224_v18  ;;  %v2223_v58 = vpack.c.bf16 %v8159_v13, %v8157_v35 }
 0x95f   :  { %6398 = vmatpush3.bf16.msra.mxu1 %v2224_v18 }
 0x960   :  { %6399 = vmatprep.subr.bf16.mxu1 %v2223_v58 }
 0x963   :  { %6400 = vmatpush3.bf16.msra.mxu1 %v2223_v58 }
 0x964   :  { %6401 = vmatprep.subr.bf16.mxu1 %v2222_v44 }
 0x967   :  { %6402 = vmatpush3.bf16.msra.mxu1 %v2222_v44 }
 0x968   :  { %6403 = vmatprep.subr.bf16.mxu1 %v2221_v27 }
 0x96b   :  { %6404 = vmatpush3.bf16.msra.mxu1 %v2221_v27 }
 0x96c   :  { %6405 = vmatprep.subr.bf16.mxu1 %v2220_v34 }
 0x96f   :  { %6406 = vmatpush3.bf16.msra.mxu1 %v2220_v34 }
 0x970   :  { %6407 = vmatprep.subr.bf16.mxu1 %v2219_v32 }
 0x973   :  { %6408 = vmatpush3.bf16.msra.mxu1 %v2219_v32 }
 0x974   :  { %6409 = vmatprep.subr.bf16.mxu1 %v2218_v31 }
 0x977   :  { %6410 = vmatpush3.bf16.msra.mxu1 %v2218_v31 }
 0x978   :  { %6411 = vmatprep.subr.bf16.mxu1 %v2217_v20 }
 0x97b   :  { %6412 = vmatpush3.bf16.msra.mxu1 %v2217_v20 }
 0x97e   :  { %6414 = vmatmul.mubr.bf16.vlgmr.msra.gmra.mxu1 %v7317_v62 }
 0x97f   :  { %6417 = vmatprep.mubr.bf16.mxu1 %v7318_v30 }
 0x986   :  { %6418 = vmatmul.mubr.bf16.gmra.mxu1 %v7319_v49 }
 0x987   :  { %6421 = vmatprep.mubr.bf16.mxu1 %v7320_v50 }
 0x98e   :  { %6422 = vmatmul.mubr.bf16.gmra.mxu1 %v7321_v63 }
 0x98f   :  { %6425 = vmatprep.mubr.bf16.mxu1 %v7322_v42 }
 0x996   :  { %6426 = vmatmul.mubr.bf16.gmra.mxu1 %v7323_v55 }
 0x997   :  { %2743 = vmatprep.mubr.bf16.mxu1 %v9121_v17 }
 0xa3e   :  { %v6415_v25 = vpop.f32.mrf.mxu1 }
 0xa3f   :  { %v2324_v52 = vmax.f32 %v6415_v25, 0.0 }
 0xa40   :  { %v2259_v48 = vpop.f32.mrf.mxu1 }
 0xa41   :  { %v2322_v0 = vmax.f32 %v2259_v48, 0.0  ;;  %v8204_v3 = vadd.f32 1e-07, %v2324_v52 }
 0xa42   :  { %v6416_v57 = vpop.f32.mrf.mxu1 }
 0xa43   :  { %v2325_v38 = vmax.f32 %v6416_v57, 0.0  ;;  %v8208_v9 = vadd.f32 1e-07, %v2322_v0 }
 0xa44   :  { %v2262_v24 = vpop.f32.mrf.mxu1 }
 0xa45   :  { %v2323_v43 = vmax.f32 %v2262_v24, 0.0  ;;  %v8210_v29 = vadd.f32 1e-07, %v2325_v38 }
 0xa46   :  { %v6419_v21 = vpop.f32.mrf.mxu1 }
 0xa47   :  { %v2328_v4 = vmax.f32 %v6419_v21, 0.0  ;;  %v8214_v44 = vadd.f32 1e-07, %v2323_v43 }
 0xa48   :  { %v2275_v19 = vpop.f32.mrf.mxu1 }
 0xa49   :  { %v2326_v39 = vmax.f32 %v2275_v19, 0.0  ;;  %v8202_v22 = vadd.f32 1e-07, %v2328_v4 }
 0xa4a   :  { %v6420_v47 = vpop.f32.mrf.mxu1 }
 0xa4b   :  { %v2329_v40 = vmax.f32 %v6420_v47, 0.0  ;;  %v8206_v36 = vadd.f32 1e-07, %v2326_v39  ;;  %v2356_v31 = vmax.f32 %v8204_v3, %v8202_v22  ;;  %v2377_v50 = vmin.f32 %v8204_v3, %v8202_v22 }
 0xa4c   :  { %v2278_v11 = vpop.f32.mrf.mxu1 }
 0xa4d   :  { %v2327_v41 = vmax.f32 %v2278_v11, 0.0  ;;  %v8212_v18 = vadd.f32 1e-07, %v2329_v40  ;;  %v2354_v63 = vmax.f32 %v8208_v9, %v8206_v36  ;;  %v2375_v21 = vmin.f32 %v8208_v9, %v8206_v36 }
 0xa4e   :  { %v6423_v60 = vpop.f32.mrf.mxu1 }
 0xa4f   :  { %v2332_v8 = vmax.f32 %v6423_v60, 0.0  ;;  %v8216_v27 = vadd.f32 1e-07, %v2327_v41  ;;  %v2357_v25 = vmax.f32 %v8210_v29, %v8212_v18  ;;  %v2378_v48 = vmin.f32 %v8210_v29, %v8212_v18 }
 0xa50   :  { %v2291_v54 = vpop.f32.mrf.mxu1 }
 0xa51   :  { %v2330_v12 = vmax.f32 %v2291_v54, 0.0  ;;  %v8220_v20 = vadd.f32 1e-07, %v2332_v8  ;;  %v2355_v19 = vmax.f32 %v8214_v44, %v8216_v27  ;;  %v2376_v47 = vmin.f32 %v8214_v44, %v8216_v27 }
 0xa52   :  { %v6424_v15 = vpop.f32.mrf.mxu1 }
 0xa53   :  { %v2333_v45 = vmax.f32 %v6424_v15, 0.0  ;;  %v8228_v42 = vadd.f32 1e-07, %v2330_v12  ;;  %v2360_v60 = vmax.f32 %v2356_v31, %v8220_v20 }
 0xa54   :  { %v2294_v56 = vpop.f32.mrf.mxu1 }
 0xa55   :  { %v2331_v2 = vmax.f32 %v2294_v56, 0.0  ;;  %v8222_v62 = vadd.f32 1e-07, %v2333_v45  ;;  %v2381_v56 = vmin.f32 %v2377_v50, %v8220_v20  ;;  %v2358_v52 = vmax.f32 %v2354_v63, %v8228_v42 }
 0xa56   :  { %v6427_v61 = vpop.f32.mrf.mxu1  ;;  %v2379_v39 = vmin.f32 %v2375_v21, %v8228_v42 }
 0xa57   :  { %v2336_v34 = vmax.f32 %v6427_v61, 0.0  ;;  %v8230_v55 = vadd.f32 1e-07, %v2331_v2  ;;  %v2361_v54 = vmax.f32 %v2357_v25, %v8222_v62  ;;  %v2382_v15 = vmin.f32 %v2378_v48, %v8222_v62 }
 0xa58   :  { %v2307_v33 = vpop.f32.mrf.mxu1 }
 0xa59   :  { %v2334_v30 = vmax.f32 %v2307_v33, 0.0  ;;  %v8244_v11 = vadd.f32 1e-07, %v2336_v34  ;;  %v2359_v0 = vmax.f32 %v2355_v19, %v8230_v55  ;;  %v2380_v38 = vmin.f32 %v2376_v47, %v8230_v55 }
 0xa5a   :  { %v6428_v58 = vpop.f32.mrf.mxu1  ;;  %v8266_v19 = vstv %s5753_s11  ;;  %v8268_v47 = vstv %s5754_s13 }
 0xa5b   :  { %v2337_v32 = vmax.f32 %v6428_v58, 0.0  ;;  %v8249_v4 = vadd.f32 1e-07, %v2334_v30  ;;  %v2364_v41 = vmax.f32 %v2360_v60, %v8244_v11  ;;  %v2385_v8 = vmin.f32 %v2381_v56, %v8244_v11 }
 0xa5c   :  { %v2310_v49 = vpop.f32.mrf.mxu1  ;;  %v2407_v37 = vmul.f32 %v8266_v19, %v8228_v42 }
 0xa5d   :  { %v8236_v57 = vadd.f32 1e-07, %v2337_v32  ;;  %v2335_v24 = vmax.f32 %v2310_v49, 0.0  ;;  %v2362_v45 = vmax.f32 %v2358_v52, %v8249_v4  ;;  %v2383_v33 = vmin.f32 %v2379_v39, %v8249_v4 }
 0xa5e   :  { %v8276_v39 = vmul.f32 %v8268_v47, %v8204_v3 }
 0xa5f   :  { %v2365_v40 = vmax.f32 %v2361_v54, %v8236_v57  ;;  %v2386_v61 = vmin.f32 %v2382_v15, %v8236_v57  ;;  %v8258_v43 = vadd.f32 1e-07, %v2335_v24  ;;  %v8272_v15 = vmul.f32 %v8266_v19, %v8204_v3 }
 0xa61   :  { %v2363_v12 = vmax.f32 %v2359_v0, %v8258_v43  ;;  %v2384_v2 = vmin.f32 %v2380_v38, %v8258_v43  ;;  %v2367_v58 = vmax.f32 %v2364_v41, %v2365_v40  ;;  %v2388_v34 = vmin.f32 %v2385_v8, %v2386_v61 }
 0xa62   :  { %v8280_v0 = vmul.f32 %v8266_v19, %v8208_v9  ;;  %v8284_v38 = vmul.f32 %v8268_v47, %v8208_v9  ;;  %v8288_v40 = vmul.f32 %v8266_v19, %v8210_v29  ;;  %v8292_v61 = vmul.f32 %v8268_v47, %v8210_v29 }
 0xa63   :  { %v2366_v32 = vmax.f32 %v2362_v45, %v2363_v12  ;;  %v2387_v31 = vmin.f32 %v2383_v33, %v2384_v2  ;;  %v8296_v41 = vmul.f32 %v8266_v19, %v8214_v44  ;;  %v8300_v33 = vmul.f32 %v8268_v47, %v8214_v44 }
 0xa64   :  { %v8304_v12 = vmul.f32 %v8266_v19, %v8202_v22  ;;  %v8308_v2 = vmul.f32 %v8268_v47, %v8202_v22  ;;  %v2480_v46 = vmul.f32 %v8268_v47, %v8258_v43 }
 0xa65   :  { %v2368_v30 = vmax.f32 %v2366_v32, %v2367_v58  ;;  %v2389_v49 = vmin.f32 %v2387_v31, %v2388_v34  ;;  %v8312_v58 = vmul.f32 %v8266_v19, %v8206_v36 }
 0xa67   :  { %v2369_v50 = vrot.slane %v2368_v30, 4  ;;  %v2390_v63 = vrot.slane %v2389_v49, 4 }
 0xa69   :  { %v2370_v25 = vmax.f32 %v2368_v30, %v2369_v50  ;;  %v2391_v48 = vmin.f32 %v2389_v49, %v2390_v63  ;;  %v8320_v49 = vmul.f32 %v8268_v47, %v8206_v36  ;;  %v8324_v50 = vmul.f32 %v8266_v19, %v8212_v18 }
 0xa6a   :  { %v2413_v63 = vmul.f32 %v8266_v19, %v8244_v11 }
 0xa6b   :  { %v2371_v24 = vrot.slane %v2370_v25, 2  ;;  %v2392_v21 = vrot.slane %v2391_v48, 2 }
 0xa6d   :  { %v2372_v60 = vmax.f32 %v2370_v25, %v2371_v24  ;;  %v2393_v54 = vmin.f32 %v2391_v48, %v2392_v21  ;;  %v2481_v25 = vmul.f32 %v8268_v47, %v8244_v11  ;;  %v2414_v48 = vmul.f32 %v8266_v19, %v8236_v57 }
 0xa6e   :  { %v2482_v24 = vmul.f32 %v8268_v47, %v8236_v57 }
 0xa6f   :  { %v2373_v56 = vrot.slane %v2372_v60, 1  ;;  %v2394_v52 = vrot.slane %v2393_v54, 1 }
 0xa71   :  { %v2374_v8 = vmax.f32 %v2372_v60, %v2373_v56  ;;  %v2395_v45 = vmin.f32 %v2393_v54, %v2394_v52  ;;  %v8340_v54 = vmul.f32 %v8268_v47, %v8212_v18  ;;  %v2411_v56 = vmul.f32 %v8266_v19, %v8249_v4 }
 0xa72   :  { %v2479_v52 = vmul.f32 %v8268_v47, %v8249_v4 }
 0xa73   :  { %v2415_v34 = vmul.f32 %v8266_v19, %v2374_v8  ;;  %v2416_v32 = vmul.f32 %v8266_v19, %v2395_v45  ;;  %v2483_v31 = vmul.f32 %v8268_v47, %v2374_v8  ;;  %v2484_v30 = vmul.f32 %v8268_v47, %v2395_v45 }
 0xa74   :  { %v2412_v8 = vmul.f32 %v8266_v19, %v8258_v43 }
 0xa75   :  { %v8334_v21 = vmax.f32 %v2415_v34, %v2416_v32  ;;  %v8336_v60 = vmax.f32 %v2483_v31, %v2484_v30  ;;  %v2409_v30 = vmul.f32 %v8266_v19, %v8220_v20 }
 0xa77   :  { %v2432_v45 = vsub.f32 %v2413_v63, %v8334_v21  ;;  %v2433_v34 = vsub.f32 %v2414_v48, %v8334_v21  ;;  %v2500_v32 = vsub.f32 %v2481_v25, %v8336_v60  ;;  %v2501_v31 = vsub.f32 %v2482_v24, %v8336_v60 }
 0xa78   :  { %v2430_v17 = vsub.f32 %v2411_v56, %v8334_v21  ;;  %v2431_v1 = vsub.f32 %v2412_v8, %v8334_v21  ;;  %v2498_v63 = vsub.f32 %v2479_v52, %v8336_v60  ;;  %v2477_v25 = vmul.f32 %v8268_v47, %v8220_v20 }
 0xa79   :  { %v2462_v5 = vmul.f32 1.442695, %v2432_v45  ;;  %v2464_v13 = vmul.f32 1.442695, %v2433_v34  ;;  %v2530_v35 = vmul.f32 1.442695, %v2500_v32  ;;  %v2410_v48 = vmul.f32 %v8266_v19, %v8222_v62 }
 0xa7a   :  { %v2532_v24 = vmul.f32 1.442695, %v2501_v31  ;;  %v2499_v7 = vsub.f32 %v2480_v46, %v8336_v60  ;;  %v2458_v56 = vmul.f32 1.442695, %v2430_v17  ;;  %v2428_v8 = vsub.f32 %v2409_v30, %v8334_v21 }
 0xa7b   :  { %7013 = vpow2.f32 %v2462_v5  ;;  %v2478_v45 = vmul.f32 %v8268_v47, %v8222_v62  ;;  %v2460_v52 = vmul.f32 1.442695, %v2431_v1  ;;  %v2429_v34 = vsub.f32 %v2410_v48, %v8334_v21 }
 0xa7c   :  { %7015 = vpow2.f32 %v2464_v13  ;;  %v2475_v32 = vmul.f32 %v8268_v47, %v8228_v42  ;;  %v2526_v31 = vmul.f32 1.442695, %v2498_v63  ;;  %v2496_v46 = vsub.f32 %v2477_v25, %v8336_v60 }
 0xa7d   :  { %7017 = vpow2.f32 %v2530_v35  ;;  %v2408_v5 = vmul.f32 %v8266_v19, %v8230_v55  ;;  %v2528_v17 = vmul.f32 1.442695, %v2499_v7  ;;  %v2497_v30 = vsub.f32 %v2478_v45, %v8336_v60 }
 0xa7e   :  { %7019 = vpow2.f32 %v2532_v24  ;;  %v2476_v13 = vmul.f32 %v8268_v47, %v8230_v55  ;;  %v2454_v1 = vmul.f32 1.442695, %v2428_v8  ;;  %v2426_v48 = vsub.f32 %v2407_v37, %v8334_v21 }
 0xa7f   :  { %7021 = vpow2.f32 %v2458_v56  ;;  %v2404_v35 = vmul.f32 %v8266_v19, %v8216_v27  ;;  %v2456_v63 = vmul.f32 1.442695, %v2429_v34  ;;  %v2427_v25 = vsub.f32 %v2408_v5, %v8334_v21 }
 0xa80   :  { %7023 = vpow2.f32 %v2460_v52  ;;  %v2522_v23 = vmul.f32 1.442695, %v2496_v46  ;;  %v2494_v7 = vsub.f32 %v2475_v32, %v8336_v60  ;;  %v2495_v24 = vsub.f32 %v2476_v13, %v8336_v60 }
 0xa81   :  { %7025 = vpow2.f32 %v2526_v31  ;;  %v2524_v45 = vmul.f32 1.442695, %v2497_v30  ;;  %v2424_v56 = vsub.f32 %v8304_v12, %v8334_v21  ;;  %v2425_v37 = vsub.f32 %v8324_v50, %v8334_v21 }
 0xa82   :  { %7027 = vpow2.f32 %v2528_v17  ;;  %v2472_v19 = vmul.f32 %v8268_v47, %v8216_v27  ;;  %v2450_v8 = vmul.f32 1.442695, %v2426_v48  ;;  %v2492_v52 = vsub.f32 %v8308_v2, %v8336_v60 }
 0xa83   :  { %7029 = vpow2.f32 %v2454_v1  ;;  %v2452_v34 = vmul.f32 1.442695, %v2427_v25  ;;  %v2493_v32 = vsub.f32 %v8340_v54, %v8336_v60  ;;  %v2422_v31 = vsub.f32 %v8312_v58, %v8334_v21 }
 0xa84   :  { %7031 = vpow2.f32 %v2456_v63  ;;  %v2518_v12 = vmul.f32 1.442695, %v2494_v7  ;;  %v2520_v46 = vmul.f32 1.442695, %v2495_v24  ;;  %v2423_v50 = vsub.f32 %v2404_v35, %v8334_v21 }
 0xa85   :  { %7033 = vpow2.f32 %v2522_v23  ;;  %v2446_v47 = vmul.f32 1.442695, %v2424_v56  ;;  %v2448_v5 = vmul.f32 1.442695, %v2425_v37  ;;  %v2490_v17 = vsub.f32 %v8320_v49, %v8336_v60 }
 0xa86   :  { %7035 = vpow2.f32 %v2524_v45  ;;  %v2514_v2 = vmul.f32 1.442695, %v2492_v52  ;;  %v2491_v30 = vsub.f32 %v2472_v19, %v8336_v60  ;;  %v2420_v54 = vsub.f32 %v8272_v15, %v8334_v21 }
 0xa87   :  { %7037 = vpow2.f32 %v2450_v8  ;;  %v2516_v23 = vmul.f32 1.442695, %v2493_v32  ;;  %v2442_v58 = vmul.f32 1.442695, %v2422_v31  ;;  %v2421_v1 = vsub.f32 %v8288_v40, %v8334_v21 }
 0xa88   :  { %v7014_v13 = vpop.eup %7013  ;;  %7039 = vpow2.f32 %v2452_v34  ;;  %v2444_v63 = vmul.f32 1.442695, %v2423_v50  ;;  %v2488_v49 = vsub.f32 %v8276_v39, %v8336_v60  ;;  %v2510_v15 = vmul.f32 1.442695, %v2490_v17 }
 0xa89   :  { %v7016_v48 = vpop.eup %7015  ;;  %v2556_v35 = vmul.f32 %v7014_v13, %v8244_v11  ;;  %7041 = vpow2.f32 %v2518_v12  ;;  %v2489_v24 = vsub.f32 %v8292_v61, %v8336_v60  ;;  %v2512_v40 = vmul.f32 1.442695, %v2491_v30 }
 0xa8a   :  { %v7018_v25 = vpop.eup %7017  ;;  %v2557_v7 = vmul.f32 %v7016_v48, %v8236_v57  ;;  %7043 = vpow2.f32 %v2520_v46  ;;  %v2438_v37 = vmul.f32 1.442695, %v2420_v54  ;;  %v2440_v39 = vmul.f32 1.442695, %v2421_v1 }
 0xa8b   :  { %v7020_v45 = vpop.eup %7019  ;;  %v2588_v56 = vmul.f32 %v7018_v25, %v8244_v11  ;;  %7045 = vpow2.f32 %v2446_v47  ;;  %v2541_v32 = vpack.c.bf16 %v7016_v48, %v7014_v13  ;;  %v2506_v12 = vmul.f32 1.442695, %v2488_v49 }
 0xa8c   :  { %v7022_v19 = vpop.eup %7021  ;;  %v2565_v8 = vpack.c.bf16 %v2557_v7, %v2556_v35  ;;  %v2589_v52 = vmul.f32 %v7020_v45, %v8236_v57  ;;  %7047 = vpow2.f32 %v2448_v5  ;;  %v2508_v50 = vmul.f32 1.442695, %v2489_v24 }
 0xa8d   :  { %v7024_v34 = vpop.eup %7023  ;;  %v2554_v31 = vmul.f32 %v7022_v19, %v8249_v4  ;;  %7049 = vpow2.f32 %v2514_v2  ;;  %v2573_v17 = vpack.c.bf16 %v7020_v45, %v7018_v25  ;;  %v2418_v5 = vsub.f32 %v8280_v0, %v8334_v21 }
 0xa8e   :  { %v7026_v46 = vpop.eup %7025  ;;  %2598 = vmatprep.subr.bf16.mxu0 %v2565_v8  ;;  %v2597_v61 = vpack.c.bf16 %v2589_v52, %v2588_v56  ;;  %v2555_v11 = vmul.f32 %v7024_v34, %v8258_v43  ;;  %7051 = vpow2.f32 %v2516_v23  ;;  %v2419_v13 = vsub.f32 %v8296_v41, %v8334_v21 }
 0xa8f   :  { %v7028_v47 = vpop.eup %7027  ;;  %2599 = vmatpush1.bf16.msra.mxu0 %v2541_v32  ;;  %v2586_v57 = vmul.f32 %v7026_v46, %v8249_v4  ;;  %7053 = vpow2.f32 %v2442_v58  ;;  %v2540_v1 = vpack.c.bf16 %v7024_v34, %v7022_v19  ;;  %v2486_v4 = vsub.f32 %v8284_v38, %v8336_v60 }
 0xa90   :  { %v7030_v30 = vpop.eup %7029  ;;  %2711 = vmatprep.subr.bf16.mxu1 %v2597_v61  ;;  %v2564_v2 = vpack.c.bf16 %v2555_v11, %v2554_v31  ;;  %v2587_v54 = vmul.f32 %v7028_v47, %v8258_v43  ;;  %7055 = vpow2.f32 %v2444_v63  ;;  %v2487_v43 = vsub.f32 %v8300_v33, %v8336_v60 }
 0xa91   :  { %v7032_v23 = vpop.eup %7031  ;;  %2712 = vmatpush1.bf16.msra.mxu1 %v2573_v17  ;;  %v2552_v48 = vmul.f32 %v7030_v30, %v8220_v20  ;;  %7057 = vpow2.f32 %v2510_v15  ;;  %v2572_v41 = vpack.c.bf16 %v7028_v47, %v7026_v46  ;;  %v2434_v49 = vmul.f32 1.442695, %v2418_v5 }
 0xa92   :  { %v7034_v58 = vpop.eup %7033  ;;  %2600 = vmatprep.subr.bf16.mxu0 %v2564_v2  ;;  %v2596_v0 = vpack.c.bf16 %v2587_v54, %v2586_v57  ;;  %v2553_v35 = vmul.f32 %v7032_v23, %v8222_v62  ;;  %7059 = vpow2.f32 %v2512_v40  ;;  %v2436_v15 = vmul.f32 1.442695, %v2419_v13 }
 0xa93   :  { %v7036_v63 = vpop.eup %7035  ;;  %2601 = vmatpush1.bf16.msra.mxu0 %v2540_v1  ;;  %v2584_v21 = vmul.f32 %v7034_v58, %v8220_v20  ;;  %7061 = vpow2.f32 %v2438_v37  ;;  %v2539_v45 = vpack.c.bf16 %v7032_v23, %v7030_v30  ;;  %v2502_v33 = vmul.f32 1.442695, %v2486_v4 }
 0xa94   :  { %v7038_v25 = vpop.eup %7037  ;;  %2713 = vmatprep.subr.bf16.mxu1 %v2596_v0  ;;  %v2563_v7 = vpack.c.bf16 %v2553_v35, %v2552_v48  ;;  %v2585_v38 = vmul.f32 %v7036_v63, %v8222_v62  ;;  %7063 = vpow2.f32 %v2440_v39  ;;  %v2504_v37 = vmul.f32 1.442695, %v2487_v43 }
 0xa95   :  { %v7040_v24 = vpop.eup %7039  ;;  %2714 = vmatpush1.bf16.msra.mxu1 %v2572_v41  ;;  %v2550_v56 = vmul.f32 %v7038_v25, %v8228_v42  ;;  %7065 = vpow2.f32 %v2506_v12  ;;  %v2571_v8 = vpack.c.bf16 %v7036_v63, %v7034_v58 }
 0xa96   :  { %v7042_v60 = vpop.eup %7041  ;;  %2602 = vmatprep.subr.bf16.mxu0 %v2563_v7  ;;  %v2595_v40 = vpack.c.bf16 %v2585_v38, %v2584_v21  ;;  %v2551_v20 = vmul.f32 %v7040_v24, %v8230_v55  ;;  %7067 = vpow2.f32 %v2508_v50  ;;  %v2538_v31 = vpack.c.bf16 %v7040_v24, %v7038_v25 }
 0xa97   :  { %v7044_v19 = vpop.eup %7043  ;;  %2603 = vmatpush1.bf16.msra.mxu0 %v2539_v45  ;;  %v2582_v62 = vmul.f32 %v7042_v60, %v8228_v42  ;;  %7069 = vpow2.f32 %v2434_v49 }
 0xa98   :  { %v7046_v52 = vpop.eup %7045  ;;  %2715 = vmatprep.subr.bf16.mxu1 %v2595_v40  ;;  %v2562_v39 = vpack.c.bf16 %v2551_v20, %v2550_v56  ;;  %v2583_v34 = vmul.f32 %v7044_v19, %v8230_v55  ;;  %7071 = vpow2.f32 %v2436_v15  ;;  %v2570_v50 = vpack.c.bf16 %v7044_v19, %v7042_v60 }
 0xa99   :  { %v7048_v32 = vpop.eup %7047  ;;  %2716 = vmatpush1.bf16.msra.mxu1 %v2571_v8  ;;  %v2548_v12 = vmul.f32 %v7046_v52, %v8202_v22  ;;  %7073 = vpow2.f32 %v2502_v33 }
 0xa9a   :  { %v7050_v46 = vpop.eup %7049  ;;  %2604 = vmatprep.subr.bf16.mxu0 %v2562_v39  ;;  %v2594_v61 = vpack.c.bf16 %v2583_v34, %v2582_v62  ;;  %v2549_v11 = vmul.f32 %v7048_v32, %v8212_v18  ;;  %7075 = vpow2.f32 %v2504_v37  ;;  %v2537_v30 = vpack.c.bf16 %v7048_v32, %v7046_v52  ;;  %v7324_v52 = vld [vmem:[#allocation9] sm:$0xff]   ;;  %v7327_v34 = vld [vmem:[#allocation9 + $0x18] sm:$0xff]  }
 0xa9b   :  { %v7052_v42 = vpop.eup %7051  ;;  %2605 = vmatpush1.bf16.msra.mxu0 %v2538_v31  ;;  %v2580_v47 = vmul.f32 %v7050_v46, %v8202_v22  ;;  %v9170_v39 = vmov 0   ;;  %v7328_v32 = vld [vmem:[#allocation9 + $0x20] sm:$0xff]   ;;  %v7329_v31 = vld [vmem:[#allocation9 + $0x28] sm:$0xff]  }
 0xa9c   :  { %v7054_v17 = vpop.eup %7053  ;;  %2717 = vmatprep.subr.bf16.mxu1 %v2594_v61  ;;  %v2561_v55 = vpack.c.bf16 %v2549_v11, %v2548_v12  ;;  %v2581_v57 = vmul.f32 %v7052_v42, %v8212_v18  ;;  %v2569_v48 = vpack.c.bf16 %v7052_v42, %v7050_v46  ;;  %v7330_v12 = vld [vmem:[#allocation9 + $0x30] sm:$0xff]   ;;  %v7331_v46 = vld [vmem:[#allocation9 + $0x38] sm:$0xff]  }
 0xa9d   :  { %v7056_v5 = vpop.eup %7055  ;;  %2718 = vmatpush1.bf16.msra.mxu1 %v2570_v50  ;;  %v2546_v2 = vmul.f32 %v7054_v17, %v8206_v36  ;;  %v6821_v61 = vld [vmem:[#allocation11 + $0xb8] sm:$0xff]   ;;  %v6823_v42 = vld [vmem:[#allocation11 + $0xb0] sm:$0xff]  }
 0xa9e   :  { %v7058_v54 = vpop.eup %7057  ;;  %2606 = vmatprep.subr.bf16.mxu0 %v2561_v55  ;;  %v2593_v13 = vpack.c.bf16 %v2581_v57, %v2580_v47  ;;  %v2547_v23 = vmul.f32 %v7056_v5, %v8216_v27  ;;  %v2536_v35 = vpack.c.bf16 %v7056_v5, %v7054_v17  ;;  %v6822_v11 = vld [vmem:[#allocation11 + $0xf8] sm:$0xff]   ;;  %v6824_v50 = vld [vmem:[#allocation11 + $0xf0] sm:$0xff]   ;;  %v6825_v47 = vld [vmem:[#allocation11 + $0xa8] sm:$0xff]  }
 0xa9f   :  { %v7060_v1 = vpop.eup %7059  ;;  %2607 = vmatpush1.bf16.msra.mxu0 %v2537_v30  ;;  %v2578_v22 = vmul.f32 %v7058_v54, %v8206_v36  ;;  %v6826_v17 = vld [vmem:[#allocation11 + $0xe8] sm:$0xff]   ;;  %v6827_v55 = vld [vmem:[#allocation11 + $0xa0] sm:$0xff]   ;;  %v6829_v5 = vld [vmem:[#allocation11 + $0x98] sm:$0xff]  }
 0xaa0   :  { %v7062_v4 = vpop.eup %7061  ;;  %2719 = vmatprep.subr.bf16.mxu1 %v2593_v13  ;;  %v2560_v58 = vpack.c.bf16 %v2547_v23, %v2546_v2  ;;  %v2579_v18 = vmul.f32 %v7060_v1, %v8216_v27  ;;  %v2568_v25 = vpack.c.bf16 %v7060_v1, %v7058_v54  ;;  %v6828_v57 = vld [vmem:[#allocation11 + $0xe0] sm:$0xff]   ;;  %v6830_v30 = vld [vmem:[#allocation11 + $0xd8] sm:$0xff]   ;;  %v6831_v2 = vld [vmem:[#allocation11 + $0x90] sm:$0xff]  }
 0xaa1   :  { %v7064_v0 = vpop.eup %7063  ;;  %2720 = vmatpush1.bf16.msra.mxu1 %v2569_v48  ;;  %v2544_v43 = vmul.f32 %v7062_v4, %v8204_v3  ;;  %v6832_v54 = vld [vmem:[#allocation11 + $0xd0] sm:$0xff]   ;;  %v6833_v13 = vld [vmem:[#allocation11 + $0x88] sm:$0xff]   ;;  %v6835_v1 = vld [vmem:[#allocation11 + $0x80] sm:$0xff]  }
 0xaa2   :  { %v7066_v63 = vpop.eup %7065  ;;  %2608 = vmatprep.subr.bf16.mxu0 %v2560_v58  ;;  %v2592_v41 = vpack.c.bf16 %v2579_v18, %v2578_v22  ;;  %v2545_v21 = vmul.f32 %v7064_v0, %v8210_v29  ;;  %v2535_v24 = vpack.c.bf16 %v7064_v0, %v7062_v4  ;;  %v6834_v23 = vld [vmem:[#allocation11 + $0xc8] sm:$0xff]   ;;  %v6836_v48 = vld [vmem:[#allocation11 + $0xc0] sm:$0xff]   ;;  %v8462_v22 = vld [vmem:[#allocation12 + $0xf8] sm:$0xff]   ;;  %v9171_v18 = vmov 0.0  }
 0xaa3   :  { %v7068_v49 = vpop.eup %7067  ;;  %2609 = vmatpush1.bf16.msra.mxu0 %v2536_v35  ;;  %v2576_v36 = vmul.f32 %v7066_v63, %v8204_v3  ;;  %v8464_v4 = vld [vmem:[#allocation12 + $0xb8] sm:$0xff]  }
 0xaa4   :  { %v7070_v7 = vpop.eup %7069  ;;  %2721 = vmatprep.subr.bf16.mxu1 %v2592_v41  ;;  %v2559_v38 = vpack.c.bf16 %v2545_v21, %v2544_v43  ;;  %v2577_v27 = vmul.f32 %v7068_v49, %v8210_v29  ;;  %v2567_v20 = vpack.c.bf16 %v7068_v49, %v7066_v63 }
 0xaa5   :  { %v7072_v15 = vpop.eup %7071  ;;  %2722 = vmatpush1.bf16.msra.mxu1 %v2568_v25  ;;  %v2542_v45 = vmul.f32 %v7070_v7, %v8208_v9 }
 0xaa6   :  { %v7074_v56 = vpop.eup %7073  ;;  %2610 = vmatprep.subr.bf16.mxu0 %v2559_v38  ;;  %v2591_v33 = vpack.c.bf16 %v2577_v27, %v2576_v36  ;;  %v2543_v60 = vmul.f32 %v7072_v15, %v8214_v44  ;;  %v2534_v29 = vpack.c.bf16 %v7072_v15, %v7070_v7 }
 0xaa7   :  { %v7076_v40 = vpop.eup %7075  ;;  %2611 = vmatpush1.bf16.msra.mxu0 %v2535_v24  ;;  %v2574_v3 = vmul.f32 %v7074_v56, %v8208_v9  ;;  %v7325_v9 = vld [vmem:[#allocation9 + $0x8] sm:$0xff]  }
 0xaa8   :  { %2723 = vmatprep.subr.bf16.mxu1 %v2591_v33  ;;  %v2558_v37 = vpack.c.bf16 %v2543_v60, %v2542_v45  ;;  %v2575_v19 = vmul.f32 %v7076_v40, %v8214_v44  ;;  %v2566_v62 = vpack.c.bf16 %v7076_v40, %v7074_v56  ;;  %v7326_v44 = vld [vmem:[#allocation9 + $0x10] sm:$0xff]  }
 0xaa9   :  { %2724 = vmatpush1.bf16.msra.mxu1 %v2567_v20 }
 0xaaa   :  { %2612 = vmatprep.subr.bf16.mxu0 %v2558_v37  ;;  %v2590_v8 = vpack.c.bf16 %v2575_v19, %v2574_v3 }
 0xaab   :  { %2613 = vmatpush1.bf16.msra.mxu0 %v2534_v29 }
 0xaac   :  { %2725 = vmatprep.subr.bf16.mxu1 %v2590_v8  ;;  %6429 = vmatprep.subr.bf16.mxu0 %v6821_v61 }
 0xaad   :  { %2726 = vmatpush1.bf16.msra.mxu1 %v2566_v62 }
 0xaae   :  { %2631 = vmatmul.mubr.bf16.vlgmr.msra.gmra.mxu0 %v7324_v52  ;;  %6461 = vmatprep.subr.bf16.mxu1 %v6822_v11 }
 0xaaf   :  { %2640 = vmatprep.mubr.bf16.mxu0 %v9170_v39  ;;  %6430 = vmatpush3.bf16.msra.mxu0 %v6821_v61 }
 0xab0   :  { %2744 = vmatmul.mubr.bf16.vlgmr.msra.gmra.mxu1 %v7324_v52  ;;  %6431 = vmatprep.subr.bf16.mxu0 %v6823_v42 }
 0xab1   :  { %2753 = vmatprep.mubr.bf16.mxu1 %v9170_v39  ;;  %6462 = vmatpush3.bf16.msra.mxu1 %v6822_v11 }
 0xab2   :  { %6463 = vmatprep.subr.bf16.mxu1 %v6824_v50 }
 0xab3   :  { %6432 = vmatpush3.bf16.msra.mxu0 %v6823_v42 }
 0xab4   :  { %6433 = vmatprep.subr.bf16.mxu0 %v6825_v47 }
 0xab5   :  { %6464 = vmatpush3.bf16.msra.mxu1 %v6824_v50 }
 0xab6   :  { %2641 = vmatmul.mubr.bf16.gmra.mxu0 %v7325_v9  ;;  %6465 = vmatprep.subr.bf16.mxu1 %v6826_v17 }
 0xab7   :  { %2650 = vmatprep.mubr.bf16.mxu0 %v9170_v39  ;;  %6434 = vmatpush3.bf16.msra.mxu0 %v6825_v47 }
 0xab8   :  { %2754 = vmatmul.mubr.bf16.gmra.mxu1 %v7325_v9  ;;  %6435 = vmatprep.subr.bf16.mxu0 %v6827_v55 }
 0xab9   :  { %2763 = vmatprep.mubr.bf16.mxu1 %v9170_v39  ;;  %6466 = vmatpush3.bf16.msra.mxu1 %v6826_v17 }
 0xaba   :  { %6467 = vmatprep.subr.bf16.mxu1 %v6828_v57 }
 0xabb   :  { %6436 = vmatpush3.bf16.msra.mxu0 %v6827_v55 }
 0xabc   :  { %6437 = vmatprep.subr.bf16.mxu0 %v6829_v5 }
 0xabd   :  { %6468 = vmatpush3.bf16.msra.mxu1 %v6828_v57 }
 0xabe   :  { %2651 = vmatmul.mubr.bf16.gmra.mxu0 %v7326_v44  ;;  %6469 = vmatprep.subr.bf16.mxu1 %v6830_v30 }
 0xabf   :  { %2660 = vmatprep.mubr.bf16.mxu0 %v9170_v39  ;;  %6438 = vmatpush3.bf16.msra.mxu0 %v6829_v5 }
 0xac0   :  { %2764 = vmatmul.mubr.bf16.gmra.mxu1 %v7326_v44  ;;  %6439 = vmatprep.subr.bf16.mxu0 %v6831_v2 }
 0xac1   :  { %2773 = vmatprep.mubr.bf16.mxu1 %v9170_v39  ;;  %6470 = vmatpush3.bf16.msra.mxu1 %v6830_v30 }
 0xac2   :  { %6471 = vmatprep.subr.bf16.mxu1 %v6832_v54 }
 0xac3   :  { %6440 = vmatpush3.bf16.msra.mxu0 %v6831_v2 }
 0xac4   :  { %6441 = vmatprep.subr.bf16.mxu0 %v6833_v13 }
 0xac5   :  { %6472 = vmatpush3.bf16.msra.mxu1 %v6832_v54 }
 0xac6   :  { %2661 = vmatmul.mubr.bf16.gmra.mxu0 %v7327_v34  ;;  %6473 = vmatprep.subr.bf16.mxu1 %v6834_v23 }
 0xac7   :  { %2670 = vmatprep.mubr.bf16.mxu0 %v9170_v39  ;;  %6442 = vmatpush3.bf16.msra.mxu0 %v6833_v13 }
 0xac8   :  { %2774 = vmatmul.mubr.bf16.gmra.mxu1 %v7327_v34  ;;  %6443 = vmatprep.subr.bf16.mxu0 %v6835_v1 }
 0xac9   :  { %2783 = vmatprep.mubr.bf16.mxu1 %v9170_v39  ;;  %6474 = vmatpush3.bf16.msra.mxu1 %v6834_v23 }
 0xaca   :  { %6475 = vmatprep.subr.bf16.mxu1 %v6836_v48 }
 0xacb   :  { %6444 = vmatpush3.bf16.msra.mxu0 %v6835_v1 }
 0xacc   :  { %6493 = vmatprep.subr.bf16.mxu0 %v8462_v22 }
 0xacd   :  { %6476 = vmatpush3.bf16.msra.mxu1 %v6836_v48 }
 0xace   :  { %2671 = vmatmul.mubr.bf16.gmra.mxu0 %v7328_v32  ;;  %6525 = vmatprep.subr.bf16.mxu1 %v8464_v4 }
 0xacf   :  { %2680 = vmatprep.mubr.bf16.mxu0 %v9170_v39 }
 0xad0   :  { %2784 = vmatmul.mubr.bf16.gmra.mxu1 %v7328_v32 }
 0xad1   :  { %2793 = vmatprep.mubr.bf16.mxu1 %v9170_v39 }
 0xad6   :  { %2681 = vmatmul.mubr.bf16.gmra.mxu0 %v7329_v31 }
 0xad7   :  { %2690 = vmatprep.mubr.bf16.mxu0 %v9170_v39 }
 0xad8   :  { %2794 = vmatmul.mubr.bf16.gmra.mxu1 %v7329_v31 }
 0xad9   :  { %2803 = vmatprep.mubr.bf16.mxu1 %v9170_v39 }
 0xade   :  { %2691 = vmatmul.mubr.bf16.gmra.mxu0 %v7330_v12 }
 0xadf   :  { %2700 = vmatprep.mubr.bf16.mxu0 %v9170_v39 }
 0xae0   :  { %2804 = vmatmul.mubr.bf16.gmra.mxu1 %v7330_v12 }
 0xae1   :  { %2813 = vmatprep.mubr.bf16.mxu1 %v9170_v39 }
 0xae6   :  { %2701 = vmatmul.mubr.bf16.gmra.mxu0 %v7331_v46 }
 0xae8   :  { %2814 = vmatmul.mubr.bf16.gmra.mxu1 %v7331_v46 }
 0xb6e   :  { %v2632_v58 = vpop.f32.mrf.mxu0 }
 0xb6f   :  { %vm2824_vm0 = vcmp.eq.f32.partialorder %v2632_v58, 0.0 }
 0xb70   :  { %v5755_v0 = vsel %vm2824_vm0, 1.0, %v9171_v18  ;;  %v2745_v35 = vpop.f32.mrf.mxu1  ;;  %v2634_v43 = vpop.f32.mrf.mxu0 }
 0xb71   :  { %v2872_v63 = vadd.f32 %v5755_v0, %v2632_v58  ;;  %vm2920_vm1 = vcmp.eq.f32.partialorder %v2745_v35, 0.0 }
 0xb72   :  { %v5771_v41 = vsel %vm2920_vm1, 1.0, %v9171_v18  ;;  %v2747_v21 = vpop.f32.mrf.mxu1  ;;  %v2636_v49 = vpop.f32.mrf.mxu0 }
 0xb73   :  { %v2968_v25 = vadd.f32 %v5771_v41, %v2745_v35  ;;  %vm2825_vm2 = vcmp.eq.f32.partialorder %v2636_v49, 0.0  ;;  %7077 = vrcp.f32 %v2872_v63 }
 0xb74   :  { %v5756_v36 = vsel %vm2825_vm2, 1.0, %v9171_v18  ;;  %v2749_v7 = vpop.f32.mrf.mxu1  ;;  %v2638_v38 = vpop.f32.mrf.mxu0 }
 0xb75   :  { %7079 = vrcp.f32 %v2968_v25  ;;  %v2873_v27 = vadd.f32 %v5756_v36, %v2636_v49  ;;  %vm2921_vm3 = vcmp.eq.f32.partialorder %v2749_v7, 0.0 }
 0xb76   :  { %v5772_v15 = vsel %vm2921_vm3, 1.0, %v9171_v18  ;;  %v2751_v24 = vpop.f32.mrf.mxu1  ;;  %v2642_v45 = vpop.f32.mrf.mxu0 }
 0xb77   :  { %7081 = vrcp.f32 %v2873_v27  ;;  %v2969_v56 = vadd.f32 %v5772_v15, %v2749_v7  ;;  %vm2826_vm4 = vcmp.eq.f32.partialorder %v2642_v45, 0.0 }
 0xb78   :  { %v5757_v33 = vsel %vm2826_vm4, 1.0, %v9171_v18  ;;  %v2755_v60 = vpop.f32.mrf.mxu1  ;;  %v8473_v40 = vpop.f32.mrf.mxu0 }
 0xb79   :  { %7083 = vrcp.f32 %v2969_v56  ;;  %v2874_v20 = vadd.f32 %v5757_v33, %v2642_v45  ;;  %vm2922_vm5 = vcmp.eq.f32.partialorder %v2755_v60, 0.0 }
 0xb7a   :  { %v5773_v3 = vsel %vm2922_vm5, 1.0, %v9171_v18  ;;  %v8476_v37 = vpop.f32.mrf.mxu1  ;;  %v2646_v19 = vpop.f32.mrf.mxu0 }
 0xb7b   :  { %7085 = vrcp.f32 %v2874_v20  ;;  %v2970_v29 = vadd.f32 %v5773_v3, %v2755_v60  ;;  %vm2827_vm6 = vcmp.eq.f32.partialorder %v2646_v19, 0.0 }
 0xb7c   :  { %v5758_v8 = vsel %vm2827_vm6, 1.0, %v9171_v18  ;;  %v2759_v62 = vpop.f32.mrf.mxu1  ;;  %v8479_v52 = vpop.f32.mrf.mxu0 }
 0xb7d   :  { %7087 = vrcp.f32 %v2970_v29  ;;  %v2875_v9 = vadd.f32 %v5758_v8, %v2646_v19  ;;  %vm2923_vm7 = vcmp.eq.f32.partialorder %v2759_v62, 0.0 }
 0xb7e   :  { %v5774_v44 = vsel %vm2923_vm7, 1.0, %v9171_v18  ;;  %v8482_v34 = vpop.f32.mrf.mxu1  ;;  %v2652_v32 = vpop.f32.mrf.mxu0 }
 0xb7f   :  { %7089 = vrcp.f32 %v2875_v9  ;;  %v2971_v31 = vadd.f32 %v5774_v44, %v2759_v62  ;;  %vm2828_vm8 = vcmp.eq.f32.partialorder %v2652_v32, 0.0 }
 0xb80   :  { %v5759_v12 = vsel %vm2828_vm8, 1.0, %v9171_v18  ;;  %v2765_v46 = vpop.f32.mrf.mxu1  ;;  %v8485_v61 = vpop.f32.mrf.mxu0 }
 0xb81   :  { %v7078_v11 = vpop.eup %7077  ;;  %7091 = vrcp.f32 %v2971_v31  ;;  %v2876_v42 = vadd.f32 %v5759_v12, %v2652_v32  ;;  %vm2924_vm9 = vcmp.eq.f32.partialorder %v2765_v46, 0.0 }
 0xb82   :  { %v7080_v50 = vpop.eup %7079  ;;  %v5775_v47 = vsel %vm2924_vm9, 1.0, %v9171_v18  ;;  %v8488_v17 = vpop.f32.mrf.mxu1  ;;  %v2904_v30 = vmul.f32 %v7078_v11, %v2634_v43 }
 0xb83   :  { %v2656_v55 = vpop.f32.mrf.mxu0  ;;  %7093 = vrcp.f32 %v2876_v42  ;;  %v2972_v57 = vadd.f32 %v5775_v47, %v2765_v46  ;;  %v3000_v13 = vmul.f32 %v7080_v50, %v2747_v21 }
 0xb84   :  { %v7082_v5 = vpop.eup %7081  ;;  %vm2829_vm10 = vcmp.eq.f32.partialorder %v2656_v55, 0.0  ;;  %v2769_v2 = vpop.f32.mrf.mxu1  ;;  %v3016_v25 = vadd.f32 %v2904_v30, %v8197_v10 }
 0xb85   :  { %v8490_v54 = vpop.f32.mrf.mxu0  ;;  %v2905_v23 = vmul.f32 %v7082_v5, %v2638_v38  ;;  %v5760_v1 = vsel %vm2829_vm10, 1.0, %v9171_v18  ;;  %7095 = vrcp.f32 %v2972_v57  ;;  %vm2925_vm11 = vcmp.eq.f32.partialorder %v2769_v2, 0.0 }
 0xb86   :  { %v7084_v48 = vpop.eup %7083  ;;  %v2877_v58 = vadd.f32 %v5760_v1, %v2656_v55  ;;  %v8493_v0 = vpop.f32.mrf.mxu1  ;;  %v5776_v43 = vsel %vm2925_vm11, 1.0, %v9171_v18  ;;  %v3243_v27 = vadd.f32 %v3000_v13, %v8197_v10 }
 0xb87   :  { %v2662_v35 = vpop.f32.mrf.mxu0  ;;  %v3017_v63 = vadd.f32 %v2905_v23, %v8193_v6  ;;  %v3001_v41 = vmul.f32 %v7084_v48, %v2751_v24  ;;  %v2973_v21 = vadd.f32 %v5776_v43, %v2769_v2  ;;  %v6839_v23 = vld [vmem:[#allocation12 + $0xf0] sm:$0xff]  }
 0xb88   :  { %vm2830_vm12 = vcmp.eq.f32.partialorder %v2662_v35, 0.0  ;;  %v7086_v49 = vpop.eup %7085  ;;  %7097 = vrcp.f32 %v2877_v58  ;;  %v2775_v7 = vpop.f32.mrf.mxu1 }
 0xb89   :  { %v5761_v36 = vsel %vm2830_vm12, 1.0, %v9171_v18  ;;  %v8499_v38 = vpop.f32.mrf.mxu0  ;;  %v3244_v15 = vadd.f32 %v3001_v41, %v8193_v6  ;;  %vm2926_vm13 = vcmp.eq.f32.partialorder %v2775_v7, 0.0  ;;  %v2906_v56 = vmul.f32 %v7086_v49, %v8473_v40 }
 0xb8a   :  { %v2878_v45 = vadd.f32 %v5761_v36, %v2662_v35  ;;  %v7088_v24 = vpop.eup %7087  ;;  %7099 = vrcp.f32 %v2973_v21  ;;  %v5777_v33 = vsel %vm2926_vm13, 1.0, %v9171_v18  ;;  %v8505_v60 = vpop.f32.mrf.mxu1  ;;  %v3032_v3 = vpack.c.bf16 %v3017_v63, %v3016_v25  ;;  %v6840_v63 = vld [vmem:[#allocation12 + $0xb0] sm:$0xff]   ;;  %v6841_v21 = vld [vmem:[#allocation12 + $0xe8] sm:$0xff]  }
 0xb8b   :  { %v2666_v20 = vpop.f32.mrf.mxu0  ;;  %v2974_v19 = vadd.f32 %v5777_v33, %v2775_v7  ;;  %v3259_v10 = vpack.c.bf16 %v3244_v15, %v3243_v27  ;;  %v3002_v62 = vmul.f32 %v7088_v24, %v8476_v37  ;;  %v3018_v32 = vadd.f32 %v2906_v56, %v8191_v59  ;;  %v6842_v33 = vld [vmem:[#allocation12 + $0xa8] sm:$0xff]  }
 0xb8c   :  { %7101 = vrcp.f32 %v2878_v45  ;;  %v7090_v29 = vpop.eup %7089  ;;  %vm2831_vm14 = vcmp.eq.f32.partialorder %v2666_v20, 0.0  ;;  %v2779_v8 = vpop.f32.mrf.mxu1  ;;  %6445 = vmatprep.mubr.bf16.mxu0 %v3032_v3 }
 0xb8d   :  { %v8507_v6 = vpop.f32.mrf.mxu0  ;;  %v2907_v40 = vmul.f32 %v7090_v29, %v8479_v52  ;;  %v5762_v9 = vsel %vm2831_vm14, 1.0, %v9171_v18  ;;  %7103 = vrcp.f32 %v2974_v19  ;;  %vm2927_vm15 = vcmp.eq.f32.partialorder %v2779_v8, 0.0  ;;  %6477 = vmatprep.mubr.bf16.mxu1 %v3259_v10 }
 0xb8e   :  { %v7092_v44 = vpop.eup %7091  ;;  %v2879_v31 = vadd.f32 %v5762_v9, %v2666_v20  ;;  %v8513_v12 = vpop.f32.mrf.mxu1  ;;  %v5778_v37 = vsel %vm2927_vm15, 1.0, %v9171_v18  ;;  %v3245_v5 = vadd.f32 %v3002_v62, %v8191_v59 }
 0xb8f   :  { %v2672_v46 = vpop.f32.mrf.mxu0  ;;  %v3019_v11 = vadd.f32 %v2907_v40, %v8187_v28  ;;  %v3003_v42 = vmul.f32 %v7092_v44, %v8482_v34  ;;  %v2975_v50 = vadd.f32 %v5778_v37, %v2779_v8  ;;  %v6843_v8 = vld [vmem:[#allocation12 + $0xe0] sm:$0xff]  }
 0xb90   :  { %vm2832_vm0 = vcmp.eq.f32.partialorder %v2672_v46, 0.0  ;;  %v7094_v52 = vpop.eup %7093  ;;  %7105 = vrcp.f32 %v2879_v31  ;;  %v2785_v55 = vpop.f32.mrf.mxu1 }
 0xb91   :  { %v5763_v47 = vsel %vm2832_vm0, 1.0, %v9171_v18  ;;  %v8519_v57 = vpop.f32.mrf.mxu0  ;;  %v3033_v30 = vpack.c.bf16 %v3019_v11, %v3018_v32  ;;  %v3246_v2 = vadd.f32 %v3003_v42, %v8187_v28  ;;  %7107 = vrcp.f32 %v2975_v50  ;;  %v6844_v11 = vld [vmem:[#allocation12 + $0xa0] sm:$0xff]   ;;  %v6845_v50 = vld [vmem:[#allocation12 + $0xd8] sm:$0xff]  }
 0xb92   :  { %v2880_v13 = vadd.f32 %v5763_v47, %v2672_v46  ;;  %vm2928_vm1 = vcmp.eq.f32.partialorder %v2785_v55, 0.0  ;;  %v8523_v34 = vpop.f32.mrf.mxu1  ;;  %v7096_v48 = vpop.eup %7095  ;;  %v2908_v35 = vmul.f32 %v7094_v52, %v8485_v61 }
 0xb93   :  { %v2676_v1 = vpop.f32.mrf.mxu0  ;;  %v3260_v58 = vpack.c.bf16 %v3246_v2, %v3245_v5  ;;  %6446 = vmatmul.mubr.bf16.vlgmr.msra.gmra.mxu0 %v3033_v30  ;;  %v5779_v41 = vsel %vm2928_vm1, 1.0, %v9171_v18  ;;  %v3004_v61 = vmul.f32 %v7096_v48, %v8488_v17  ;;  %v6846_v48 = vld [vmem:[#allocation12 + $0x98] sm:$0xff]  }
 0xb94   :  { %7109 = vrcp.f32 %v2880_v13  ;;  %vm2833_vm2 = vcmp.eq.f32.partialorder %v2676_v1, 0.0  ;;  %v2789_v59 = vpop.f32.mrf.mxu1  ;;  %6494 = vmatpush3.bf16.msra.mxu0 %v8462_v22  ;;  %v2976_v49 = vadd.f32 %v5779_v41, %v2785_v55  ;;  %v3020_v24 = vadd.f32 %v2908_v35, %v8185_v53 }
 0xb95   :  { %v8527_v43 = vpop.f32.mrf.mxu0  ;;  %v7098_v28 = vpop.eup %7097  ;;  %v5764_v25 = vsel %vm2833_vm2, 1.0, %v9171_v18  ;;  %vm2929_vm3 = vcmp.eq.f32.partialorder %v2789_v59, 0.0  ;;  %6478 = vmatmul.mubr.bf16.vlgmr.msra.gmra.mxu1 %v3260_v58  ;;  %6495 = vmatprep.subr.bf16.mxu0 %v6839_v23  ;;  %v3247_v10 = vadd.f32 %v3004_v61, %v8185_v53 }
 0xb96   :  { %v2909_v36 = vmul.f32 %v7098_v28, %v8490_v54  ;;  %v2881_v7 = vadd.f32 %v5764_v25, %v2676_v1  ;;  %v5780_v27 = vsel %vm2929_vm3, 1.0, %v9171_v18  ;;  %v8534_v15 = vpop.f32.mrf.mxu1  ;;  %6526 = vmatpush3.bf16.msra.mxu1 %v8464_v4  ;;  %7111 = vrcp.f32 %v2976_v49 }
 0xb97   :  { %v2682_v45 = vpop.f32.mrf.mxu0  ;;  %v7100_v22 = vpop.eup %7099  ;;  %v2977_v56 = vadd.f32 %v5780_v27, %v2789_v59  ;;  %6527 = vmatprep.subr.bf16.mxu1 %v6840_v63 }
 0xb98   :  { %vm2834_vm4 = vcmp.eq.f32.partialorder %v2682_v45, 0.0  ;;  %v3021_v17 = vadd.f32 %v2909_v36, %v8181_v51  ;;  %v3005_v54 = vmul.f32 %v7100_v22, %v8493_v0  ;;  %7113 = vrcp.f32 %v2881_v7  ;;  %v2795_v19 = vpop.f32.mrf.mxu1  ;;  %6496 = vmatpush3.bf16.msra.mxu0 %v6839_v23 }
 0xb99   :  { %v7102_v20 = vpop.eup %7101  ;;  %v5765_v3 = vsel %vm2834_vm4, 1.0, %v9171_v18  ;;  %v8541_v29 = vpop.f32.mrf.mxu0  ;;  %7115 = vrcp.f32 %v2977_v56  ;;  %vm2930_vm5 = vcmp.eq.f32.partialorder %v2795_v19, 0.0  ;;  %6497 = vmatprep.subr.bf16.mxu0 %v6841_v21 }
 0xb9a   :  { %v2882_v4 = vadd.f32 %v5765_v3, %v2682_v45  ;;  %v3248_v62 = vadd.f32 %v3005_v54, %v8181_v51  ;;  %v5781_v40 = vsel %vm2930_vm5, 1.0, %v9171_v18  ;;  %v8546_v9 = vpop.f32.mrf.mxu1  ;;  %v3034_v44 = vpack.c.bf16 %v3021_v17, %v3020_v24  ;;  %6528 = vmatpush3.bf16.msra.mxu1 %v6840_v63  ;;  %v7104_v32 = vpop.eup %7103 }
 0xb9b   :  { %v2686_v0 = vpop.f32.mrf.mxu0  ;;  %v2910_v31 = vmul.f32 %v7102_v20, %v8499_v38  ;;  %v2978_v46 = vadd.f32 %v5781_v40, %v2795_v19  ;;  %6529 = vmatprep.subr.bf16.mxu1 %v6842_v33  ;;  %v3006_v38 = vmul.f32 %v7104_v32, %v8505_v60 }
 0xb9c   :  { %7117 = vrcp.f32 %v2882_v4  ;;  %vm2835_vm6 = vcmp.eq.f32.partialorder %v2686_v0, 0.0  ;;  %v2799_v42 = vpop.f32.mrf.mxu1  ;;  %6449 = vmatprep.mubr.bf16.mxu0 %v3034_v44  ;;  %v3261_v53 = vpack.c.bf16 %v3248_v62, %v3247_v10  ;;  %6498 = vmatpush3.bf16.msra.mxu0 %v6841_v21  ;;  %v9172_v62 = vld [vmem:[#allocation32_spill] sm:$0xff] }
 0xb9d   :  { %v8549_v37 = vpop.f32.mrf.mxu0  ;;  %v7106_v51 = vpop.eup %7105  ;;  %7119 = vrcp.f32 %v2978_v46  ;;  %v5766_v52 = vsel %vm2835_vm6, 1.0, %v9171_v18  ;;  %vm2931_vm7 = vcmp.eq.f32.partialorder %v2799_v42, 0.0  ;;  %6499 = vmatprep.subr.bf16.mxu0 %v6843_v8  ;;  %v3022_v23 = vadd.f32 %v2910_v31, %v8179_v14 }
 0xb9e   :  { %v2911_v47 = vmul.f32 %v7106_v51, %v8507_v6  ;;  %v2883_v55 = vadd.f32 %v5766_v52, %v2686_v0  ;;  %v5782_v5 = vsel %vm2931_vm7, 1.0, %v9171_v18  ;;  %6481 = vmatprep.mubr.bf16.mxu1 %v3261_v53  ;;  %v8555_v30 = vpop.f32.mrf.mxu1  ;;  %6530 = vmatpush3.bf16.msra.mxu1 %v6842_v33  ;;  %v7108_v13 = vpop.eup %7107  ;;  %v3249_v28 = vadd.f32 %v3006_v38, %v8179_v14 }
 0xb9f   :  { %v2692_v2 = vpop.f32.mrf.mxu0  ;;  %v2979_v1 = vadd.f32 %v5782_v5, %v2799_v42  ;;  %6531 = vmatprep.subr.bf16.mxu1 %v6844_v11  ;;  %v3007_v60 = vmul.f32 %v7108_v13, %v8513_v12 }
 0xba0   :  { %vm2836_vm8 = vcmp.eq.f32.partialorder %v2692_v2, 0.0  ;;  %v3023_v58 = vadd.f32 %v2911_v47, %v8175_v26  ;;  %7121 = vrcp.f32 %v2883_v55  ;;  %v2805_v35 = vpop.f32.mrf.mxu1  ;;  %6500 = vmatpush3.bf16.msra.mxu0 %v6843_v8 }
 0xba1   :  { %v5767_v6 = vsel %vm2836_vm8, 1.0, %v9171_v18  ;;  %v8561_v63 = vpop.f32.mrf.mxu0  ;;  %v7110_v41 = vpop.eup %7109  ;;  %7123 = vrcp.f32 %v2979_v1  ;;  %vm2932_vm9 = vcmp.eq.f32.partialorder %v2805_v35, 0.0  ;;  %6501 = vmatprep.subr.bf16.mxu0 %v6845_v50  ;;  %v3250_v25 = vadd.f32 %v3007_v60, %v8175_v26 }
 0xba2   :  { %v2884_v59 = vadd.f32 %v5767_v6, %v2692_v2  ;;  %v3035_v49 = vpack.c.bf16 %v3023_v58, %v3022_v23  ;;  %v5783_v21 = vsel %vm2932_vm9, 1.0, %v9171_v18  ;;  %v8566_v12 = vpop.f32.mrf.mxu1  ;;  %6532 = vmatpush3.bf16.msra.mxu1 %v6844_v11  ;;  %v2912_v45 = vmul.f32 %v7110_v41, %v8519_v57  ;;  %v9173_v58 = vld [vmem:[#allocation31_spill] sm:$0xff]  ;;  %v9174_v6 = vld [vmem:[#allocation30_spill] sm:$0xff] }
 0xba3   :  { %v2696_v61 = vpop.f32.mrf.mxu0  ;;  %v2980_v36 = vadd.f32 %v5783_v21, %v2805_v35  ;;  %6533 = vmatprep.subr.bf16.mxu1 %v6846_v48  ;;  %v7112_v7 = vpop.eup %7111  ;;  %v3262_v27 = vpack.c.bf16 %v3250_v25, %v3249_v28 }
 0xba4   :  { %7125 = vrcp.f32 %v2884_v59  ;;  %vm2837_vm10 = vcmp.eq.f32.partialorder %v2696_v61, 0.0  ;;  %v2809_v14 = vpop.f32.mrf.mxu1  ;;  %6450 = vmatmul.mubr.bf16.gmra.mxu0 %v3035_v49  ;;  %v3008_v20 = vmul.f32 %v7112_v7, %v8523_v34  ;;  %v3024_v10 = vadd.f32 %v2912_v45, %v8173_v16 }
 0xba5   :  { %v5768_v22 = vsel %vm2837_vm10, 1.0, %v9171_v18  ;;  %v8570_v24 = vpop.f32.mrf.mxu0  ;;  %v7114_v26 = vpop.eup %7113  ;;  %7127 = vrcp.f32 %v2980_v36  ;;  %vm2933_vm11 = vcmp.eq.f32.partialorder %v2809_v14, 0.0  ;;  %6502 = vmatpush3.bf16.msra.mxu0 %v6845_v50  ;;  %6482 = vmatmul.mubr.bf16.gmra.mxu1 %v3262_v27  ;;  %v9175_v36 = vld [vmem:[#allocation28_spill] sm:$0xff]  ;;  %v9176_v27 = vld [vmem:[#allocation29_spill] sm:$0xff] }
 0xba6   :  { %v2885_v56 = vadd.f32 %v5768_v22, %v2696_v61  ;;  %v7116_v33 = vpop.eup %7115  ;;  %v2913_v17 = vmul.f32 %v7114_v26, %v8527_v43  ;;  %v5784_v54 = vsel %vm2933_vm11, 1.0, %v9171_v18  ;;  %v2811_v57 = vpop.f32.mrf.mxu1  ;;  %6534 = vmatpush3.bf16.msra.mxu1 %v6846_v48  ;;  %v3251_v31 = vadd.f32 %v3008_v20, %v8173_v16 }
 0xba7   :  { %v2702_v3 = vpop.f32.mrf.mxu0  ;;  %v3009_v19 = vmul.f32 %v7116_v33, %v8534_v15  ;;  %v2981_v4 = vadd.f32 %v5784_v54, %v2809_v14 }
 0xba8   :  { %7129 = vrcp.f32 %v2885_v56  ;;  %v3025_v40 = vadd.f32 %v2913_v17, %v9172_v62  ;;  %vm2838_vm12 = vcmp.eq.f32.partialorder %v2702_v3, 0.0  ;;  %v2815_v0 = vpop.f32.mrf.mxu1 }
 0xba9   :  { %v7118_v8 = vpop.eup %7117  ;;  %v2704_v34 = vpop.f32.mrf.mxu0  ;;  %v3252_v43 = vadd.f32 %v3009_v19, %v9172_v62  ;;  %7131 = vrcp.f32 %v2981_v4  ;;  %v5769_v44 = vsel %vm2838_vm12, 1.0, %v9171_v18  ;;  %vm2934_vm13 = vcmp.eq.f32.partialorder %v2815_v0, 0.0  ;;  %v9178_v62 = vld [vmem:[#allocation27_spill] sm:$0xff] }
 0xbaa   :  { %v7120_v32 = vpop.eup %7119  ;;  %v2886_v15 = vadd.f32 %v5769_v44, %v2702_v3  ;;  %v2817_v46 = vpop.f32.mrf.mxu1  ;;  %v3036_v42 = vpack.c.bf16 %v3025_v40, %v3024_v10  ;;  %v2914_v53 = vmul.f32 %v7118_v8, %v8541_v29  ;;  %v5785_v51 = vsel %vm2934_vm13, 1.0, %v9171_v18  ;;  %v9177_v8 = vld [vmem:[#allocation26_spill] sm:$0xff] }
 0xbab   :  { %v2706_v11 = vpop.f32.mrf.mxu0  ;;  %v2982_v52 = vadd.f32 %v5785_v51, %v2815_v0  ;;  %v3263_v47 = vpack.c.bf16 %v3252_v43, %v3251_v31  ;;  %v3010_v16 = vmul.f32 %v7120_v32, %v8546_v9  ;;  %v6847_v32 = vld [vmem:[#allocation12 + $0xd0] sm:$0xff]  }
 0xbac   :  { %vm2839_vm14 = vcmp.eq.f32.partialorder %v2706_v11, 0.0  ;;  %7133 = vrcp.f32 %v2886_v15  ;;  %v2819_v38 = vpop.f32.mrf.mxu1  ;;  %6453 = vmatprep.mubr.bf16.mxu0 %v3036_v42  ;;  %v3026_v60 = vadd.f32 %v2914_v53, %v9173_v58  ;;  %v6848_v31 = vld [vmem:[#allocation12 + $0x90] sm:$0xff]   ;;  %6503 = vmatprep.subr.bf16.mxu0 %v6847_v32  ;;  %v6849_v15 = vld [vmem:[#allocation12 + $0xc8] sm:$0xff]   ;;  %v6852_v42 = vld [vmem:[#allocation12 + $0x80] sm:$0xff]  }
 0xbad   :  { %v5770_v50 = vsel %vm2839_vm14, 1.0, %v9171_v18  ;;  %v7122_v55 = vpop.eup %7121  ;;  %vm2935_vm15 = vcmp.eq.f32.partialorder %v2819_v38, 0.0  ;;  %7135 = vrcp.f32 %v2982_v52  ;;  %6485 = vmatprep.mubr.bf16.mxu1 %v3263_v47  ;;  %v3253_v9 = vadd.f32 %v3010_v16, %v9173_v58  ;;  %v2708_v54 = vpop.f32.mrf.mxu0  ;;  %6535 = vmatprep.subr.bf16.mxu1 %v6848_v31 }
 0xbae   :  { %v2887_v5 = vadd.f32 %v5770_v50, %v2706_v11  ;;  %v7124_v2 = vpop.eup %7123  ;;  %v2915_v13 = vmul.f32 %v7122_v55, %v8549_v37  ;;  %v5786_v29 = vsel %vm2935_vm15, 1.0, %v9171_v18  ;;  %v2821_v4 = vpop.f32.mrf.mxu1  ;;  %6504 = vmatpush3.bf16.msra.mxu0 %v6847_v32  ;;  %6536 = vmatpush3.bf16.msra.mxu1 %v6848_v31  ;;  %v6851_v11 = vld [vmem:[#allocation12 + $0xc0] sm:$0xff]  }
 0xbaf   :  { %v3011_v23 = vmul.f32 %v7124_v2, %v8555_v30  ;;  %v2983_v1 = vadd.f32 %v5786_v29, %v2819_v38  ;;  %6505 = vmatprep.subr.bf16.mxu0 %v6849_v15 }
 0xbb0   :  { %7137 = vrcp.f32 %v2887_v5  ;;  %v3027_v35 = vadd.f32 %v2915_v13, %v9174_v6 }
 0xbb1   :  { %v7126_v48 = vpop.eup %7125  ;;  %v3254_v41 = vadd.f32 %v3011_v23, %v9174_v6  ;;  %7139 = vrcp.f32 %v2983_v1 }
 0xbb2   :  { %v7128_v59 = vpop.eup %7127  ;;  %v3037_v37 = vpack.c.bf16 %v3027_v35, %v3026_v60  ;;  %v2916_v49 = vmul.f32 %v7126_v48, %v8561_v63  ;;  %6506 = vmatpush3.bf16.msra.mxu0 %v6849_v15 }
 0xbb3   :  { %v3264_v28 = vpack.c.bf16 %v3254_v41, %v3253_v9  ;;  %v3012_v30 = vmul.f32 %v7128_v59, %v8566_v12  ;;  %6507 = vmatprep.subr.bf16.mxu0 %v6851_v11 }
 0xbb4   :  { %6454 = vmatmul.mubr.bf16.gmra.mxu0 %v3037_v37  ;;  %v3028_v7 = vadd.f32 %v2916_v49, %v9175_v36 }
 0xbb5   :  { %v7130_v25 = vpop.eup %7129  ;;  %6486 = vmatmul.mubr.bf16.gmra.mxu1 %v3264_v28  ;;  %v3255_v26 = vadd.f32 %v3012_v30, %v9175_v36 }
 0xbb6   :  { %v2917_v21 = vmul.f32 %v7130_v25, %v8570_v24  ;;  %v7132_v61 = vpop.eup %7131  ;;  %6508 = vmatpush3.bf16.msra.mxu0 %v6851_v11 }
 0xbb7   :  { %v3013_v22 = vmul.f32 %v7132_v61, %v2811_v57 }
 0xbb8   :  { %v3029_v45 = vadd.f32 %v2917_v21, %v9176_v27 }
 0xbb9   :  { %v7134_v14 = vpop.eup %7133  ;;  %v3256_v56 = vadd.f32 %v3013_v22, %v9176_v27 }
 0xbba   :  { %v3038_v33 = vpack.c.bf16 %v3029_v45, %v3028_v7  ;;  %v7136_v63 = vpop.eup %7135  ;;  %v2918_v20 = vmul.f32 %v7134_v14, %v2704_v34 }
 0xbbb   :  { %v3265_v17 = vpack.c.bf16 %v3256_v56, %v3255_v26  ;;  %v3014_v24 = vmul.f32 %v7136_v63, %v2817_v46  ;;  %v6850_v46 = vld [vmem:[#allocation12 + $0x88] sm:$0xff]  }
 0xbbc   :  { %6457 = vmatprep.mubr.bf16.mxu0 %v3038_v33  ;;  %v3030_v10 = vadd.f32 %v2918_v20, %v9177_v8  ;;  %6537 = vmatprep.subr.bf16.mxu1 %v6850_v46 }
 0xbbd   :  { %v7138_v12 = vpop.eup %7137  ;;  %6489 = vmatprep.mubr.bf16.mxu1 %v3265_v17  ;;  %v3257_v0 = vadd.f32 %v3014_v24, %v9177_v8  ;;  %6538 = vmatpush3.bf16.msra.mxu1 %v6850_v46 }
 0xbbe   :  { %v2919_v3 = vmul.f32 %v7138_v12, %v2708_v54  ;;  %v7140_v19 = vpop.eup %7139  ;;  %6539 = vmatprep.subr.bf16.mxu1 %v6852_v42 }
 0xbbf   :  { %v3015_v57 = vmul.f32 %v7140_v19, %v2821_v4 }
 0xbc0   :  { %v3031_v40 = vadd.f32 %v2919_v3, %v9178_v62 }
 0xbc1   :  { %v3258_v43 = vadd.f32 %v3015_v57, %v9178_v62  ;;  %6540 = vmatpush3.bf16.msra.mxu1 %v6852_v42 }
 0xbc2   :  { %v3039_v44 = vpack.c.bf16 %v3031_v40, %v3030_v10 }
 0xbc3   :  { %v3266_v34 = vpack.c.bf16 %v3258_v43, %v3257_v0 }
 0xbc4   :  { %6458 = vmatmul.mubr.bf16.gmra.mxu0 %v3039_v44 }
 0xbc5   :  { %6490 = vmatmul.mubr.bf16.gmra.mxu1 %v3266_v34 }
 0xc53   :  { %v6447_v53 = vpop.f32.mrf.mxu0 }
 0xc54   :  { %v3204_v13 = vmax.f32 %v6447_v53, 0.0 }
 0xc55   :  { %v6479_v51 = vpop.f32.mrf.mxu1  ;;  %v3139_v52 = vpop.f32.mrf.mxu0 }
 0xc56   :  { %v3202_v5 = vmax.f32 %v3139_v52, 0.0  ;;  %v3431_v60 = vmax.f32 %v6479_v51, 0.0 }
 0xc57   :  { %v3366_v50 = vpop.f32.mrf.mxu1  ;;  %v6448_v38 = vpop.f32.mrf.mxu0 }
 0xc58   :  { %v3205_v47 = vmax.f32 %v6448_v38, 0.0  ;;  %v3429_v1 = vmax.f32 %v3366_v50, 0.0 }
 0xc59   :  { %v6480_v55 = vpop.f32.mrf.mxu1  ;;  %v3142_v16 = vpop.f32.mrf.mxu0 }
 0xc5a   :  { %v3203_v2 = vmax.f32 %v3142_v16, 0.0  ;;  %v3432_v29 = vmax.f32 %v6480_v55, 0.0  ;;  %v3219_v6 = vpack.c.bf16 %v3205_v47, %v3204_v13 }
 0xc5b   :  { %v3369_v23 = vpop.f32.mrf.mxu1 }
 0xc5c   :  { %v3218_v48 = vpack.c.bf16 %v3203_v2, %v3202_v5  ;;  %v3430_v58 = vmax.f32 %v3369_v23, 0.0  ;;  %v3446_v9 = vpack.c.bf16 %v3432_v29, %v3431_v60 }
 0xc5e   :  { %v3445_v35 = vpack.c.bf16 %v3430_v58, %v3429_v1  ;;  %6541 = vmatprep.mubr.bf16.mxu1 %v3218_v48 }
 0xc5f   :  { %6542 = vmatmul.mubr.bf16.vlgmr.msra.gmra.mxu1 %v3219_v6 }
 0xc60   :  { %6509 = vmatprep.mubr.bf16.mxu0 %v3445_v35  ;;  %v8604_v35 = vld [vmem:[#allocation8] sm:$0xff]  }
 0xc61   :  { %6510 = vmatmul.mubr.bf16.vlgmr.msra.gmra.mxu0 %v3446_v9 }
 0xc64   :  { %v6451_v41 = vpop.f32.mrf.mxu0 }
 0xc65   :  { %v6483_v59 = vpop.f32.mrf.mxu1  ;;  %v3208_v7 = vmax.f32 %v6451_v41, 0.0 }
 0xc66   :  { %v3155_v37 = vpop.f32.mrf.mxu0  ;;  %v3435_v56 = vmax.f32 %v6483_v59, 0.0 }
 0xc67   :  { %v3382_v28 = vpop.f32.mrf.mxu1  ;;  %v3206_v61 = vmax.f32 %v3155_v37, 0.0 }
 0xc68   :  { %v6452_v49 = vpop.f32.mrf.mxu0  ;;  %v3433_v22 = vmax.f32 %v3382_v28, 0.0 }
 0xc69   :  { %v3209_v25 = vmax.f32 %v6452_v49, 0.0  ;;  %v6484_v30 = vpop.f32.mrf.mxu1 }
 0xc6a   :  { %v3158_v21 = vpop.f32.mrf.mxu0  ;;  %v3436_v27 = vmax.f32 %v6484_v30, 0.0 }
 0xc6b   :  { %v3207_v36 = vmax.f32 %v3158_v21, 0.0  ;;  %v3385_v45 = vpop.f32.mrf.mxu1  ;;  %v3221_v33 = vpack.c.bf16 %v3209_v25, %v3208_v7 }
 0xc6c   :  { %v3434_v26 = vmax.f32 %v3385_v45, 0.0  ;;  %v3448_v20 = vpack.c.bf16 %v3436_v27, %v3435_v56  ;;  %v3633_v45 = vld [vmem:[#allocation14 + $0x10] sm:$0xff] }
 0xc6d   :  { %v3220_v14 = vpack.c.bf16 %v3207_v36, %v3206_v61 }
 0xc6e   :  { %v3447_v63 = vpack.c.bf16 %v3434_v26, %v3433_v22  ;;  %v3631_v26 = vld [vmem:[#allocation14] sm:$0xff] }
 0xc6f   :  { %6545 = vmatprep.mubr.bf16.mxu1 %v3220_v14 }
 0xc70   :  { %6546 = vmatmul.mubr.bf16.gmra.mxu1 %v3221_v33  ;;  %6513 = vmatprep.mubr.bf16.mxu0 %v3447_v63 }
 0xc71   :  { %6514 = vmatmul.mubr.bf16.gmra.mxu0 %v3448_v20 }
 0xc74   :  { %v6455_v17 = vpop.f32.mrf.mxu0 }
 0xc75   :  { %v6487_v12 = vpop.f32.mrf.mxu1  ;;  %v3212_v0 = vmax.f32 %v6455_v17, 0.0 }
 0xc76   :  { %v3171_v54 = vpop.f32.mrf.mxu0  ;;  %v3439_v34 = vmax.f32 %v6487_v12, 0.0  ;;  %v3634_v12 = vld [vmem:[#allocation14 + $0x18] sm:$0xff] }
 0xc77   :  { %v3398_v24 = vpop.f32.mrf.mxu1  ;;  %v3210_v10 = vmax.f32 %v3171_v54, 0.0 }
 0xc78   :  { %v6456_v3 = vpop.f32.mrf.mxu0  ;;  %v3437_v43 = vmax.f32 %v3398_v24, 0.0 }
 0xc79   :  { %v6488_v19 = vpop.f32.mrf.mxu1  ;;  %v3213_v4 = vmax.f32 %v6456_v3, 0.0 }
 0xc7a   :  { %v3174_v8 = vpop.f32.mrf.mxu0  ;;  %v3440_v57 = vmax.f32 %v6488_v19, 0.0 }
 0xc7b   :  { %v3211_v62 = vmax.f32 %v3174_v8, 0.0  ;;  %v3401_v40 = vpop.f32.mrf.mxu1  ;;  %v3223_v31 = vpack.c.bf16 %v3213_v4, %v3212_v0 }
 0xc7c   :  { %v3438_v44 = vmax.f32 %v3401_v40, 0.0  ;;  %v3450_v46 = vpack.c.bf16 %v3440_v57, %v3439_v34  ;;  %v3632_v57 = vld [vmem:[#allocation14 + $0x8] sm:$0xff] }
 0xc7d   :  { %v3222_v32 = vpack.c.bf16 %v3211_v62, %v3210_v10 }
 0xc7e   :  { %v3449_v15 = vpack.c.bf16 %v3438_v44, %v3437_v43 }
 0xc7f   :  { %6549 = vmatprep.mubr.bf16.mxu1 %v3222_v32 }
 0xc80   :  { %6517 = vmatprep.mubr.bf16.mxu0 %v3449_v15  ;;  %6550 = vmatmul.mubr.bf16.gmra.mxu1 %v3223_v31 }
 0xc81   :  { %6518 = vmatmul.mubr.bf16.gmra.mxu0 %v3450_v46 }
 0xc84   :  { %v6459_v11 = vpop.f32.mrf.mxu0 }
 0xc85   :  { %v6491_v42 = vpop.f32.mrf.mxu1  ;;  %v3216_v5 = vmax.f32 %v6459_v11, 0.0 }
 0xc86   :  { %v3187_v53 = vpop.f32.mrf.mxu0  ;;  %v3443_v48 = vmax.f32 %v6491_v42, 0.0 }
 0xc87   :  { %v3414_v51 = vpop.f32.mrf.mxu1  ;;  %v3214_v55 = vmax.f32 %v3187_v53, 0.0 }
 0xc88   :  { %v6460_v52 = vpop.f32.mrf.mxu0  ;;  %v3441_v29 = vmax.f32 %v3414_v51, 0.0 }
 0xc89   :  { %v3217_v50 = vmax.f32 %v6460_v52, 0.0  ;;  %v6492_v38 = vpop.f32.mrf.mxu1 }
 0xc8a   :  { %v3190_v47 = vpop.f32.mrf.mxu0  ;;  %v3444_v2 = vmax.f32 %v6492_v38, 0.0 }
 0xc8b   :  { %v3215_v16 = vmax.f32 %v3190_v47, 0.0  ;;  %v3417_v13 = vpop.f32.mrf.mxu1  ;;  %v3225_v58 = vpack.c.bf16 %v3217_v50, %v3216_v5  ;;  %v3637_v50 = vld [vmem:[#allocation14 + $0x30] sm:$0xff] }
 0xc8c   :  { %v3442_v1 = vmax.f32 %v3417_v13, 0.0  ;;  %v3452_v6 = vpack.c.bf16 %v3444_v2, %v3443_v48  ;;  %v3638_v48 = vld [vmem:[#allocation14 + $0x38] sm:$0xff] }
 0xc8d   :  { %v3224_v23 = vpack.c.bf16 %v3215_v16, %v3214_v55  ;;  %v3635_v16 = vld [vmem:[#allocation14 + $0x20] sm:$0xff] }
 0xc8e   :  { %v3451_v60 = vpack.c.bf16 %v3442_v1, %v3441_v29 }
 0xc8f   :  { %6553 = vmatprep.mubr.bf16.mxu1 %v3224_v23 }
 0xc90   :  { %6554 = vmatmul.mubr.bf16.gmra.mxu1 %v3225_v58  ;;  %6521 = vmatprep.mubr.bf16.mxu0 %v3451_v60 }
 0xc91   :  { %4168 = vmatprep.mubr.bf16.mxu1 %v9170_v39  ;;  %6522 = vmatmul.mubr.bf16.gmra.mxu0 %v3452_v6 }
 0xc92   :  { %6573 = vmatprep.mubr.bf16.mxu0 %v8604_v35 }
 0xd1f   :  { %v6543_v27 = vpop.f32.mrf.mxu1 }
 0xd21   :  { %v6511_v9 = vpop.f32.mrf.mxu0  ;;  %v3777_v56 = vpop.f32.mrf.mxu1 }
 0xd22   :  { %v3617_v41 = vmin.f32 %v6511_v9, 10.0 }
 0xd23   :  { %v3552_v59 = vpop.f32.mrf.mxu0  ;;  %v6544_v10 = vpop.f32.mrf.mxu1 }
 0xd24   :  { %v3651_v37 = vmul.f32 1.442695, %v3617_v41  ;;  %v3615_v28 = vmin.f32 %v3552_v59, 10.0 }
 0xd25   :  { %v6512_v49 = vpop.f32.mrf.mxu0  ;;  %v3780_v11 = vpop.f32.mrf.mxu1 }
 0xd26   :  { %7141 = vpow2.f32 %v3651_v37  ;;  %v3647_v25 = vmul.f32 1.442695, %v3615_v28  ;;  %v3618_v30 = vmin.f32 %v6512_v49, 10.0  ;;  %v3636_v28 = vld [vmem:[#allocation14 + $0x28] sm:$0xff] }
 0xd27   :  { %v3555_v21 = vpop.f32.mrf.mxu0 }
 0xd28   :  { %7143 = vpow2.f32 %v3647_v25  ;;  %v3653_v61 = vmul.f32 1.442695, %v3618_v30  ;;  %v3616_v36 = vmin.f32 %v3555_v21, 10.0 }
 0xd2a   :  { %7145 = vpow2.f32 %v3653_v61  ;;  %v3649_v7 = vmul.f32 1.442695, %v3616_v36 }
 0xd2c   :  { %7147 = vpow2.f32 %v3649_v7 }
 0xd30   :  { %v6547_v51 = vpop.f32.mrf.mxu1 }
 0xd31   :  { %v6515_v22 = vpop.f32.mrf.mxu0 }
 0xd32   :  { %v3621_v33 = vmin.f32 %v6515_v22, 10.0  ;;  %v3793_v5 = vpop.f32.mrf.mxu1 }
 0xd33   :  { %v7142_v14 = vpop.eup %7141  ;;  %v3568_v20 = vpop.f32.mrf.mxu0 }
 0xd34   :  { %v3681_v63 = vmul.f32 %v7142_v14, %v3633_v45  ;;  %v3659_v54 = vmul.f32 1.442695, %v3621_v33  ;;  %v3619_v24 = vmin.f32 %v3568_v20, 10.0  ;;  %v6548_v37 = vpop.f32.mrf.mxu1  ;;  %v3639_v20 = vld [vmem:[#allocation14 + $0x40] sm:$0xff] }
 0xd35   :  { %v7144_v17 = vpop.eup %7143  ;;  %v6516_v4 = vpop.f32.mrf.mxu0 }
 0xd36   :  { %v8607_v3 = vadd.f32 %v6543_v27, %v3681_v63  ;;  %v3679_v19 = vmul.f32 %v7144_v17, %v3631_v26  ;;  %7149 = vpow2.f32 %v3659_v54  ;;  %v3655_v62 = vmul.f32 1.442695, %v3619_v24  ;;  %v3796_v45 = vpop.f32.mrf.mxu1  ;;  %v3641_v26 = vld [vmem:[#allocation14 + $0x50] sm:$0xff] }
 0xd37   :  { %v7146_v8 = vpop.eup %7145  ;;  %v3622_v40 = vmin.f32 %v6516_v4, 10.0  ;;  %v3571_v44 = vpop.f32.mrf.mxu0 }
 0xd38   :  { %3842 = vst [vmem:[#allocation17 + $0x10] sm:$0xff] %v8607_v3  ;;  %v8610_v0 = vadd.f32 %v3777_v56, %v3679_v19  ;;  %v3682_v43 = vmul.f32 %v7146_v8, %v3634_v12  ;;  %7151 = vpow2.f32 %v3655_v62  ;;  %v3620_v31 = vmin.f32 %v3571_v44, 10.0  ;;  %v3642_v8 = vld [vmem:[#allocation14 + $0x58] sm:$0xff] }
 0xd39   :  { %v7148_v34 = vpop.eup %7147  ;;  %v3661_v32 = vmul.f32 1.442695, %v3622_v40 }
 0xd3a   :  { %3840 = vst [vmem:[#allocation17] sm:$0xff] %v8610_v0  ;;  %v8613_v15 = vadd.f32 %v6544_v10, %v3682_v43  ;;  %v3680_v46 = vmul.f32 %v7148_v34, %v3632_v57  ;;  %v3657_v42 = vmul.f32 1.442695, %v3620_v31  ;;  %v3640_v34 = vld [vmem:[#allocation14 + $0x48] sm:$0xff] }
 0xd3b   :  { %7153 = vpow2.f32 %v3661_v32 }
 0xd3c   :  { %3843 = vst [vmem:[#allocation17 + $0x18] sm:$0xff] %v8613_v15  ;;  %v8616_v53 = vadd.f32 %v3780_v11, %v3680_v46  ;;  %7155 = vpow2.f32 %v3657_v42 }
 0xd3e   :  { %3841 = vst [vmem:[#allocation17 + $0x8] sm:$0xff] %v8616_v53 }
 0xd40   :  { %v6551_v14 = vpop.f32.mrf.mxu1 }
 0xd41   :  { %v6519_v52 = vpop.f32.mrf.mxu0 }
 0xd42   :  { %v3625_v38 = vmin.f32 %v6519_v52, 10.0  ;;  %v3809_v17 = vpop.f32.mrf.mxu1 }
 0xd43   :  { %v3584_v47 = vpop.f32.mrf.mxu0  ;;  %v7150_v55 = vpop.eup %7149 }
 0xd44   :  { %v3667_v2 = vmul.f32 1.442695, %v3625_v38  ;;  %v3623_v13 = vmin.f32 %v3584_v47, 10.0  ;;  %v3685_v29 = vmul.f32 %v7150_v55, %v3637_v50  ;;  %v6552_v44 = vpop.f32.mrf.mxu1 }
 0xd45   :  { %v6520_v23 = vpop.f32.mrf.mxu0  ;;  %v7152_v1 = vpop.eup %7151 }
 0xd46   :  { %7157 = vpow2.f32 %v3667_v2  ;;  %v3663_v58 = vmul.f32 1.442695, %v3623_v13  ;;  %v3626_v60 = vmin.f32 %v6520_v23, 10.0  ;;  %v8619_v6 = vadd.f32 %v6547_v51, %v3685_v29  ;;  %v3812_v55 = vpop.f32.mrf.mxu1  ;;  %v3645_v2 = vld [vmem:[#allocation14 + $0x70] sm:$0xff]  ;;  %v3643_v29 = vld [vmem:[#allocation14 + $0x60] sm:$0xff] }
 0xd47   :  { %v3683_v9 = vmul.f32 %v7152_v1, %v3635_v16  ;;  %v3587_v41 = vpop.f32.mrf.mxu0 }
 0xd48   :  { %v7154_v59 = vpop.eup %7153  ;;  %7159 = vpow2.f32 %v3663_v58  ;;  %v3669_v49 = vmul.f32 1.442695, %v3626_v60  ;;  %v3624_v25 = vmin.f32 %v3587_v41, 10.0  ;;  %3846 = vst [vmem:[#allocation17 + $0x30] sm:$0xff] %v8619_v6 }
 0xd49   :  { %v8622_v30 = vadd.f32 %v3793_v5, %v3683_v9  ;;  %v3686_v21 = vmul.f32 %v7154_v59, %v3638_v48  ;;  %v7156_v61 = vpop.eup %7155  ;;  %v3646_v9 = vld [vmem:[#allocation14 + $0x78] sm:$0xff]  ;;  %v3644_v59 = vld [vmem:[#allocation14 + $0x68] sm:$0xff] }
 0xd4a   :  { %7161 = vpow2.f32 %v3669_v49  ;;  %v3665_v36 = vmul.f32 1.442695, %v3624_v25  ;;  %v3684_v27 = vmul.f32 %v7156_v61, %v3636_v28 }
 0xd4b   :  { %3844 = vst [vmem:[#allocation17 + $0x20] sm:$0xff] %v8622_v30  ;;  %v8625_v7 = vadd.f32 %v6548_v37, %v3686_v21 }
 0xd4c   :  { %7163 = vpow2.f32 %v3665_v36  ;;  %v8628_v22 = vadd.f32 %v3796_v45, %v3684_v27 }
 0xd4d   :  { %3847 = vst [vmem:[#allocation17 + $0x38] sm:$0xff] %v8625_v7 }
 0xd4e   :  { %3845 = vst [vmem:[#allocation17 + $0x28] sm:$0xff] %v8628_v22 }
 0xd50   :  { %v6555_v5 = vpop.f32.mrf.mxu1 }
 0xd51   :  { %v6523_v56 = vpop.f32.mrf.mxu0 }
 0xd52   :  { %v3629_v33 = vmin.f32 %v6523_v56, 10.0  ;;  %v3825_v23 = vpop.f32.mrf.mxu1 }
 0xd53   :  { %v7158_v63 = vpop.eup %7157  ;;  %v3600_v12 = vpop.f32.mrf.mxu0 }
 0xd54   :  { %v3689_v54 = vmul.f32 %v7158_v63, %v3641_v26  ;;  %v3675_v24 = vmul.f32 1.442695, %v3629_v33  ;;  %v3627_v19 = vmin.f32 %v3600_v12, 10.0  ;;  %v6556_v41 = vpop.f32.mrf.mxu1  ;;  %v3859_v33 = vpack.c.bf16 %v8625_v7, %v8619_v6  ;;  %v7333_v12 = vld [vmem:[#allocation8 + $0x8] sm:$0xff]  }
 0xd55   :  { %v7160_v4 = vpop.eup %7159  ;;  %v6524_v10 = vpop.f32.mrf.mxu0  ;;  %v3858_v63 = vpack.c.bf16 %v8628_v22, %v8622_v30 }
 0xd56   :  { %v8631_v57 = vadd.f32 %v6551_v14, %v3689_v54  ;;  %v3687_v62 = vmul.f32 %v7160_v4, %v3639_v20  ;;  %7165 = vpow2.f32 %v3675_v24  ;;  %v3671_v40 = vmul.f32 1.442695, %v3627_v19  ;;  %v3828_v36 = vpop.f32.mrf.mxu1  ;;  %v7334_v54 = vld [vmem:[#allocation8 + $0x10] sm:$0xff]   ;;  %v7335_v24 = vld [vmem:[#allocation8 + $0x18] sm:$0xff]   ;;  %v7336_v19 = vld [vmem:[#allocation8 + $0x20] sm:$0xff]  }
 0xd57   :  { %v7162_v43 = vpop.eup %7161  ;;  %v3630_v32 = vmin.f32 %v6524_v10, 10.0  ;;  %v3603_v31 = vpop.f32.mrf.mxu0  ;;  %v3857_v20 = vpack.c.bf16 %v8613_v15, %v8607_v3  ;;  %v7337_v4 = vld [vmem:[#allocation8 + $0x28] sm:$0xff]   ;;  %v7339_v10 = vld [vmem:[#allocation8 + $0x38] sm:$0xff]  }
 0xd58   :  { %3850 = vst [vmem:[#allocation17 + $0x50] sm:$0xff] %v8631_v57  ;;  %v8634_v46 = vadd.f32 %v3809_v17, %v3687_v62  ;;  %v3690_v11 = vmul.f32 %v7162_v43, %v3642_v8  ;;  %7167 = vpow2.f32 %v3671_v40  ;;  %v3628_v42 = vmin.f32 %v3603_v31, 10.0  ;;  %v7338_v8 = vld [vmem:[#allocation8 + $0x30] sm:$0xff]  }
 0xd59   :  { %v7164_v51 = vpop.eup %7163  ;;  %v3677_v52 = vmul.f32 1.442695, %v3630_v32  ;;  %v3856_v17 = vpack.c.bf16 %v8616_v53, %v8610_v0 }
 0xd5a   :  { %3848 = vst [vmem:[#allocation17 + $0x40] sm:$0xff] %v8634_v46  ;;  %v8637_v50 = vadd.f32 %v6552_v44, %v3690_v11  ;;  %v3688_v38 = vmul.f32 %v7164_v51, %v3640_v34  ;;  %v3673_v47 = vmul.f32 1.442695, %v3628_v42 }
 0xd5b   :  { %7169 = vpow2.f32 %v3677_v52 }
 0xd5c   :  { %3851 = vst [vmem:[#allocation17 + $0x58] sm:$0xff] %v8637_v50  ;;  %v8640_v16 = vadd.f32 %v3812_v55, %v3688_v38  ;;  %7171 = vpow2.f32 %v3673_v47  ;;  %v3861_v26 = vpack.c.bf16 %v8637_v50, %v8631_v57 }
 0xd5e   :  { %3849 = vst [vmem:[#allocation17 + $0x48] sm:$0xff] %v8640_v16  ;;  %v3860_v56 = vpack.c.bf16 %v8640_v16, %v8634_v46 }
 0xd63   :  { %v7166_v13 = vpop.eup %7165 }
 0xd64   :  { %v3693_v1 = vmul.f32 %v7166_v13, %v3645_v2 }
 0xd65   :  { %v7168_v48 = vpop.eup %7167 }
 0xd66   :  { %v8643_v58 = vadd.f32 %v6555_v5, %v3693_v1  ;;  %v3691_v60 = vmul.f32 %v7168_v48, %v3643_v29 }
 0xd68   :  { %v7170_v37 = vpop.eup %7169  ;;  %3854 = vst [vmem:[#allocation17 + $0x70] sm:$0xff] %v8643_v58  ;;  %v8646_v28 = vadd.f32 %v3825_v23, %v3691_v60 }
 0xd69   :  { %v7172_v49 = vpop.eup %7171  ;;  %v3694_v25 = vmul.f32 %v7170_v37, %v3646_v9 }
 0xd6a   :  { %3852 = vst [vmem:[#allocation17 + $0x60] sm:$0xff] %v8646_v28  ;;  %v3692_v21 = vmul.f32 %v7172_v49, %v3644_v59 }
 0xd6b   :  { %v8649_v61 = vadd.f32 %v6556_v41, %v3694_v25 }
 0xd6c   :  { %v8651_v27 = vadd.f32 %v3828_v36, %v3692_v21 }
 0xd6d   :  { %3855 = vst [vmem:[#allocation17 + $0x78] sm:$0xff] %v8649_v61  ;;  %v3863_v45 = vpack.c.bf16 %v8649_v61, %v8643_v58 }
 0xd6e   :  { %3853 = vst [vmem:[#allocation17 + $0x68] sm:$0xff] %v8651_v27  ;;  %v3862_v14 = vpack.c.bf16 %v8651_v27, %v8646_v28 }
 0xd6f   :  { %6557 = vmatprep.subr.bf16.mxu0 %v3863_v45 }
 0xd70   :  { %6558 = vmatpush3.bf16.msra.mxu0 %v3863_v45 }
 0xd71   :  { %6559 = vmatprep.subr.bf16.mxu0 %v3862_v14 }
 0xd74   :  { %6560 = vmatpush3.bf16.msra.mxu0 %v3862_v14 }
 0xd75   :  { %6561 = vmatprep.subr.bf16.mxu0 %v3861_v26 }
 0xd78   :  { %6562 = vmatpush3.bf16.msra.mxu0 %v3861_v26 }
 0xd79   :  { %6563 = vmatprep.subr.bf16.mxu0 %v3860_v56 }
 0xd7c   :  { %6564 = vmatpush3.bf16.msra.mxu0 %v3860_v56 }
 0xd7d   :  { %6565 = vmatprep.subr.bf16.mxu0 %v3859_v33 }
 0xd80   :  { %6566 = vmatpush3.bf16.msra.mxu0 %v3859_v33 }
 0xd81   :  { %6567 = vmatprep.subr.bf16.mxu0 %v3858_v63 }
 0xd84   :  { %6568 = vmatpush3.bf16.msra.mxu0 %v3858_v63 }
 0xd85   :  { %6569 = vmatprep.subr.bf16.mxu0 %v3857_v20 }
 0xd88   :  { %6570 = vmatpush3.bf16.msra.mxu0 %v3857_v20 }
 0xd89   :  { %6571 = vmatprep.subr.bf16.mxu0 %v3856_v17 }
 0xd8c   :  { %6572 = vmatpush3.bf16.msra.mxu0 %v3856_v17 }
 0xd8f   :  { %6574 = vmatmul.mubr.bf16.vlgmr.msra.gmra.mxu0 %v7333_v12 }
 0xd90   :  { %6577 = vmatprep.mubr.bf16.mxu0 %v7334_v54 }
 0xd97   :  { %6578 = vmatmul.mubr.bf16.gmra.mxu0 %v7335_v24 }
 0xd98   :  { %6581 = vmatprep.mubr.bf16.mxu0 %v7336_v19 }
 0xd9f   :  { %6582 = vmatmul.mubr.bf16.gmra.mxu0 %v7337_v4 }
 0xda0   :  { %6585 = vmatprep.mubr.bf16.mxu0 %v7338_v8 }
 0xda7   :  { %6586 = vmatmul.mubr.bf16.gmra.mxu0 %v7339_v10 }
 0xe4f   :  { %v6575_v62 = vpop.f32.mrf.mxu0 }
 0xe50   :  { %v3963_v52 = vmax.f32 %v6575_v62, 0.0 }
 0xe51   :  { %v3898_v40 = vpop.f32.mrf.mxu0 }
 0xe52   :  { %v3961_v55 = vmax.f32 %v3898_v40, 0.0  ;;  %v8671_v60 = vadd.f32 1e-07, %v3963_v52 }
 0xe53   :  { %v6576_v43 = vpop.f32.mrf.mxu0 }
 0xe54   :  { %v3964_v2 = vmax.f32 %v6576_v43, 0.0  ;;  %v8675_v37 = vadd.f32 1e-07, %v3961_v55 }
 0xe55   :  { %v3901_v44 = vpop.f32.mrf.mxu0 }
 0xe56   :  { %v3962_v1 = vmax.f32 %v3901_v44, 0.0  ;;  %v8679_v36 = vadd.f32 1e-07, %v3964_v2 }
 0xe57   :  { %v6579_v34 = vpop.f32.mrf.mxu0 }
 0xe58   :  { %v3967_v38 = vmax.f32 %v6579_v34, 0.0  ;;  %v8685_v56 = vadd.f32 1e-07, %v3962_v1 }
 0xe59   :  { %v3914_v32 = vpop.f32.mrf.mxu0 }
 0xe5a   :  { %v3965_v5 = vmax.f32 %v3914_v32, 0.0  ;;  %v8673_v9 = vadd.f32 1e-07, %v3967_v38 }
 0xe5b   :  { %v6580_v31 = vpop.f32.mrf.mxu0 }
 0xe5c   :  { %v3968_v13 = vmax.f32 %v6580_v31, 0.0  ;;  %v8677_v49 = vadd.f32 1e-07, %v3965_v5  ;;  %v3996_v20 = vmax.f32 %v8671_v60, %v8673_v9  ;;  %v4017_v17 = vmin.f32 %v8671_v60, %v8673_v9 }
 0xe5d   :  { %v3917_v11 = vpop.f32.mrf.mxu0 }
 0xe5e   :  { %v3966_v29 = vmax.f32 %v3917_v11, 0.0  ;;  %v8681_v45 = vadd.f32 1e-07, %v3968_v13  ;;  %v3994_v19 = vmax.f32 %v8675_v37, %v8677_v49  ;;  %v4015_v62 = vmin.f32 %v8675_v37, %v8677_v49 }
 0xe5f   :  { %v6583_v42 = vpop.f32.mrf.mxu0 }
 0xe60   :  { %v3971_v48 = vmax.f32 %v6583_v42, 0.0  ;;  %v8683_v14 = vadd.f32 1e-07, %v3966_v29  ;;  %v3997_v40 = vmax.f32 %v8679_v36, %v8681_v45  ;;  %v4018_v43 = vmin.f32 %v8679_v36, %v8681_v45 }
 0xe61   :  { %v3930_v51 = vpop.f32.mrf.mxu0 }
 0xe62   :  { %v3969_v25 = vmax.f32 %v3930_v51, 0.0  ;;  %v8687_v33 = vadd.f32 1e-07, %v3971_v48  ;;  %v3995_v44 = vmax.f32 %v8685_v56, %v8683_v14  ;;  %v4016_v32 = vmin.f32 %v8685_v56, %v8683_v14 }
 0xe63   :  { %v6584_v47 = vpop.f32.mrf.mxu0 }
 0xe64   :  { %v3972_v41 = vmax.f32 %v6584_v47, 0.0  ;;  %v8697_v4 = vadd.f32 1e-07, %v3969_v25  ;;  %v4000_v31 = vmax.f32 %v3996_v20, %v8687_v33  ;;  %v4021_v55 = vmin.f32 %v4017_v17, %v8687_v33 }
 0xe65   :  { %v3933_v23 = vpop.f32.mrf.mxu0 }
 0xe66   :  { %v3970_v21 = vmax.f32 %v3933_v23, 0.0  ;;  %v8693_v12 = vadd.f32 1e-07, %v3972_v41  ;;  %v3998_v5 = vmax.f32 %v3994_v19, %v8697_v4  ;;  %v4019_v2 = vmin.f32 %v4015_v62, %v8697_v4 }
 0xe67   :  { %v6587_v59 = vpop.f32.mrf.mxu0 }
 0xe68   :  { %v3975_v63 = vmax.f32 %v6587_v59, 0.0  ;;  %v8699_v8 = vadd.f32 1e-07, %v3970_v21  ;;  %v4001_v51 = vmax.f32 %v3997_v40, %v8693_v12  ;;  %v4022_v52 = vmin.f32 %v4018_v43, %v8693_v12 }
 0xe69   :  { %v3946_v26 = vpop.f32.mrf.mxu0 }
 0xe6a   :  { %v3973_v54 = vmax.f32 %v3946_v26, 0.0  ;;  %v8712_v11 = vadd.f32 1e-07, %v3975_v63  ;;  %v3999_v13 = vmax.f32 %v3995_v44, %v8699_v8  ;;  %v4020_v29 = vmin.f32 %v4016_v32, %v8699_v8 }
 0xe6b   :  { %v6588_v24 = vpop.f32.mrf.mxu0 }
 0xe6c   :  { %v3976_v10 = vmax.f32 %v6588_v24, 0.0  ;;  %v8718_v38 = vadd.f32 1e-07, %v3973_v54  ;;  %v4004_v41 = vmax.f32 %v4000_v31, %v8712_v11  ;;  %v4025_v59 = vmin.f32 %v4021_v55, %v8712_v11 }
 0xe6d   :  { %v3949_v34 = vpop.f32.mrf.mxu0 }
 0xe6e   :  { %v8714_v42 = vadd.f32 1e-07, %v3976_v10  ;;  %v3974_v47 = vmax.f32 %v3949_v34, 0.0  ;;  %v4002_v25 = vmax.f32 %v3998_v5, %v8718_v38  ;;  %v4023_v21 = vmin.f32 %v4019_v2, %v8718_v38 }
 0xe6f   :  { %v4036_v2 = vstv %s5819_s14 }
 0xe70   :  { %v4005_v23 = vmax.f32 %v4001_v51, %v8714_v42  ;;  %v4026_v1 = vmin.f32 %v4022_v52, %v8714_v42  ;;  %v8727_v48 = vadd.f32 1e-07, %v3974_v47 }
 0xe72   :  { %v4003_v26 = vmax.f32 %v3999_v13, %v8727_v48  ;;  %v4024_v63 = vmin.f32 %v4020_v29, %v8727_v48  ;;  %v4007_v20 = vmax.f32 %v4004_v41, %v4005_v23  ;;  %v4028_v17 = vmin.f32 %v4025_v59, %v4026_v1 }
 0xe73   :  { %v4054_v23 = vmul.f32 %v4036_v2, %v8712_v11  ;;  %v4052_v1 = vmul.f32 %v4036_v2, %v8718_v38  ;;  %v4055_v41 = vmul.f32 %v4036_v2, %v8714_v42 }
 0xe74   :  { %v4006_v54 = vmax.f32 %v4002_v25, %v4003_v26  ;;  %v4027_v24 = vmin.f32 %v4023_v21, %v4024_v63  ;;  %v4053_v25 = vmul.f32 %v4036_v2, %v8727_v48  ;;  %v4050_v21 = vmul.f32 %v4036_v2, %v8687_v33 }
 0xe75   :  { %v4051_v26 = vmul.f32 %v4036_v2, %v8693_v12 }
 0xe76   :  { %v4008_v19 = vmax.f32 %v4006_v54, %v4007_v20  ;;  %v4029_v10 = vmin.f32 %v4027_v24, %v4028_v17  ;;  %v4048_v24 = vmul.f32 %v4036_v2, %v8697_v4 }
 0xe78   :  { %v4009_v62 = vrot.slane %v4008_v19, 4  ;;  %v4030_v40 = vrot.slane %v4029_v10, 4 }
 0xe7a   :  { %v4010_v43 = vmax.f32 %v4008_v19, %v4009_v62  ;;  %v4031_v44 = vmin.f32 %v4029_v10, %v4030_v40  ;;  %v4049_v62 = vmul.f32 %v4036_v2, %v8699_v8 }
 0xe7c   :  { %v4011_v34 = vrot.slane %v4010_v43, 2  ;;  %v4032_v32 = vrot.slane %v4031_v44, 2 }
 0xe7e   :  { %v4012_v31 = vmax.f32 %v4010_v43, %v4011_v34  ;;  %v4033_v51 = vmin.f32 %v4031_v44, %v4032_v32 }
 0xe80   :  { %v4013_v52 = vrot.slane %v4012_v31, 1  ;;  %v4034_v47 = vrot.slane %v4033_v51, 1 }
 0xe82   :  { %v4014_v55 = vmax.f32 %v4012_v31, %v4013_v52  ;;  %v4035_v5 = vmin.f32 %v4033_v51, %v4034_v47  ;;  %v4046_v52 = vmul.f32 %v4036_v2, %v8673_v9 }
 0xe84   :  { %v4037_v13 = vmul.f32 %v4036_v2, %v4014_v55  ;;  %v4038_v29 = vmul.f32 %v4036_v2, %v4035_v5  ;;  %v4047_v55 = vmul.f32 %v4036_v2, %v8681_v45 }
 0xe86   :  { %v8738_v59 = vmax.f32 %v4037_v13, %v4038_v29 }
 0xe88   :  { %v4069_v63 = vsub.f32 %v4053_v25, %v8738_v59  ;;  %v4070_v20 = vsub.f32 %v4054_v23, %v8738_v59  ;;  %v4071_v17 = vsub.f32 %v4055_v41, %v8738_v59  ;;  %v4068_v54 = vsub.f32 %v4052_v1, %v8738_v59 }
 0xe89   :  { %v4066_v19 = vsub.f32 %v4050_v21, %v8738_v59  ;;  %v4067_v10 = vsub.f32 %v4051_v26, %v8738_v59  ;;  %v4064_v32 = vsub.f32 %v4048_v24, %v8738_v59  ;;  %v4065_v51 = vsub.f32 %v4049_v62, %v8738_v59 }
 0xe8a   :  { %v4098_v40 = vmul.f32 1.442695, %v4069_v63  ;;  %v4100_v43 = vmul.f32 1.442695, %v4070_v20  ;;  %v4102_v44 = vmul.f32 1.442695, %v4071_v17  ;;  %v4062_v13 = vsub.f32 %v4046_v52, %v8738_v59 }
 0xe8b   :  { %v4096_v34 = vmul.f32 1.442695, %v4068_v54  ;;  %v4092_v31 = vmul.f32 1.442695, %v4066_v19  ;;  %v4094_v47 = vmul.f32 1.442695, %v4067_v10  ;;  %v4063_v23 = vsub.f32 %v4047_v55, %v8738_v59 }
 0xe8c   :  { %7173 = vpow2.f32 %v4098_v40  ;;  %v4088_v5 = vmul.f32 1.442695, %v4064_v32  ;;  %v4090_v29 = vmul.f32 1.442695, %v4065_v51  ;;  %v4044_v1 = vmul.f32 %v4036_v2, %v8677_v49 }
 0xe8d   :  { %7175 = vpow2.f32 %v4100_v43  ;;  %v4045_v41 = vmul.f32 %v4036_v2, %v8683_v14  ;;  %v4084_v25 = vmul.f32 1.442695, %v4062_v13  ;;  %v4086_v26 = vmul.f32 1.442695, %v4063_v23 }
 0xe8e   :  { %7177 = vpow2.f32 %v4102_v44  ;;  %v4060_v21 = vsub.f32 %v4044_v1, %v8738_v59  ;;  %v4042_v20 = vmul.f32 %v4036_v2, %v8671_v60  ;;  %v4043_v17 = vmul.f32 %v4036_v2, %v8679_v36 }
 0xe8f   :  { %7179 = vpow2.f32 %v4096_v34  ;;  %v4061_v63 = vsub.f32 %v4045_v41, %v8738_v59  ;;  %v4040_v19 = vmul.f32 %v4036_v2, %v8675_v37  ;;  %v4041_v43 = vmul.f32 %v4036_v2, %v8685_v56 }
 0xe90   :  { %7181 = vpow2.f32 %v4092_v31  ;;  %v4080_v54 = vmul.f32 1.442695, %v4060_v21  ;;  %v4058_v24 = vsub.f32 %v4042_v20, %v8738_v59  ;;  %v4059_v62 = vsub.f32 %v4043_v17, %v8738_v59 }
 0xe91   :  { %7183 = vpow2.f32 %v4094_v47  ;;  %v4082_v10 = vmul.f32 1.442695, %v4061_v63  ;;  %v4056_v34 = vsub.f32 %v4040_v19, %v8738_v59  ;;  %v4057_v52 = vsub.f32 %v4041_v43, %v8738_v59 }
 0xe92   :  { %7185 = vpow2.f32 %v4088_v5  ;;  %v4076_v51 = vmul.f32 1.442695, %v4058_v24  ;;  %v4078_v13 = vmul.f32 1.442695, %v4059_v62 }
 0xe93   :  { %7187 = vpow2.f32 %v4090_v29 }
 0xe94   :  { %7189 = vpow2.f32 %v4084_v25  ;;  %v4072_v25 = vmul.f32 1.442695, %v4056_v34 }
 0xe95   :  { %7191 = vpow2.f32 %v4086_v26 }
 0xe96   :  { %7193 = vpow2.f32 %v4080_v54 }
 0xe97   :  { %7195 = vpow2.f32 %v4082_v10 }
 0xe98   :  { %7197 = vpow2.f32 %v4076_v51 }
 0xe99   :  { %v7174_v40 = vpop.eup %7173  ;;  %7199 = vpow2.f32 %v4078_v13 }
 0xe9a   :  { %v7176_v44 = vpop.eup %7175  ;;  %v4125_v5 = vmul.f32 %v7174_v40, %v8727_v48  ;;  %7201 = vpow2.f32 %v4072_v25  ;;  %v7347_v25 = vld [vmem:[#allocation9 + $0x38] sm:$0xff]  }
 0xe9b   :  { %v7178_v32 = vpop.eup %7177  ;;  %v4126_v31 = vmul.f32 %v7176_v44, %v8712_v11  ;;  %v4074_v11 = vmul.f32 1.442695, %v4057_v52 }
 0xe9c   :  { %v7180_v47 = vpop.eup %7179  ;;  %v4127_v55 = vmul.f32 %v7178_v32, %v8714_v42  ;;  %v4111_v41 = vpack.c.bf16 %v7178_v32, %v7176_v44 }
 0xe9d   :  { %v7182_v29 = vpop.eup %7181  ;;  %v4124_v2 = vmul.f32 %v7180_v47, %v8718_v38  ;;  %v4110_v63 = vpack.c.bf16 %v7174_v40, %v7180_v47  ;;  %7203 = vpow2.f32 %v4074_v11  ;;  %v6853_v11 = vld [vmem:[#allocation11 + $0x138] sm:$0xff]  }
 0xe9e   :  { %v7184_v23 = vpop.eup %7183  ;;  %v4135_v1 = vpack.c.bf16 %v4127_v55, %v4126_v31  ;;  %v4122_v59 = vmul.f32 %v7182_v29, %v8687_v33  ;;  %6589 = vmatprep.subr.bf16.mxu0 %v6853_v11 }
 0xe9f   :  { %v7186_v21 = vpop.eup %7185  ;;  %v4134_v26 = vpack.c.bf16 %v4125_v5, %v4124_v2  ;;  %v4123_v42 = vmul.f32 %v7184_v23, %v8693_v12  ;;  %v4109_v19 = vpack.c.bf16 %v7184_v23, %v7182_v29  ;;  %v7342_v23 = vld [vmem:[#allocation9 + $0x10] sm:$0xff]   ;;  %6590 = vmatpush3.bf16.msra.mxu0 %v6853_v11 }
 0xea0   :  { %4136 = vmatprep.subr.bf16.mxu1 %v4135_v1  ;;  %v7188_v48 = vpop.eup %7187  ;;  %v4120_v17 = vmul.f32 %v7186_v21, %v8697_v4  ;;  %v7345_v1 = vld [vmem:[#allocation9 + $0x28] sm:$0xff]  }
 0xea1   :  { %4137 = vmatpush1.bf16.msra.mxu1 %v4111_v41  ;;  %v7190_v38 = vpop.eup %7189  ;;  %v4133_v20 = vpack.c.bf16 %v4123_v42, %v4122_v59  ;;  %v4121_v54 = vmul.f32 %v7188_v48, %v8699_v8  ;;  %v4108_v40 = vpack.c.bf16 %v7188_v48, %v7186_v21  ;;  %v7346_v41 = vld [vmem:[#allocation9 + $0x30] sm:$0xff]   ;;  %v6856_v59 = vld [vmem:[#allocation11 + $0x120] sm:$0xff]   ;;  %v6857_v42 = vld [vmem:[#allocation11 + $0x118] sm:$0xff]  }
 0xea2   :  { %4138 = vmatprep.subr.bf16.mxu1 %v4134_v26  ;;  %v7192_v24 = vpop.eup %7191  ;;  %v4118_v12 = vmul.f32 %v7190_v38, %v8673_v9  ;;  %v6854_v21 = vld [vmem:[#allocation11 + $0x130] sm:$0xff]   ;;  %v6855_v26 = vld [vmem:[#allocation11 + $0x128] sm:$0xff]  }
 0xea3   :  { %v7194_v33 = vpop.eup %7193  ;;  %v4132_v10 = vpack.c.bf16 %v4121_v54, %v4120_v17  ;;  %v4119_v62 = vmul.f32 %v7192_v24, %v8681_v45  ;;  %v4107_v31 = vpack.c.bf16 %v7192_v24, %v7190_v38  ;;  %6591 = vmatprep.subr.bf16.mxu0 %v6854_v21  ;;  %v6858_v48 = vld [vmem:[#allocation11 + $0x110] sm:$0xff]   ;;  %v8793_v38 = vld [vmem:[#allocation12 + $0x138] sm:$0xff]  }
 0xea4   :  { %v7196_v43 = vpop.eup %7195  ;;  %v4116_v4 = vmul.f32 %v7194_v33, %v8677_v49  ;;  %6592 = vmatpush3.bf16.msra.mxu0 %v6854_v21 }
 0xea5   :  { %4139 = vmatpush1.bf16.msra.mxu1 %v4110_v63  ;;  %v7198_v44 = vpop.eup %7197  ;;  %v4131_v34 = vpack.c.bf16 %v4119_v62, %v4118_v12  ;;  %v4117_v8 = vmul.f32 %v7196_v43, %v8683_v14  ;;  %v4106_v55 = vpack.c.bf16 %v7196_v43, %v7194_v33  ;;  %6593 = vmatprep.subr.bf16.mxu0 %v6855_v26  ;;  %v6859_v63 = vld [vmem:[#allocation11 + $0x108] sm:$0xff]  }
 0xea6   :  { %4140 = vmatprep.subr.bf16.mxu1 %v4133_v20  ;;  %v7200_v32 = vpop.eup %7199  ;;  %v4114_v9 = vmul.f32 %v7198_v44, %v8671_v60  ;;  %v7340_v60 = vld [vmem:[#allocation9] sm:$0xff]  }
 0xea7   :  { %v7202_v51 = vpop.eup %7201  ;;  %v4130_v52 = vpack.c.bf16 %v4117_v8, %v4116_v4  ;;  %v4115_v45 = vmul.f32 %v7200_v32, %v8679_v36  ;;  %v4105_v14 = vpack.c.bf16 %v7200_v32, %v7198_v44  ;;  %v7341_v36 = vld [vmem:[#allocation9 + $0x8] sm:$0xff]  }
 0xea8   :  { %v4112_v13 = vmul.f32 %v7202_v51, %v8675_v37  ;;  %v7343_v37 = vld [vmem:[#allocation9 + $0x18] sm:$0xff]   ;;  %6594 = vmatpush3.bf16.msra.mxu0 %v6855_v26 }
 0xea9   :  { %4141 = vmatpush1.bf16.msra.mxu1 %v4109_v19  ;;  %v4129_v5 = vpack.c.bf16 %v4115_v45, %v4114_v9  ;;  %6595 = vmatprep.subr.bf16.mxu0 %v6856_v59 }
 0xeaa   :  { %4142 = vmatprep.subr.bf16.mxu1 %v4132_v10  ;;  %v7204_v47 = vpop.eup %7203 }
 0xeab   :  { %v4113_v49 = vmul.f32 %v7204_v47, %v8685_v56  ;;  %v4104_v2 = vpack.c.bf16 %v7204_v47, %v7202_v51  ;;  %v7344_v56 = vld [vmem:[#allocation9 + $0x20] sm:$0xff]  }
 0xeac   :  { %6596 = vmatpush3.bf16.msra.mxu0 %v6856_v59 }
 0xead   :  { %4143 = vmatpush1.bf16.msra.mxu1 %v4108_v40  ;;  %v4128_v29 = vpack.c.bf16 %v4113_v49, %v4112_v13  ;;  %6597 = vmatprep.subr.bf16.mxu0 %v6857_v42 }
 0xeae   :  { %4144 = vmatprep.subr.bf16.mxu1 %v4131_v34 }
 0xeb0   :  { %6598 = vmatpush3.bf16.msra.mxu0 %v6857_v42 }
 0xeb1   :  { %4145 = vmatpush1.bf16.msra.mxu1 %v4107_v31  ;;  %6599 = vmatprep.subr.bf16.mxu0 %v6858_v48 }
 0xeb2   :  { %4146 = vmatprep.subr.bf16.mxu1 %v4130_v52 }
 0xeb4   :  { %6600 = vmatpush3.bf16.msra.mxu0 %v6858_v48 }
 0xeb5   :  { %4147 = vmatpush1.bf16.msra.mxu1 %v4106_v55  ;;  %6601 = vmatprep.subr.bf16.mxu0 %v6859_v63 }
 0xeb6   :  { %4148 = vmatprep.subr.bf16.mxu1 %v4129_v5 }
 0xeb8   :  { %6602 = vmatpush3.bf16.msra.mxu0 %v6859_v63 }
 0xeb9   :  { %4149 = vmatpush1.bf16.msra.mxu1 %v4105_v14 }
 0xeba   :  { %4150 = vmatprep.subr.bf16.mxu1 %v4128_v29 }
 0xebd   :  { %4151 = vmatpush1.bf16.msra.mxu1 %v4104_v2 }
 0xec0   :  { %4169 = vmatmul.mubr.bf16.vlgmr.msra.gmra.mxu1 %v7340_v60 }
 0xec1   :  { %4178 = vmatprep.mubr.bf16.mxu1 %v9170_v39 }
 0xec8   :  { %4179 = vmatmul.mubr.bf16.gmra.mxu1 %v7341_v36 }
 0xec9   :  { %4188 = vmatprep.mubr.bf16.mxu1 %v9170_v39 }
 0xed0   :  { %4189 = vmatmul.mubr.bf16.gmra.mxu1 %v7342_v23 }
 0xed1   :  { %4198 = vmatprep.mubr.bf16.mxu1 %v9170_v39 }
 0xed8   :  { %4199 = vmatmul.mubr.bf16.gmra.mxu1 %v7343_v37 }
 0xed9   :  { %4208 = vmatprep.mubr.bf16.mxu1 %v9170_v39 }
 0xee0   :  { %4209 = vmatmul.mubr.bf16.gmra.mxu1 %v7344_v56 }
 0xee1   :  { %4218 = vmatprep.mubr.bf16.mxu1 %v9170_v39 }
 0xee8   :  { %4219 = vmatmul.mubr.bf16.gmra.mxu1 %v7345_v1 }
 0xee9   :  { %4228 = vmatprep.mubr.bf16.mxu1 %v9170_v39 }
 0xef0   :  { %4229 = vmatmul.mubr.bf16.gmra.mxu1 %v7346_v41 }
 0xef1   :  { %4238 = vmatprep.mubr.bf16.mxu1 %v9170_v39 }
 0xef8   :  { %4239 = vmatmul.mubr.bf16.gmra.mxu1 %v7347_v25 }
 0xef9   :  { %6669 = vmatprep.mubr.bf16.mxu1 %v8604_v35  ;;  %v6860_v35 = vld [vmem:[#allocation11 + $0x100] sm:$0xff]  }
 0xefa   :  { %6603 = vmatprep.subr.bf16.mxu0 %v6860_v35 }
 0xefb   :  { %6604 = vmatpush3.bf16.msra.mxu0 %v6860_v35 }
 0xefc   :  { %6621 = vmatprep.subr.bf16.mxu0 %v8793_v38 }
 0xf80   :  { %v4170_v20 = vpop.f32.mrf.mxu1 }
 0xf81   :  { %vm4249_vm0 = vcmp.eq.f32.partialorder %v4170_v20, 0.0 }
 0xf82   :  { %v5820_v17 = vsel %vm4249_vm0, 1.0, %v9171_v18  ;;  %v4172_v54 = vpop.f32.mrf.mxu1 }
 0xf83   :  { %v4297_v24 = vadd.f32 %v5820_v17, %v4170_v20 }
 0xf84   :  { %v4174_v19 = vpop.f32.mrf.mxu1 }
 0xf85   :  { %7205 = vrcp.f32 %v4297_v24  ;;  %vm4250_vm1 = vcmp.eq.f32.partialorder %v4174_v19, 0.0 }
 0xf86   :  { %v5821_v33 = vsel %vm4250_vm1, 1.0, %v9171_v18  ;;  %v4176_v10 = vpop.f32.mrf.mxu1 }
 0xf87   :  { %v4298_v12 = vadd.f32 %v5821_v33, %v4174_v19  ;;  %v6862_v19 = vld [vmem:[#allocation12 + $0x130] sm:$0xff]  }
 0xf88   :  { %v4180_v62 = vpop.f32.mrf.mxu1 }
 0xf89   :  { %7207 = vrcp.f32 %v4298_v12  ;;  %vm4251_vm2 = vcmp.eq.f32.partialorder %v4180_v62, 0.0 }
 0xf8a   :  { %v5822_v43 = vsel %vm4251_vm2, 1.0, %v9171_v18  ;;  %v4182_v40 = vpop.f32.mrf.mxu1 }
 0xf8b   :  { %v4299_v44 = vadd.f32 %v5822_v43, %v4180_v62 }
 0xf8c   :  { %v4184_v34 = vpop.f32.mrf.mxu1 }
 0xf8d   :  { %7209 = vrcp.f32 %v4299_v44  ;;  %vm4252_vm3 = vcmp.eq.f32.partialorder %v4184_v34, 0.0 }
 0xf8e   :  { %v5823_v4 = vsel %vm4252_vm3, 1.0, %v9171_v18  ;;  %v4186_v8 = vpop.f32.mrf.mxu1 }
 0xf8f   :  { %v4300_v32 = vadd.f32 %v5823_v4, %v4184_v34 }
 0xf90   :  { %v4190_v31 = vpop.f32.mrf.mxu1 }
 0xf91   :  { %7211 = vrcp.f32 %v4300_v32  ;;  %vm4253_vm4 = vcmp.eq.f32.partialorder %v4190_v31, 0.0 }
 0xf92   :  { %v7206_v51 = vpop.eup %7205  ;;  %v5824_v52 = vsel %vm4253_vm4, 1.0, %v9171_v18  ;;  %v4192_v9 = vpop.f32.mrf.mxu1 }
 0xf93   :  { %v4301_v45 = vadd.f32 %v5824_v52, %v4190_v31  ;;  %v4329_v55 = vmul.f32 %v7206_v51, %v4172_v54 }
 0xf94   :  { %v4194_v47 = vpop.f32.mrf.mxu1 }
 0xf95   :  { %7213 = vrcp.f32 %v4301_v45  ;;  %vm4254_vm5 = vcmp.eq.f32.partialorder %v4194_v47, 0.0  ;;  %v4345_v60 = vadd.f32 %v4329_v55, %v8610_v0 }
 0xf96   :  { %v7208_v5 = vpop.eup %7207  ;;  %v5825_v13 = vsel %vm4254_vm5, 1.0, %v9171_v18  ;;  %v4196_v49 = vpop.f32.mrf.mxu1 }
 0xf97   :  { %v4330_v14 = vmul.f32 %v7208_v5, %v4176_v10  ;;  %v4302_v29 = vadd.f32 %v5825_v13, %v4194_v47  ;;  %v6865_v13 = vld [vmem:[#allocation12 + $0x118] sm:$0xff]  }
 0xf98   :  { %v4200_v2 = vpop.f32.mrf.mxu1 }
 0xf99   :  { %v4346_v36 = vadd.f32 %v4330_v14, %v8616_v53  ;;  %7215 = vrcp.f32 %v4302_v29  ;;  %vm4255_vm6 = vcmp.eq.f32.partialorder %v4200_v2, 0.0 }
 0xf9a   :  { %v7210_v23 = vpop.eup %7209  ;;  %v5826_v37 = vsel %vm4255_vm6, 1.0, %v9171_v18  ;;  %v4202_v56 = vpop.f32.mrf.mxu1 }
 0xf9b   :  { %v4303_v1 = vadd.f32 %v5826_v37, %v4200_v2  ;;  %v4361_v41 = vpack.c.bf16 %v4346_v36, %v4345_v60  ;;  %v4331_v11 = vmul.f32 %v7210_v23, %v4182_v40  ;;  %v6863_v40 = vld [vmem:[#allocation12 + $0x128] sm:$0xff]  }
 0xf9c   :  { %v4204_v25 = vpop.f32.mrf.mxu1 }
 0xf9d   :  { %7217 = vrcp.f32 %v4303_v1  ;;  %vm4256_vm7 = vcmp.eq.f32.partialorder %v4204_v25, 0.0  ;;  %6605 = vmatprep.mubr.bf16.mxu0 %v4361_v41  ;;  %v4347_v48 = vadd.f32 %v4331_v11, %v8607_v3 }
 0xf9e   :  { %v7212_v21 = vpop.eup %7211  ;;  %v5827_v26 = vsel %vm4256_vm7, 1.0, %v9171_v18  ;;  %v4206_v59 = vpop.f32.mrf.mxu1 }
 0xf9f   :  { %v4332_v0 = vmul.f32 %v7212_v21, %v4186_v8  ;;  %v4304_v42 = vadd.f32 %v5827_v26, %v4204_v25 }
 0xfa0   :  { %v4210_v53 = vpop.f32.mrf.mxu1 }
 0xfa1   :  { %v4348_v63 = vadd.f32 %v4332_v0, %v8613_v15  ;;  %7219 = vrcp.f32 %v4304_v42  ;;  %vm4257_vm8 = vcmp.eq.f32.partialorder %v4210_v53, 0.0 }
 0xfa2   :  { %v7214_v35 = vpop.eup %7213  ;;  %v5828_v20 = vsel %vm4257_vm8, 1.0, %v9171_v18  ;;  %v4212_v17 = vpop.f32.mrf.mxu1 }
 0xfa3   :  { %v4362_v54 = vpack.c.bf16 %v4348_v63, %v4347_v48  ;;  %v4305_v24 = vadd.f32 %v5828_v20, %v4210_v53  ;;  %v4333_v10 = vmul.f32 %v7214_v35, %v4192_v9 }
 0xfa4   :  { %v4214_v33 = vpop.f32.mrf.mxu1 }
 0xfa5   :  { %7221 = vrcp.f32 %v4305_v24  ;;  %vm4258_vm9 = vcmp.eq.f32.partialorder %v4214_v33, 0.0  ;;  %6606 = vmatmul.mubr.bf16.vlgmr.msra.gmra.mxu0 %v4362_v54  ;;  %v4349_v34 = vadd.f32 %v4333_v10, %v8622_v30 }
 0xfa6   :  { %v7216_v12 = vpop.eup %7215  ;;  %v5829_v62 = vsel %vm4258_vm9, 1.0, %v9171_v18  ;;  %v4216_v3 = vpop.f32.mrf.mxu1  ;;  %6622 = vmatpush3.bf16.msra.mxu0 %v8793_v38  ;;  %v6864_v38 = vld [vmem:[#allocation12 + $0x120] sm:$0xff]  }
 0xfa7   :  { %v4334_v15 = vmul.f32 %v7216_v12, %v4196_v49  ;;  %v4306_v43 = vadd.f32 %v5829_v62, %v4214_v33  ;;  %6623 = vmatprep.subr.bf16.mxu0 %v6862_v19 }
 0xfa8   :  { %v4220_v44 = vpop.f32.mrf.mxu1 }
 0xfa9   :  { %v4350_v4 = vadd.f32 %v4334_v15, %v8628_v22  ;;  %7223 = vrcp.f32 %v4306_v43  ;;  %vm4259_vm10 = vcmp.eq.f32.partialorder %v4220_v44, 0.0 }
 0xfaa   :  { %v7218_v8 = vpop.eup %7217  ;;  %v5830_v32 = vsel %vm4259_vm10, 1.0, %v9171_v18  ;;  %v4222_v31 = vpop.f32.mrf.mxu1  ;;  %6624 = vmatpush3.bf16.msra.mxu0 %v6862_v19 }
 0xfab   :  { %v4307_v51 = vadd.f32 %v5830_v32, %v4220_v44  ;;  %v4363_v52 = vpack.c.bf16 %v4350_v4, %v4349_v34  ;;  %6625 = vmatprep.subr.bf16.mxu0 %v6863_v40  ;;  %v4335_v45 = vmul.f32 %v7218_v8, %v4202_v56 }
 0xfac   :  { %v4224_v9 = vpop.f32.mrf.mxu1 }
 0xfad   :  { %7225 = vrcp.f32 %v4307_v51  ;;  %vm4260_vm11 = vcmp.eq.f32.partialorder %v4224_v9, 0.0  ;;  %6609 = vmatprep.mubr.bf16.mxu0 %v4363_v52  ;;  %v4351_v14 = vadd.f32 %v4335_v45, %v8619_v6  ;;  %v6866_v51 = vld [vmem:[#allocation12 + $0x110] sm:$0xff]   ;;  %v6867_v52 = vld [vmem:[#allocation12 + $0x108] sm:$0xff]  }
 0xfae   :  { %v7220_v47 = vpop.eup %7219  ;;  %v5831_v30 = vsel %vm4260_vm11, 1.0, %v9171_v18  ;;  %v4226_v22 = vpop.f32.mrf.mxu1  ;;  %6626 = vmatpush3.bf16.msra.mxu0 %v6863_v40 }
 0xfaf   :  { %v4336_v55 = vmul.f32 %v7220_v47, %v4206_v59  ;;  %v4308_v5 = vadd.f32 %v5831_v30, %v4224_v9  ;;  %6627 = vmatprep.subr.bf16.mxu0 %v6864_v38 }
 0xfb0   :  { %v4230_v49 = vpop.f32.mrf.mxu1 }
 0xfb1   :  { %v4352_v29 = vadd.f32 %v4336_v55, %v8625_v7  ;;  %7227 = vrcp.f32 %v4308_v5  ;;  %vm4261_vm12 = vcmp.eq.f32.partialorder %v4230_v49, 0.0 }
 0xfb2   :  { %v7222_v2 = vpop.eup %7221  ;;  %v5832_v60 = vsel %vm4261_vm12, 1.0, %v9171_v18  ;;  %v4232_v36 = vpop.f32.mrf.mxu1  ;;  %6628 = vmatpush3.bf16.msra.mxu0 %v6864_v38 }
 0xfb3   :  { %v4364_v23 = vpack.c.bf16 %v4352_v29, %v4351_v14  ;;  %v4309_v37 = vadd.f32 %v5832_v60, %v4230_v49  ;;  %6629 = vmatprep.subr.bf16.mxu0 %v6865_v13  ;;  %v4337_v1 = vmul.f32 %v7222_v2, %v4212_v17 }
 0xfb4   :  { %v4234_v56 = vpop.f32.mrf.mxu1 }
 0xfb5   :  { %7229 = vrcp.f32 %v4309_v37  ;;  %vm4262_vm13 = vcmp.eq.f32.partialorder %v4234_v56, 0.0  ;;  %6610 = vmatmul.mubr.bf16.gmra.mxu0 %v4364_v23  ;;  %v4353_v26 = vadd.f32 %v4337_v1, %v8634_v46 }
 0xfb6   :  { %v7224_v41 = vpop.eup %7223  ;;  %v5833_v6 = vsel %vm4262_vm13, 1.0, %v9171_v18  ;;  %v4236_v25 = vpop.f32.mrf.mxu1  ;;  %6630 = vmatpush3.bf16.msra.mxu0 %v6865_v13 }
 0xfb7   :  { %v4338_v7 = vmul.f32 %v7224_v41, %v4216_v3  ;;  %v4310_v11 = vadd.f32 %v5833_v6, %v4234_v56  ;;  %6631 = vmatprep.subr.bf16.mxu0 %v6866_v51 }
 0xfb8   :  { %v4240_v21 = vpop.f32.mrf.mxu1 }
 0xfb9   :  { %v4354_v59 = vadd.f32 %v4338_v7, %v8640_v16  ;;  %7231 = vrcp.f32 %v4310_v11  ;;  %vm4263_vm14 = vcmp.eq.f32.partialorder %v4240_v21, 0.0 }
 0xfba   :  { %v7226_v0 = vpop.eup %7225  ;;  %v5834_v42 = vsel %vm4263_vm14, 1.0, %v9171_v18  ;;  %v4242_v53 = vpop.f32.mrf.mxu1  ;;  %6632 = vmatpush3.bf16.msra.mxu0 %v6866_v51 }
 0xfbb   :  { %v4311_v48 = vadd.f32 %v5834_v42, %v4240_v21  ;;  %v4365_v63 = vpack.c.bf16 %v4354_v59, %v4353_v26  ;;  %v4339_v20 = vmul.f32 %v7226_v0, %v4222_v31  ;;  %6633 = vmatprep.subr.bf16.mxu0 %v6867_v52 }
 0xfbc   :  { %v4244_v35 = vpop.f32.mrf.mxu1 }
 0xfbd   :  { %7233 = vrcp.f32 %v4311_v48  ;;  %vm4264_vm15 = vcmp.eq.f32.partialorder %v4244_v35, 0.0  ;;  %6613 = vmatprep.mubr.bf16.mxu0 %v4365_v63  ;;  %v4355_v16 = vadd.f32 %v4339_v20, %v8631_v57 }
 0xfbe   :  { %v7228_v17 = vpop.eup %7227  ;;  %v5835_v54 = vsel %vm4264_vm15, 1.0, %v9171_v18  ;;  %v4246_v8 = vpop.f32.mrf.mxu1  ;;  %6634 = vmatpush3.bf16.msra.mxu0 %v6867_v52 }
 0xfbf   :  { %v4340_v24 = vmul.f32 %v7228_v17, %v4226_v22  ;;  %v4312_v46 = vadd.f32 %v5835_v54, %v4244_v35 }
 0xfc1   :  { %v4356_v19 = vadd.f32 %v4340_v24, %v8637_v50  ;;  %7235 = vrcp.f32 %v4312_v46 }
 0xfc2   :  { %v7230_v33 = vpop.eup %7229 }
 0xfc3   :  { %v4366_v10 = vpack.c.bf16 %v4356_v19, %v4355_v16  ;;  %v4341_v12 = vmul.f32 %v7230_v33, %v4232_v36 }
 0xfc5   :  { %6614 = vmatmul.mubr.bf16.gmra.mxu0 %v4366_v10  ;;  %v4357_v15 = vadd.f32 %v4341_v12, %v8646_v28  ;;  %v6868_v28 = vld [vmem:[#allocation12 + $0x100] sm:$0xff]  }
 0xfc6   :  { %v7232_v62 = vpop.eup %7231  ;;  %6635 = vmatprep.subr.bf16.mxu0 %v6868_v28 }
 0xfc7   :  { %v4342_v3 = vmul.f32 %v7232_v62, %v4236_v25  ;;  %6636 = vmatpush3.bf16.msra.mxu0 %v6868_v28 }
 0xfc9   :  { %v4358_v43 = vadd.f32 %v4342_v3, %v8651_v27 }
 0xfca   :  { %v7234_v40 = vpop.eup %7233 }
 0xfcb   :  { %v4367_v44 = vpack.c.bf16 %v4358_v43, %v4357_v15  ;;  %v4343_v34 = vmul.f32 %v7234_v40, %v4242_v53 }
 0xfcd   :  { %6617 = vmatprep.mubr.bf16.mxu0 %v4367_v44  ;;  %v4359_v50 = vadd.f32 %v4343_v34, %v8643_v58 }
 0xfce   :  { %v7236_v4 = vpop.eup %7235 }
 0xfcf   :  { %v4344_v57 = vmul.f32 %v7236_v4, %v4246_v8 }
 0xfd1   :  { %v4360_v32 = vadd.f32 %v4344_v57, %v8649_v61 }
 0xfd3   :  { %v4368_v31 = vpack.c.bf16 %v4360_v32, %v4359_v50 }
 0xfd5   :  { %6618 = vmatmul.mubr.bf16.gmra.mxu0 %v4368_v31 }
0x1065   :  { %v6607_v27 = vpop.f32.mrf.mxu0 }
0x1066   :  { %v4533_v22 = vmax.f32 %v6607_v27, 0.0 }
0x1067   :  { %v4468_v38 = vpop.f32.mrf.mxu0 }
0x1068   :  { %v4531_v30 = vmax.f32 %v4468_v38, 0.0 }
0x1069   :  { %v6608_v9 = vpop.f32.mrf.mxu0 }
0x106a   :  { %v4534_v45 = vmax.f32 %v6608_v9, 0.0 }
0x106b   :  { %v4471_v47 = vpop.f32.mrf.mxu0 }
0x106c   :  { %v4532_v58 = vmax.f32 %v4471_v47, 0.0  ;;  %v4548_v55 = vpack.c.bf16 %v4534_v45, %v4533_v22 }
0x106e   :  { %v4547_v61 = vpack.c.bf16 %v4532_v58, %v4531_v30 }
0x1070   :  { %6637 = vmatprep.mubr.bf16.mxu0 %v4547_v61 }
0x1071   :  { %6638 = vmatmul.mubr.bf16.vlgmr.msra.gmra.mxu0 %v4548_v55 }
0x1075   :  { %v6611_v5 = vpop.f32.mrf.mxu0 }
0x1076   :  { %v4537_v36 = vmax.f32 %v6611_v5, 0.0 }
0x1077   :  { %v4484_v13 = vpop.f32.mrf.mxu0 }
0x1078   :  { %v4535_v2 = vmax.f32 %v4484_v13, 0.0 }
0x1079   :  { %v6612_v49 = vpop.f32.mrf.mxu0 }
0x107a   :  { %v4538_v14 = vmax.f32 %v6612_v49, 0.0 }
0x107b   :  { %v4487_v29 = vpop.f32.mrf.mxu0 }
0x107c   :  { %v4536_v60 = vmax.f32 %v4487_v29, 0.0  ;;  %v4550_v37 = vpack.c.bf16 %v4538_v14, %v4537_v36 }
0x107e   :  { %v4549_v23 = vpack.c.bf16 %v4536_v60, %v4535_v2 }
0x1080   :  { %6641 = vmatprep.mubr.bf16.mxu0 %v4549_v23  ;;  %v7348_v23 = vld [vmem:[#allocation8 + $0x8] sm:$0xff]  }
0x1081   :  { %6642 = vmatmul.mubr.bf16.gmra.mxu0 %v4550_v37  ;;  %v7349_v37 = vld [vmem:[#allocation8 + $0x10] sm:$0xff]  }
0x1085   :  { %v6615_v56 = vpop.f32.mrf.mxu0 }
0x1086   :  { %v4541_v21 = vmax.f32 %v6615_v56, 0.0  ;;  %v7350_v56 = vld [vmem:[#allocation8 + $0x18] sm:$0xff]  }
0x1087   :  { %v4500_v1 = vpop.f32.mrf.mxu0 }
0x1088   :  { %v4539_v7 = vmax.f32 %v4500_v1, 0.0  ;;  %v7351_v1 = vld [vmem:[#allocation8 + $0x20] sm:$0xff]  }
0x1089   :  { %v6616_v41 = vpop.f32.mrf.mxu0 }
0x108a   :  { %v4542_v6 = vmax.f32 %v6616_v41, 0.0  ;;  %v7352_v41 = vld [vmem:[#allocation8 + $0x28] sm:$0xff]  }
0x108b   :  { %v4503_v25 = vpop.f32.mrf.mxu0 }
0x108c   :  { %v4540_v11 = vmax.f32 %v4503_v25, 0.0  ;;  %v4552_v59 = vpack.c.bf16 %v4542_v6, %v4541_v21  ;;  %v7353_v6 = vld [vmem:[#allocation8 + $0x30] sm:$0xff]   ;;  %v7354_v25 = vld [vmem:[#allocation8 + $0x38] sm:$0xff]  }
0x108e   :  { %v4551_v26 = vpack.c.bf16 %v4540_v11, %v4539_v7 }
0x1090   :  { %6645 = vmatprep.mubr.bf16.mxu0 %v4551_v26 }
0x1091   :  { %6646 = vmatmul.mubr.bf16.gmra.mxu0 %v4552_v59 }
0x1095   :  { %v6619_v0 = vpop.f32.mrf.mxu0 }
0x1096   :  { %v4545_v17 = vmax.f32 %v6619_v0, 0.0 }
0x1097   :  { %v4516_v42 = vpop.f32.mrf.mxu0 }
0x1098   :  { %v4543_v35 = vmax.f32 %v4516_v42, 0.0 }
0x1099   :  { %v6620_v53 = vpop.f32.mrf.mxu0 }
0x109a   :  { %v4546_v48 = vmax.f32 %v6620_v53, 0.0 }
0x109b   :  { %v4519_v63 = vpop.f32.mrf.mxu0 }
0x109c   :  { %v4544_v20 = vmax.f32 %v4519_v63, 0.0  ;;  %v4554_v24 = vpack.c.bf16 %v4546_v48, %v4545_v17 }
0x109e   :  { %v4553_v54 = vpack.c.bf16 %v4544_v20, %v4543_v35 }
0x10a0   :  { %6649 = vmatprep.mubr.bf16.mxu0 %v4553_v54 }
0x10a1   :  { %6650 = vmatmul.mubr.bf16.gmra.mxu0 %v4554_v24 }
0x10a2   :  { %5045 = vmatprep.mubr.bf16.mxu0 %v9170_v39 }
0x1131   :  { %v8830_v46 = vpop.f32.mrf.mxu0 }
0x1132   :  { %v4719_v14 = vmax.f32 %v8830_v46, 0.0 }
0x1133   :  { %v8832_v16 = vpop.f32.mrf.mxu0 }
0x1134   :  { %v4717_v60 = vmax.f32 %v8832_v16, 0.0 }
0x1135   :  { %v8834_v19 = vpop.f32.mrf.mxu0 }
0x1136   :  { %v9149_v13 = vmax.f32 %v8834_v19, 0.0 }
0x1137   :  { %v8836_v33 = vpop.f32.mrf.mxu0 }
0x1138   :  { %v4734_v29 = vpack.c.bf16 %v9149_v13, %v4719_v14  ;;  %v4718_v2 = vmax.f32 %v8836_v33, 0.0 }
0x113a   :  { %v4733_v36 = vpack.c.bf16 %v4718_v2, %v4717_v60 }
0x1141   :  { %v8838_v10 = vpop.f32.mrf.mxu0 }
0x1142   :  { %v9146_v22 = vmax.f32 %v8838_v10, 0.0 }
0x1143   :  { %v8840_v12 = vpop.f32.mrf.mxu0 }
0x1144   :  { %v9148_v5 = vmax.f32 %v8840_v12, 0.0 }
0x1145   :  { %v8842_v62 = vpop.f32.mrf.mxu0 }
0x1146   :  { %v9145_v30 = vmax.f32 %v8842_v62, 0.0 }
0x1147   :  { %v8844_v3 = vpop.f32.mrf.mxu0 }
0x1148   :  { %v4736_v61 = vpack.c.bf16 %v9145_v30, %v9146_v22  ;;  %v9147_v55 = vmax.f32 %v8844_v3, 0.0 }
0x114a   :  { %v4735_v49 = vpack.c.bf16 %v9147_v55, %v9148_v5 }
0x1151   :  { %v8846_v15 = vpop.f32.mrf.mxu0 }
0x1152   :  { %v9142_v38 = vmax.f32 %v8846_v15, 0.0 }
0x1153   :  { %v8848_v43 = vpop.f32.mrf.mxu0 }
0x1154   :  { %v9144_v47 = vmax.f32 %v8848_v43, 0.0 }
0x1155   :  { %v8850_v40 = vpop.f32.mrf.mxu0 }
0x1156   :  { %v9141_v28 = vmax.f32 %v8850_v40, 0.0 }
0x1157   :  { %v8852_v44 = vpop.f32.mrf.mxu0 }
0x1158   :  { %v4738_v9 = vpack.c.bf16 %v9141_v28, %v9142_v38  ;;  %v9143_v45 = vmax.f32 %v8852_v44, 0.0 }
0x115a   :  { %v4737_v58 = vpack.c.bf16 %v9143_v45, %v9144_v47 }
0x1161   :  { %v8854_v34 = vpop.f32.mrf.mxu0 }
0x1162   :  { %v9138_v57 = vmax.f32 %v8854_v34, 0.0 }
0x1163   :  { %v8856_v4 = vpop.f32.mrf.mxu0 }
0x1164   :  { %v9140_v31 = vmax.f32 %v8856_v4, 0.0 }
0x1165   :  { %v8858_v8 = vpop.f32.mrf.mxu0 }
0x1166   :  { %v9137_v50 = vmax.f32 %v8858_v8, 0.0 }
0x1167   :  { %v8862_v32 = vpop.f32.mrf.mxu0 }
0x1168   :  { %v4740_v51 = vpack.c.bf16 %v9137_v50, %v9138_v57  ;;  %v9139_v52 = vmax.f32 %v8862_v32, 0.0 }
0x116a   :  { %v4739_v27 = vpack.c.bf16 %v9139_v52, %v9140_v31  ;;  %6653 = vmatprep.subr.bf16.mxu1 %v4740_v51 }
0x116b   :  { %6654 = vmatpush3.bf16.msra.mxu1 %v4740_v51 }
0x116c   :  { %6655 = vmatprep.subr.bf16.mxu1 %v4739_v27 }
0x116f   :  { %6656 = vmatpush3.bf16.msra.mxu1 %v4739_v27 }
0x1170   :  { %6657 = vmatprep.subr.bf16.mxu1 %v4738_v9 }
0x1173   :  { %6658 = vmatpush3.bf16.msra.mxu1 %v4738_v9 }
0x1174   :  { %6659 = vmatprep.subr.bf16.mxu1 %v4737_v58 }
0x1177   :  { %6660 = vmatpush3.bf16.msra.mxu1 %v4737_v58 }
0x1178   :  { %6661 = vmatprep.subr.bf16.mxu1 %v4736_v61 }
0x117b   :  { %6662 = vmatpush3.bf16.msra.mxu1 %v4736_v61 }
0x117c   :  { %6663 = vmatprep.subr.bf16.mxu1 %v4735_v49 }
0x117f   :  { %6664 = vmatpush3.bf16.msra.mxu1 %v4735_v49 }
0x1180   :  { %6665 = vmatprep.subr.bf16.mxu1 %v4734_v29 }
0x1183   :  { %6666 = vmatpush3.bf16.msra.mxu1 %v4734_v29 }
0x1184   :  { %6667 = vmatprep.subr.bf16.mxu1 %v4733_v36 }
0x1187   :  { %6668 = vmatpush3.bf16.msra.mxu1 %v4733_v36 }
0x118a   :  { %6670 = vmatmul.mubr.bf16.vlgmr.msra.gmra.mxu1 %v7348_v23 }
0x118b   :  { %6673 = vmatprep.mubr.bf16.mxu1 %v7349_v37 }
0x1192   :  { %6674 = vmatmul.mubr.bf16.gmra.mxu1 %v7350_v56 }
0x1193   :  { %6677 = vmatprep.mubr.bf16.mxu1 %v7351_v1 }
0x119a   :  { %6678 = vmatmul.mubr.bf16.gmra.mxu1 %v7352_v41 }
0x119b   :  { %6681 = vmatprep.mubr.bf16.mxu1 %v7353_v6 }
0x11a2   :  { %6682 = vmatmul.mubr.bf16.gmra.mxu1 %v7354_v25 }
0x124a   :  { %v6671_v7 = vpop.f32.mrf.mxu1 }
0x124b   :  { %v4840_v35 = vmax.f32 %v6671_v7, 0.0 }
0x124c   :  { %v4775_v11 = vpop.f32.mrf.mxu1 }
0x124d   :  { %v4838_v54 = vmax.f32 %v4775_v11, 0.0  ;;  %v8910_v29 = vadd.f32 1e-07, %v4840_v35 }
0x124e   :  { %v6672_v21 = vpop.f32.mrf.mxu1 }
0x124f   :  { %v4841_v51 = vmax.f32 %v6672_v21, 0.0  ;;  %v8914_v56 = vadd.f32 1e-07, %v4838_v54 }
0x1250   :  { %v4778_v26 = vpop.f32.mrf.mxu1 }
0x1251   :  { %v4839_v61 = vmax.f32 %v4778_v26, 0.0  ;;  %v8918_v25 = vadd.f32 1e-07, %v4841_v51 }
0x1252   :  { %v6675_v59 = vpop.f32.mrf.mxu1 }
0x1253   :  { %v4844_v20 = vmax.f32 %v6675_v59, 0.0  ;;  %v8924_v26 = vadd.f32 1e-07, %v4839_v61 }
0x1254   :  { %v4791_v0 = vpop.f32.mrf.mxu1 }
0x1255   :  { %v4842_v24 = vmax.f32 %v4791_v0, 0.0  ;;  %v8912_v36 = vadd.f32 1e-07, %v4844_v20 }
0x1256   :  { %v6676_v42 = vpop.f32.mrf.mxu1 }
0x1257   :  { %v4845_v27 = vmax.f32 %v6676_v42, 0.0  ;;  %v8916_v1 = vadd.f32 1e-07, %v4842_v24  ;;  %v4873_v42 = vmax.f32 %v8910_v29, %v8912_v36 }
0x1258   :  { %v4794_v53 = vpop.f32.mrf.mxu1 }
0x1259   :  { %v4843_v9 = vmax.f32 %v4794_v53, 0.0  ;;  %v8920_v7 = vadd.f32 1e-07, %v4845_v27  ;;  %v4894_v53 = vmin.f32 %v8910_v29, %v8912_v36  ;;  %v4871_v20 = vmax.f32 %v8914_v56, %v8916_v1 }
0x125a   :  { %v6679_v48 = vpop.f32.mrf.mxu1  ;;  %v4892_v51 = vmin.f32 %v8914_v56, %v8916_v1 }
0x125b   :  { %v4848_v49 = vmax.f32 %v6679_v48, 0.0  ;;  %v8922_v11 = vadd.f32 1e-07, %v4843_v9  ;;  %v4874_v27 = vmax.f32 %v8918_v25, %v8920_v7  ;;  %v4895_v9 = vmin.f32 %v8918_v25, %v8920_v7 }
0x125c   :  { %v4807_v63 = vpop.f32.mrf.mxu1 }
0x125d   :  { %v4846_v41 = vmax.f32 %v4807_v63, 0.0  ;;  %v8926_v59 = vadd.f32 1e-07, %v4848_v49  ;;  %v4893_v49 = vmin.f32 %v8924_v26, %v8922_v11 }
0x125e   :  { %v6680_v17 = vpop.f32.mrf.mxu1 }
0x125f   :  { %v4849_v23 = vmax.f32 %v6680_v17, 0.0  ;;  %v8936_v17 = vadd.f32 1e-07, %v4846_v41  ;;  %v4898_v57 = vmin.f32 %v4894_v53, %v8926_v59 }
0x1260   :  { %v4810_v58 = vpop.f32.mrf.mxu1 }
0x1261   :  { %v4847_v6 = vmax.f32 %v4810_v58, 0.0  ;;  %v8932_v48 = vadd.f32 1e-07, %v4849_v23  ;;  %v4872_v58 = vmax.f32 %v8924_v26, %v8922_v11  ;;  %v4877_v23 = vmax.f32 %v4873_v42, %v8926_v59 }
0x1262   :  { %v6683_v37 = vpop.f32.mrf.mxu1  ;;  %v4875_v52 = vmax.f32 %v4871_v20, %v8936_v17  ;;  %v4896_v31 = vmin.f32 %v4892_v51, %v8936_v17 }
0x1263   :  { %v4852_v0 = vmax.f32 %v6683_v37, 0.0  ;;  %v8938_v54 = vadd.f32 1e-07, %v4847_v6  ;;  %v4878_v6 = vmax.f32 %v4874_v27, %v8932_v48 }
0x1264   :  { %v4823_v21 = vpop.f32.mrf.mxu1 }
0x1265   :  { %v4850_v63 = vmax.f32 %v4823_v21, 0.0  ;;  %v8951_v37 = vadd.f32 1e-07, %v4852_v0  ;;  %v4899_v21 = vmin.f32 %v4895_v9, %v8932_v48  ;;  %v4876_v28 = vmax.f32 %v4872_v58, %v8938_v54 }
0x1266   :  { %v6684_v35 = vpop.f32.mrf.mxu1  ;;  %v4897_v0 = vmin.f32 %v4893_v49, %v8938_v54 }
0x1267   :  { %v4853_v24 = vmax.f32 %v6684_v35, 0.0  ;;  %v8957_v35 = vadd.f32 1e-07, %v4850_v63  ;;  %v4881_v63 = vmax.f32 %v4877_v23, %v8951_v37  ;;  %v4902_v9 = vmin.f32 %v4898_v57, %v8951_v37 }
0x1268   :  { %v4826_v61 = vpop.f32.mrf.mxu1 }
0x1269   :  { %v8953_v41 = vadd.f32 1e-07, %v4853_v24  ;;  %v4851_v50 = vmax.f32 %v4826_v61, 0.0  ;;  %v4879_v53 = vmax.f32 %v4875_v52, %v8957_v35  ;;  %v4900_v20 = vmin.f32 %v4896_v31, %v8957_v35 }
0x126b   :  { %v4882_v42 = vmax.f32 %v4878_v6, %v8953_v41  ;;  %v4903_v24 = vmin.f32 %v4899_v21, %v8953_v41  ;;  %v8966_v27 = vadd.f32 1e-07, %v4851_v50 }
0x126d   :  { %v4880_v51 = vmax.f32 %v4876_v28, %v8966_v27  ;;  %v4901_v58 = vmin.f32 %v4897_v0, %v8966_v27  ;;  %v4884_v61 = vmax.f32 %v4881_v63, %v4882_v42  ;;  %v4905_v49 = vmin.f32 %v4902_v9, %v4903_v24 }
0x126e   :  { %v4913_v0 = vstv %s5852_s6 }
0x126f   :  { %v4883_v38 = vmax.f32 %v4879_v53, %v4880_v51  ;;  %v4904_v6 = vmin.f32 %v4900_v20, %v4901_v58  ;;  %v4931_v63 = vmul.f32 %v4913_v0, %v8951_v37  ;;  %v4932_v9 = vmul.f32 %v4913_v0, %v8953_v41 }
0x1270   :  { %v4925_v20 = vmul.f32 %v4913_v0, %v8936_v17 }
0x1271   :  { %v4885_v45 = vmax.f32 %v4883_v38, %v4884_v61  ;;  %v4906_v21 = vmin.f32 %v4904_v6, %v4905_v49  ;;  %v4929_v38 = vmul.f32 %v4913_v0, %v8957_v35  ;;  %v4926_v61 = vmul.f32 %v4913_v0, %v8938_v54 }
0x1273   :  { %v4886_v50 = vrot.slane %v4885_v45, 4  ;;  %v4907_v47 = vrot.slane %v4906_v21, 4 }
0x1275   :  { %v4887_v30 = vmax.f32 %v4885_v45, %v4886_v50  ;;  %v4908_v23 = vmin.f32 %v4906_v21, %v4907_v47  ;;  %v4930_v47 = vmul.f32 %v4913_v0, %v8966_v27 }
0x1277   :  { %v4888_v57 = vrot.slane %v4887_v30, 2  ;;  %v4909_v22 = vrot.slane %v4908_v23, 2 }
0x1279   :  { %v4889_v52 = vmax.f32 %v4887_v30, %v4888_v57  ;;  %v4910_v55 = vmin.f32 %v4908_v23, %v4909_v22  ;;  %v4927_v30 = vmul.f32 %v4913_v0, %v8926_v59  ;;  %v4928_v22 = vmul.f32 %v4913_v0, %v8932_v48 }
0x127b   :  { %v4890_v31 = vrot.slane %v4889_v52, 1  ;;  %v4911_v5 = vrot.slane %v4910_v55, 1 }
0x127d   :  { %v4891_v28 = vmax.f32 %v4889_v52, %v4890_v31  ;;  %v4912_v13 = vmin.f32 %v4910_v55, %v4911_v5  ;;  %v4923_v31 = vmul.f32 %v4913_v0, %v8912_v36 }
0x127f   :  { %v4914_v42 = vmul.f32 %v4913_v0, %v4891_v28  ;;  %v4915_v24 = vmul.f32 %v4913_v0, %v4912_v13 }
0x1281   :  { %v8977_v45 = vmax.f32 %v4914_v42, %v4915_v24  ;;  %v4924_v42 = vmul.f32 %v4913_v0, %v8920_v7 }
0x1283   :  { %v4946_v53 = vsub.f32 %v4930_v47, %v8977_v45  ;;  %v4947_v55 = vsub.f32 %v4931_v63, %v8977_v45  ;;  %v4948_v5 = vsub.f32 %v4932_v9, %v8977_v45  ;;  %v4945_v13 = vsub.f32 %v4929_v38, %v8977_v45 }
0x1284   :  { %v4943_v51 = vsub.f32 %v4927_v30, %v8977_v45  ;;  %v4944_v58 = vsub.f32 %v4928_v22, %v8977_v45  ;;  %v4941_v23 = vsub.f32 %v4925_v20, %v8977_v45  ;;  %v4942_v52 = vsub.f32 %v4926_v61, %v8977_v45 }
0x1285   :  { %v4975_v49 = vmul.f32 1.442695, %v4946_v53  ;;  %v4977_v6 = vmul.f32 1.442695, %v4947_v55  ;;  %v4979_v21 = vmul.f32 1.442695, %v4948_v5  ;;  %v4939_v63 = vsub.f32 %v4923_v31, %v8977_v45 }
0x1286   :  { %v4973_v50 = vmul.f32 1.442695, %v4945_v13  ;;  %v4969_v57 = vmul.f32 1.442695, %v4943_v51  ;;  %v4971_v28 = vmul.f32 1.442695, %v4944_v58  ;;  %v4940_v9 = vsub.f32 %v4924_v42, %v8977_v45 }
0x1287   :  { %7237 = vpow2.f32 %v4975_v49  ;;  %v4965_v24 = vmul.f32 1.442695, %v4941_v23  ;;  %v4967_v38 = vmul.f32 1.442695, %v4942_v52  ;;  %v4921_v47 = vmul.f32 %v4913_v0, %v8916_v1 }
0x1288   :  { %7239 = vpow2.f32 %v4977_v6  ;;  %v4922_v30 = vmul.f32 %v4913_v0, %v8922_v11  ;;  %v4961_v22 = vmul.f32 1.442695, %v4939_v63  ;;  %v4963_v55 = vmul.f32 1.442695, %v4940_v9 }
0x1289   :  { %7241 = vpow2.f32 %v4979_v21  ;;  %v4937_v53 = vsub.f32 %v4921_v47, %v8977_v45  ;;  %v4919_v13 = vmul.f32 %v4913_v0, %v8910_v29  ;;  %v4920_v20 = vmul.f32 %v4913_v0, %v8918_v25 }
0x128a   :  { %7243 = vpow2.f32 %v4973_v50  ;;  %v4938_v5 = vsub.f32 %v4922_v30, %v8977_v45  ;;  %v4917_v61 = vmul.f32 %v4913_v0, %v8914_v56  ;;  %v4918_v50 = vmul.f32 %v4913_v0, %v8924_v26 }
0x128b   :  { %7245 = vpow2.f32 %v4969_v57  ;;  %v4957_v51 = vmul.f32 1.442695, %v4937_v53  ;;  %v4935_v58 = vsub.f32 %v4919_v13, %v8977_v45  ;;  %v4936_v6 = vsub.f32 %v4920_v20, %v8977_v45 }
0x128c   :  { %7247 = vpow2.f32 %v4971_v28  ;;  %v4959_v49 = vmul.f32 1.442695, %v4938_v5  ;;  %v4933_v57 = vsub.f32 %v4917_v61, %v8977_v45  ;;  %v4934_v42 = vsub.f32 %v4918_v50, %v8977_v45 }
0x128d   :  { %7249 = vpow2.f32 %v4965_v24  ;;  %v4953_v28 = vmul.f32 1.442695, %v4935_v58  ;;  %v4955_v9 = vmul.f32 1.442695, %v4936_v6 }
0x128e   :  { %7251 = vpow2.f32 %v4967_v38 }
0x128f   :  { %7253 = vpow2.f32 %v4961_v22 }
0x1290   :  { %7255 = vpow2.f32 %v4963_v55  ;;  %v4949_v55 = vmul.f32 1.442695, %v4933_v57 }
0x1291   :  { %7257 = vpow2.f32 %v4957_v51 }
0x1292   :  { %7259 = vpow2.f32 %v4959_v49 }
0x1293   :  { %7261 = vpow2.f32 %v4953_v28 }
0x1294   :  { %v7238_v21 = vpop.eup %7237  ;;  %7263 = vpow2.f32 %v4955_v9 }
0x1295   :  { %v7240_v23 = vpop.eup %7239  ;;  %v5002_v38 = vmul.f32 %v7238_v21, %v8966_v27  ;;  %7265 = vpow2.f32 %v4949_v55  ;;  %v7360_v55 = vld [vmem:[#allocation9 + $0x28] sm:$0xff]  }
0x1296   :  { %v7242_v52 = vpop.eup %7241  ;;  %v5003_v31 = vmul.f32 %v7240_v23, %v8951_v37  ;;  %v4951_v37 = vmul.f32 1.442695, %v4934_v42 }
0x1297   :  { %v7244_v24 = vpop.eup %7243  ;;  %v5004_v63 = vmul.f32 %v7242_v52, %v8953_v41  ;;  %v4988_v53 = vpack.c.bf16 %v7242_v52, %v7240_v23 }
0x1298   :  { %v7246_v47 = vpop.eup %7245  ;;  %v5001_v0 = vmul.f32 %v7244_v24, %v8957_v35  ;;  %v4987_v20 = vpack.c.bf16 %v7238_v21, %v7244_v24  ;;  %7267 = vpow2.f32 %v4951_v37  ;;  %v7361_v37 = vld [vmem:[#allocation9 + $0x30] sm:$0xff]  }
0x1299   :  { %v7248_v30 = vpop.eup %7247  ;;  %v5012_v22 = vpack.c.bf16 %v5004_v63, %v5003_v31  ;;  %v4999_v45 = vmul.f32 %v7246_v47, %v8926_v59 }
0x129a   :  { %v7250_v5 = vpop.eup %7249  ;;  %v5011_v13 = vpack.c.bf16 %v5002_v38, %v5001_v0  ;;  %v5000_v41 = vmul.f32 %v7248_v30, %v8932_v48  ;;  %v4986_v6 = vpack.c.bf16 %v7248_v30, %v7246_v47 }
0x129b   :  { %5013 = vmatprep.subr.bf16.mxu0 %v5012_v22  ;;  %v7252_v27 = vpop.eup %7251  ;;  %v4997_v58 = vmul.f32 %v7250_v5, %v8936_v17 }
0x129c   :  { %5014 = vmatpush1.bf16.msra.mxu0 %v4988_v53  ;;  %v7254_v35 = vpop.eup %7253  ;;  %v5010_v51 = vpack.c.bf16 %v5000_v41, %v4999_v45  ;;  %v4998_v61 = vmul.f32 %v7252_v27, %v8938_v54  ;;  %v4985_v21 = vpack.c.bf16 %v7252_v27, %v7250_v5  ;;  %v7357_v53 = vld [vmem:[#allocation9 + $0x10] sm:$0xff]   ;;  %v7362_v5 = vld [vmem:[#allocation9 + $0x38] sm:$0xff]   ;;  %v6871_v41 = vld [vmem:[#allocation11 + $0x168] sm:$0xff]  }
0x129d   :  { %5015 = vmatprep.subr.bf16.mxu0 %v5011_v13  ;;  %v7256_v49 = vpop.eup %7255  ;;  %v4995_v48 = vmul.f32 %v7254_v35, %v8912_v36  ;;  %v6869_v13 = vld [vmem:[#allocation11 + $0x178] sm:$0xff]   ;;  %v6870_v45 = vld [vmem:[#allocation11 + $0x170] sm:$0xff]   ;;  %v6872_v27 = vld [vmem:[#allocation11 + $0x160] sm:$0xff]  }
0x129e   :  { %v7258_v59 = vpop.eup %7257  ;;  %v5009_v50 = vpack.c.bf16 %v4998_v61, %v4997_v58  ;;  %v4996_v23 = vmul.f32 %v7256_v49, %v8920_v7  ;;  %v4984_v42 = vpack.c.bf16 %v7256_v49, %v7254_v35  ;;  %6685 = vmatprep.subr.bf16.mxu1 %v6869_v13  ;;  %v6874_v35 = vld [vmem:[#allocation11 + $0x150] sm:$0xff]   ;;  %v9031_v58 = vld [vmem:[#allocation12 + $0x178] sm:$0xff]  }
0x129f   :  { %v7260_v57 = vpop.eup %7259  ;;  %v4993_v17 = vmul.f32 %v7258_v59, %v8916_v1  ;;  %6686 = vmatpush3.bf16.msra.mxu1 %v6869_v13 }
0x12a0   :  { %5016 = vmatpush1.bf16.msra.mxu0 %v4987_v20  ;;  %v7262_v52 = vpop.eup %7261  ;;  %v5008_v31 = vpack.c.bf16 %v4996_v23, %v4995_v48  ;;  %v4994_v54 = vmul.f32 %v7260_v57, %v8922_v11  ;;  %v4983_v9 = vpack.c.bf16 %v7260_v57, %v7258_v59  ;;  %6687 = vmatprep.subr.bf16.mxu1 %v6870_v45  ;;  %v6873_v20 = vld [vmem:[#allocation11 + $0x158] sm:$0xff]  }
0x12a1   :  { %5017 = vmatprep.subr.bf16.mxu0 %v5010_v51  ;;  %v7264_v28 = vpop.eup %7263  ;;  %v4991_v36 = vmul.f32 %v7262_v52, %v8910_v29  ;;  %v7355_v29 = vld [vmem:[#allocation9] sm:$0xff]  }
0x12a2   :  { %v7266_v24 = vpop.eup %7265  ;;  %v5007_v63 = vpack.c.bf16 %v4994_v54, %v4993_v17  ;;  %v4992_v7 = vmul.f32 %v7264_v28, %v8918_v25  ;;  %v4982_v11 = vpack.c.bf16 %v7264_v28, %v7262_v52  ;;  %v7356_v25 = vld [vmem:[#allocation9 + $0x8] sm:$0xff]   ;;  %v6876_v51 = vld [vmem:[#allocation11 + $0x140] sm:$0xff]  }
0x12a3   :  { %v4989_v0 = vmul.f32 %v7266_v24, %v8914_v56  ;;  %v7358_v56 = vld [vmem:[#allocation9 + $0x18] sm:$0xff]   ;;  %6688 = vmatpush3.bf16.msra.mxu1 %v6870_v45 }
0x12a4   :  { %5018 = vmatpush1.bf16.msra.mxu0 %v4986_v6  ;;  %v5006_v47 = vpack.c.bf16 %v4992_v7, %v4991_v36  ;;  %6689 = vmatprep.subr.bf16.mxu1 %v6871_v41 }
0x12a5   :  { %5019 = vmatprep.subr.bf16.mxu0 %v5009_v50  ;;  %v7268_v38 = vpop.eup %7267 }
0x12a6   :  { %v4990_v1 = vmul.f32 %v7268_v38, %v8924_v26  ;;  %v4981_v22 = vpack.c.bf16 %v7268_v38, %v7266_v24  ;;  %v7359_v26 = vld [vmem:[#allocation9 + $0x20] sm:$0xff]  }
0x12a7   :  { %6690 = vmatpush3.bf16.msra.mxu1 %v6871_v41 }
0x12a8   :  { %5020 = vmatpush1.bf16.msra.mxu0 %v4985_v21  ;;  %v5005_v30 = vpack.c.bf16 %v4990_v1, %v4989_v0  ;;  %6691 = vmatprep.subr.bf16.mxu1 %v6872_v27 }
0x12a9   :  { %5021 = vmatprep.subr.bf16.mxu0 %v5008_v31 }
0x12ab   :  { %6692 = vmatpush3.bf16.msra.mxu1 %v6872_v27 }
0x12ac   :  { %5022 = vmatpush1.bf16.msra.mxu0 %v4984_v42  ;;  %6693 = vmatprep.subr.bf16.mxu1 %v6873_v20 }
0x12ad   :  { %5023 = vmatprep.subr.bf16.mxu0 %v5007_v63 }
0x12af   :  { %6694 = vmatpush3.bf16.msra.mxu1 %v6873_v20 }
0x12b0   :  { %5024 = vmatpush1.bf16.msra.mxu0 %v4983_v9  ;;  %6695 = vmatprep.subr.bf16.mxu1 %v6874_v35 }
0x12b1   :  { %5025 = vmatprep.subr.bf16.mxu0 %v5006_v47 }
0x12b3   :  { %6696 = vmatpush3.bf16.msra.mxu1 %v6874_v35 }
0x12b4   :  { %5026 = vmatpush1.bf16.msra.mxu0 %v4982_v11 }
0x12b5   :  { %5027 = vmatprep.subr.bf16.mxu0 %v5005_v30 }
0x12b8   :  { %5028 = vmatpush1.bf16.msra.mxu0 %v4981_v22 }
0x12bb   :  { %5046 = vmatmul.mubr.bf16.vlgmr.msra.gmra.mxu0 %v7355_v29 }
0x12bc   :  { %5055 = vmatprep.mubr.bf16.mxu0 %v9170_v39 }
0x12c3   :  { %5056 = vmatmul.mubr.bf16.gmra.mxu0 %v7356_v25 }
0x12c4   :  { %5065 = vmatprep.mubr.bf16.mxu0 %v9170_v39 }
0x12cb   :  { %5066 = vmatmul.mubr.bf16.gmra.mxu0 %v7357_v53 }
0x12cc   :  { %5075 = vmatprep.mubr.bf16.mxu0 %v9170_v39 }
0x12d3   :  { %5076 = vmatmul.mubr.bf16.gmra.mxu0 %v7358_v56 }
0x12d4   :  { %5085 = vmatprep.mubr.bf16.mxu0 %v9170_v39 }
0x12db   :  { %5086 = vmatmul.mubr.bf16.gmra.mxu0 %v7359_v26 }
0x12dc   :  { %5095 = vmatprep.mubr.bf16.mxu0 %v9170_v39 }
0x12e3   :  { %5096 = vmatmul.mubr.bf16.gmra.mxu0 %v7360_v55 }
0x12e4   :  { %5105 = vmatprep.mubr.bf16.mxu0 %v9170_v39 }
0x12eb   :  { %5106 = vmatmul.mubr.bf16.gmra.mxu0 %v7361_v37 }
0x12ec   :  { %5115 = vmatprep.mubr.bf16.mxu0 %v9170_v39  ;;  %v6875_v39 = vld [vmem:[#allocation11 + $0x148] sm:$0xff]  }
0x12ed   :  { %6697 = vmatprep.subr.bf16.mxu1 %v6875_v39 }
0x12ee   :  { %6698 = vmatpush3.bf16.msra.mxu1 %v6875_v39  ;;  %v9179_v39 = vmax.f32 %v8834_v19, 0.0 }
0x12ef   :  { %6699 = vmatprep.subr.bf16.mxu1 %v6876_v51 }
0x12f2   :  { %6700 = vmatpush3.bf16.msra.mxu1 %v6876_v51 }
0x12f3   :  { %5116 = vmatmul.mubr.bf16.gmra.mxu0 %v7362_v5  ;;  %6717 = vmatprep.subr.bf16.mxu1 %v9031_v58 }
0x137b   :  { %v5047_v61 = vpop.f32.mrf.mxu0 }
0x137c   :  { %vm5126_vm0 = vcmp.eq.f32.partialorder %v5047_v61, 0.0 }
0x137d   :  { %v5853_v49 = vsel %vm5126_vm0, 1.0, %v9171_v18  ;;  %v5049_v6 = vpop.f32.mrf.mxu0 }
0x137e   :  { %v5174_v59 = vadd.f32 %v5853_v49, %v5047_v61 }
0x137f   :  { %v5051_v50 = vpop.f32.mrf.mxu0 }
0x1380   :  { %7269 = vrcp.f32 %v5174_v59  ;;  %vm5127_vm1 = vcmp.eq.f32.partialorder %v5051_v50, 0.0 }
0x1381   :  { %v5854_v48 = vsel %vm5127_vm1, 1.0, %v9171_v18  ;;  %v5053_v23 = vpop.f32.mrf.mxu0 }
0x1382   :  { %v5175_v57 = vadd.f32 %v5854_v48, %v5051_v50  ;;  %v6878_v48 = vld [vmem:[#allocation12 + $0x170] sm:$0xff]  }
0x1383   :  { %v5057_v21 = vpop.f32.mrf.mxu0 }
0x1384   :  { %7271 = vrcp.f32 %v5175_v57  ;;  %vm5128_vm2 = vcmp.eq.f32.partialorder %v5057_v21, 0.0 }
0x1385   :  { %v5855_v52 = vsel %vm5128_vm2, 1.0, %v9171_v18  ;;  %v5059_v31 = vpop.f32.mrf.mxu0 }
0x1386   :  { %v5176_v17 = vadd.f32 %v5855_v52, %v5057_v21 }
0x1387   :  { %v5061_v54 = vpop.f32.mrf.mxu0 }
0x1388   :  { %7273 = vrcp.f32 %v5176_v17  ;;  %vm5129_vm3 = vcmp.eq.f32.partialorder %v5061_v54, 0.0 }
0x1389   :  { %v5856_v28 = vsel %vm5129_vm3, 1.0, %v9171_v18  ;;  %v5063_v42 = vpop.f32.mrf.mxu0 }
0x138a   :  { %v5177_v24 = vadd.f32 %v5856_v28, %v5061_v54  ;;  %v9180_v54 = vmax.f32 %v8840_v12, 0.0 }
0x138b   :  { %v5067_v63 = vpop.f32.mrf.mxu0 }
0x138c   :  { %7275 = vrcp.f32 %v5177_v24  ;;  %vm5130_vm4 = vcmp.eq.f32.partialorder %v5067_v63, 0.0 }
0x138d   :  { %v7270_v36 = vpop.eup %7269  ;;  %v5857_v7 = vsel %vm5130_vm4, 1.0, %v9171_v18  ;;  %v5069_v38 = vpop.f32.mrf.mxu0 }
0x138e   :  { %v5178_v9 = vadd.f32 %v5857_v7, %v5067_v63  ;;  %v5206_v0 = vmul.f32 %v7270_v36, %v5049_v6 }
0x138f   :  { %v5071_v47 = vpop.f32.mrf.mxu0 }
0x1390   :  { %7277 = vrcp.f32 %v5178_v9  ;;  %vm5131_vm5 = vcmp.eq.f32.partialorder %v5071_v47, 0.0  ;;  %v5222_v53 = vadd.f32 %v5206_v0, %v4717_v60  ;;  %v6880_v9 = vld [vmem:[#allocation12 + $0x160] sm:$0xff]  }
0x1391   :  { %v7272_v1 = vpop.eup %7271  ;;  %v5858_v11 = vsel %vm5131_vm5, 1.0, %v9171_v18  ;;  %v5073_v30 = vpop.f32.mrf.mxu0 }
0x1392   :  { %v5207_v22 = vmul.f32 %v7272_v1, %v5053_v23  ;;  %v5179_v29 = vadd.f32 %v5858_v11, %v5071_v47 }
0x1393   :  { %v5077_v25 = vpop.f32.mrf.mxu0 }
0x1394   :  { %v5223_v56 = vadd.f32 %v5207_v22, %v4718_v2  ;;  %7279 = vrcp.f32 %v5179_v29  ;;  %vm5132_vm6 = vcmp.eq.f32.partialorder %v5077_v25, 0.0  ;;  %v6881_v22 = vld [vmem:[#allocation12 + $0x158] sm:$0xff]  }
0x1395   :  { %v7274_v26 = vpop.eup %7273  ;;  %v5859_v55 = vsel %vm5132_vm6, 1.0, %v9171_v18  ;;  %v5079_v37 = vpop.f32.mrf.mxu0 }
0x1396   :  { %v5180_v5 = vadd.f32 %v5859_v55, %v5077_v25  ;;  %v5238_v13 = vpack.c.bf16 %v5223_v56, %v5222_v53  ;;  %v5208_v41 = vmul.f32 %v7274_v26, %v5059_v31  ;;  %v6879_v31 = vld [vmem:[#allocation12 + $0x168] sm:$0xff]   ;;  %v9182_v25 = vmax.f32 %v8838_v10, 0.0 }
0x1397   :  { %v5081_v45 = vpop.f32.mrf.mxu0  ;;  %v9183_v56 = vmax.f32 %v8842_v62, 0.0 }
0x1398   :  { %7281 = vrcp.f32 %v5180_v5  ;;  %vm5133_vm7 = vcmp.eq.f32.partialorder %v5081_v45, 0.0  ;;  %6701 = vmatprep.mubr.bf16.mxu1 %v5238_v13  ;;  %v5224_v35 = vadd.f32 %v5208_v41, %v4719_v14 }
0x1399   :  { %v7276_v27 = vpop.eup %7275  ;;  %v5860_v16 = vsel %vm5133_vm7, 1.0, %v9171_v18  ;;  %v5083_v60 = vpop.f32.mrf.mxu0 }
0x139a   :  { %v5209_v20 = vmul.f32 %v7276_v27, %v5063_v42  ;;  %v5181_v33 = vadd.f32 %v5860_v16, %v5081_v45  ;;  %v9181_v42 = vmax.f32 %v8844_v3, 0.0 }
0x139b   :  { %v5087_v2 = vpop.f32.mrf.mxu0 }
0x139c   :  { %v5225_v51 = vadd.f32 %v5209_v20, %v9179_v39  ;;  %7283 = vrcp.f32 %v5181_v33  ;;  %vm5134_vm8 = vcmp.eq.f32.partialorder %v5087_v2, 0.0  ;;  %v9185_v39 = vmax.f32 %v8852_v44, 0.0 }
0x139d   :  { %v7278_v61 = vpop.eup %7277  ;;  %v5861_v49 = vsel %vm5134_vm8, 1.0, %v9171_v18  ;;  %v5089_v6 = vpop.f32.mrf.mxu0  ;;  %v9186_v44 = vmax.f32 %v8846_v15, 0.0 }
0x139e   :  { %v5239_v59 = vpack.c.bf16 %v5225_v51, %v5224_v35  ;;  %v5182_v50 = vadd.f32 %v5861_v49, %v5087_v2  ;;  %v5210_v57 = vmul.f32 %v7278_v61, %v5069_v38  ;;  %v9184_v2 = vmax.f32 %v8848_v43, 0.0 }
0x139f   :  { %v5091_v23 = vpop.f32.mrf.mxu0 }
0x13a0   :  { %7285 = vrcp.f32 %v5182_v50  ;;  %vm5135_vm9 = vcmp.eq.f32.partialorder %v5091_v23, 0.0  ;;  %6702 = vmatmul.mubr.bf16.vlgmr.msra.gmra.mxu1 %v5239_v59  ;;  %v5226_v28 = vadd.f32 %v5210_v57, %v9180_v54 }
0x13a1   :  { %v7280_v21 = vpop.eup %7279  ;;  %v5862_v46 = vsel %vm5135_vm9, 1.0, %v9171_v18  ;;  %v5093_v14 = vpop.f32.mrf.mxu0  ;;  %6718 = vmatpush3.bf16.msra.mxu1 %v9031_v58 }
0x13a2   :  { %v5211_v19 = vmul.f32 %v7280_v21, %v5073_v30  ;;  %v5183_v52 = vadd.f32 %v5862_v46, %v5091_v23  ;;  %6719 = vmatprep.subr.bf16.mxu1 %v6878_v48 }
0x13a3   :  { %v5097_v17 = vpop.f32.mrf.mxu0 }
0x13a4   :  { %v5227_v24 = vadd.f32 %v5211_v19, %v9181_v42  ;;  %7287 = vrcp.f32 %v5183_v52  ;;  %vm5136_vm10 = vcmp.eq.f32.partialorder %v5097_v17, 0.0  ;;  %v9187_v19 = vmax.f32 %v8850_v40, 0.0 }
0x13a5   :  { %v7282_v63 = vpop.eup %7281  ;;  %v5863_v36 = vsel %vm5136_vm10, 1.0, %v9171_v18  ;;  %v5099_v7 = vpop.f32.mrf.mxu0  ;;  %6720 = vmatpush3.bf16.msra.mxu1 %v6878_v48 }
0x13a6   :  { %v5184_v38 = vadd.f32 %v5863_v36, %v5097_v17  ;;  %v5240_v58 = vpack.c.bf16 %v5227_v24, %v5226_v28  ;;  %6721 = vmatprep.subr.bf16.mxu1 %v6879_v31  ;;  %v5212_v0 = vmul.f32 %v7282_v63, %v5079_v37  ;;  %v9188_v24 = vmax.f32 %v8856_v4, 0.0  ;;  %v6882_v4 = vld [vmem:[#allocation12 + $0x150] sm:$0xff]  }
0x13a7   :  { %v5101_v47 = vpop.f32.mrf.mxu0 }
0x13a8   :  { %7289 = vrcp.f32 %v5184_v38  ;;  %vm5137_vm11 = vcmp.eq.f32.partialorder %v5101_v47, 0.0  ;;  %6705 = vmatprep.mubr.bf16.mxu1 %v5240_v58  ;;  %v5228_v53 = vadd.f32 %v5212_v0, %v9182_v25 }
0x13a9   :  { %v7284_v12 = vpop.eup %7283  ;;  %v5864_v3 = vsel %vm5137_vm11, 1.0, %v9171_v18  ;;  %v5103_v1 = vpop.f32.mrf.mxu0  ;;  %6722 = vmatpush3.bf16.msra.mxu1 %v6879_v31 }
0x13aa   :  { %v5213_v11 = vmul.f32 %v7284_v12, %v5083_v60  ;;  %v5185_v30 = vadd.f32 %v5864_v3, %v5101_v47  ;;  %6723 = vmatprep.subr.bf16.mxu1 %v6880_v9  ;;  %v9190_v47 = vmax.f32 %v8854_v34, 0.0  ;;  %v9191_v12 = vmax.f32 %v8858_v8, 0.0 }
0x13ab   :  { %v5107_v29 = vpop.f32.mrf.mxu0 }
0x13ac   :  { %v5229_v26 = vadd.f32 %v5213_v11, %v9183_v56  ;;  %7291 = vrcp.f32 %v5185_v30  ;;  %vm5138_vm12 = vcmp.eq.f32.partialorder %v5107_v29, 0.0  ;;  %v6884_v11 = vld [vmem:[#allocation12 + $0x140] sm:$0xff]  }
0x13ad   :  { %v7286_v55 = vpop.eup %7285  ;;  %v5865_v37 = vsel %vm5138_vm12, 1.0, %v9171_v18  ;;  %v5109_v5 = vpop.f32.mrf.mxu0  ;;  %6724 = vmatpush3.bf16.msra.mxu1 %v6880_v9 }
0x13ae   :  { %v5241_v13 = vpack.c.bf16 %v5229_v26, %v5228_v53  ;;  %v5186_v45 = vadd.f32 %v5865_v37, %v5107_v29  ;;  %6725 = vmatprep.subr.bf16.mxu1 %v6881_v22  ;;  %v5214_v27 = vmul.f32 %v7286_v55, %v5089_v6 }
0x13af   :  { %v5111_v41 = vpop.f32.mrf.mxu0 }
0x13b0   :  { %7293 = vrcp.f32 %v5186_v45  ;;  %vm5139_vm13 = vcmp.eq.f32.partialorder %v5111_v41, 0.0  ;;  %6706 = vmatmul.mubr.bf16.gmra.mxu1 %v5241_v13  ;;  %v5230_v35 = vadd.f32 %v5214_v27, %v9184_v2 }
0x13b1   :  { %v7288_v10 = vpop.eup %7287  ;;  %v5866_v16 = vsel %vm5139_vm13, 1.0, %v9171_v18  ;;  %v5113_v62 = vpop.f32.mrf.mxu0  ;;  %6726 = vmatpush3.bf16.msra.mxu1 %v6881_v22 }
0x13b2   :  { %v5215_v60 = vmul.f32 %v7288_v10, %v5093_v14  ;;  %v5187_v20 = vadd.f32 %v5866_v16, %v5111_v41  ;;  %6727 = vmatprep.subr.bf16.mxu1 %v6882_v4 }
0x13b3   :  { %v5117_v33 = vpop.f32.mrf.mxu0 }
0x13b4   :  { %v5231_v51 = vadd.f32 %v5215_v60, %v9185_v39  ;;  %7295 = vrcp.f32 %v5187_v20  ;;  %vm5140_vm14 = vcmp.eq.f32.partialorder %v5117_v33, 0.0 }
0x13b5   :  { %v7290_v61 = vpop.eup %7289  ;;  %v5867_v49 = vsel %vm5140_vm14, 1.0, %v9171_v18  ;;  %v5119_v6 = vpop.f32.mrf.mxu0  ;;  %6728 = vmatpush3.bf16.msra.mxu1 %v6882_v4 }
0x13b6   :  { %v5188_v59 = vadd.f32 %v5867_v49, %v5117_v33  ;;  %v5242_v50 = vpack.c.bf16 %v5231_v51, %v5230_v35  ;;  %v5216_v23 = vmul.f32 %v7290_v61, %v5099_v7 }
0x13b7   :  { %v5121_v48 = vpop.f32.mrf.mxu0 }
0x13b8   :  { %7297 = vrcp.f32 %v5188_v59  ;;  %vm5141_vm15 = vcmp.eq.f32.partialorder %v5121_v48, 0.0  ;;  %6709 = vmatprep.mubr.bf16.mxu1 %v5242_v50  ;;  %v5232_v14 = vadd.f32 %v5216_v23, %v9186_v44 }
0x13b9   :  { %v7292_v57 = vpop.eup %7291  ;;  %v5868_v43 = vsel %vm5141_vm15, 1.0, %v9171_v18  ;;  %v9189_v18 = vmax.f32 %v8862_v32, 0.0  ;;  %v5123_v40 = vpop.f32.mrf.mxu0  ;;  %v6883_v32 = vld [vmem:[#allocation12 + $0x148] sm:$0xff]  }
0x13ba   :  { %v5217_v21 = vmul.f32 %v7292_v57, %v5103_v1  ;;  %v5189_v46 = vadd.f32 %v5868_v43, %v5121_v48  ;;  %6729 = vmatprep.subr.bf16.mxu1 %v6883_v32 }
0x13bb   :  { %6730 = vmatpush3.bf16.msra.mxu1 %v6883_v32 }
0x13bc   :  { %v5233_v52 = vadd.f32 %v5217_v21, %v9187_v19  ;;  %7299 = vrcp.f32 %v5189_v46  ;;  %6731 = vmatprep.subr.bf16.mxu1 %v6884_v11 }
0x13bd   :  { %v7294_v31 = vpop.eup %7293 }
0x13be   :  { %v5243_v17 = vpack.c.bf16 %v5233_v52, %v5232_v14  ;;  %v5218_v54 = vmul.f32 %v7294_v31, %v5109_v5 }
0x13bf   :  { %6732 = vmatpush3.bf16.msra.mxu1 %v6884_v11 }
0x13c0   :  { %6710 = vmatmul.mubr.bf16.gmra.mxu1 %v5243_v17  ;;  %v5234_v63 = vadd.f32 %v5218_v54, %v9188_v24 }
0x13c1   :  { %v7296_v28 = vpop.eup %7295 }
0x13c2   :  { %v5219_v42 = vmul.f32 %v7296_v28, %v5113_v62 }
0x13c4   :  { %v5235_v36 = vadd.f32 %v5219_v42, %v9189_v18 }
0x13c5   :  { %v7298_v7 = vpop.eup %7297 }
0x13c6   :  { %v5244_v38 = vpack.c.bf16 %v5235_v36, %v5234_v63  ;;  %v5220_v15 = vmul.f32 %v7298_v7, %v5119_v6 }
0x13c8   :  { %6713 = vmatprep.mubr.bf16.mxu1 %v5244_v38  ;;  %v5236_v0 = vadd.f32 %v5220_v15, %v9190_v47 }
0x13c9   :  { %v7300_v58 = vpop.eup %7299 }
0x13ca   :  { %v5221_v9 = vmul.f32 %v7300_v58, %v5123_v40 }
0x13cc   :  { %v5237_v3 = vadd.f32 %v5221_v9, %v9191_v12 }
0x13ce   :  { %v5245_v1 = vpack.c.bf16 %v5237_v3, %v5236_v0 }
0x13d0   :  { %6714 = vmatmul.mubr.bf16.gmra.mxu1 %v5245_v1 }
0x1460   :  { %v6703_v30 = vpop.f32.mrf.mxu1 }
0x1461   :  { %v5410_v8 = vmax.f32 %v6703_v30, 0.0 }
0x1462   :  { %v5345_v22 = vpop.f32.mrf.mxu1 }
0x1463   :  { %v5408_v53 = vmax.f32 %v5345_v22, 0.0 }
0x1464   :  { %v6704_v29 = vpop.f32.mrf.mxu1 }
0x1465   :  { %v5411_v25 = vmax.f32 %v6704_v29, 0.0 }
0x1466   :  { %v5348_v34 = vpop.f32.mrf.mxu1 }
0x1467   :  { %v5409_v56 = vmax.f32 %v5348_v34, 0.0  ;;  %v5425_v55 = vpack.c.bf16 %v5411_v25, %v5410_v8 }
0x1469   :  { %v5424_v26 = vpack.c.bf16 %v5409_v56, %v5408_v53 }
0x146b   :  { %6733 = vmatprep.mubr.bf16.mxu1 %v5424_v26 }
0x146c   :  { %6734 = vmatmul.mubr.bf16.vlgmr.msra.gmra.mxu1 %v5425_v55 }
0x1470   :  { %v6707_v37 = vpop.f32.mrf.mxu1 }
0x1471   :  { %v5414_v16 = vmax.f32 %v6707_v37, 0.0 }
0x1472   :  { %v5361_v5 = vpop.f32.mrf.mxu1 }
0x1473   :  { %v5412_v27 = vmax.f32 %v5361_v5, 0.0 }
0x1474   :  { %v6708_v13 = vpop.f32.mrf.mxu1 }
0x1475   :  { %v5415_v45 = vmax.f32 %v6708_v13, 0.0 }
0x1476   :  { %v5364_v41 = vpop.f32.mrf.mxu1 }
0x1477   :  { %v5413_v10 = vmax.f32 %v5364_v41, 0.0  ;;  %v5427_v60 = vpack.c.bf16 %v5415_v45, %v5414_v16 }
0x1479   :  { %v5426_v62 = vpack.c.bf16 %v5413_v10, %v5412_v27 }
0x147b   :  { %6737 = vmatprep.mubr.bf16.mxu1 %v5426_v62 }
0x147c   :  { %6738 = vmatmul.mubr.bf16.gmra.mxu1 %v5427_v60 }
0x1480   :  { %v6711_v20 = vpop.f32.mrf.mxu1 }
0x1481   :  { %v5418_v49 = vmax.f32 %v6711_v20, 0.0 }
0x1482   :  { %v5377_v33 = vpop.f32.mrf.mxu1 }
0x1483   :  { %v5416_v51 = vmax.f32 %v5377_v33, 0.0 }
0x1484   :  { %v6712_v2 = vpop.f32.mrf.mxu1 }
0x1485   :  { %v5419_v35 = vmax.f32 %v6712_v2, 0.0 }
0x1486   :  { %v5380_v39 = vpop.f32.mrf.mxu1 }
0x1487   :  { %v5417_v61 = vmax.f32 %v5380_v39, 0.0  ;;  %v5429_v59 = vpack.c.bf16 %v5419_v35, %v5418_v49 }
0x1489   :  { %v5428_v6 = vpack.c.bf16 %v5417_v61, %v5416_v51 }
0x148b   :  { %6741 = vmatprep.mubr.bf16.mxu1 %v5428_v6 }
0x148c   :  { %6742 = vmatmul.mubr.bf16.gmra.mxu1 %v5429_v59 }
0x1490   :  { %v6715_v50 = vpop.f32.mrf.mxu1 }
0x1491   :  { %v5422_v44 = vmax.f32 %v6715_v50, 0.0 }
0x1492   :  { %v5393_v48 = vpop.f32.mrf.mxu1 }
0x1493   :  { %v5420_v21 = vmax.f32 %v5393_v48, 0.0 }
0x1494   :  { %v6716_v23 = vpop.f32.mrf.mxu1 }
0x1495   :  { %v5423_v57 = vmax.f32 %v6716_v23, 0.0 }
0x1496   :  { %v5396_v43 = vpop.f32.mrf.mxu1 }
0x1497   :  { %v5421_v46 = vmax.f32 %v5396_v43, 0.0  ;;  %v5431_v19 = vpack.c.bf16 %v5423_v57, %v5422_v44 }
0x1499   :  { %v5430_v14 = vpack.c.bf16 %v5421_v46, %v5420_v21 }
0x149b   :  { %6745 = vmatprep.mubr.bf16.mxu1 %v5430_v14 }
0x149c   :  { %6746 = vmatmul.mubr.bf16.gmra.mxu1 %v5431_v19 }
0x149d   :  { %7526 = shalt.err (!%p7523_p2)
}
0x149e   :  { %5649 = dma.vmem_to_hbm [thread:$0]  %s5644_s18, 2048, %s9105_s10, [#allocation18], %s7575_s4, %s7575_s4, %s7576_s12  }
0x149f   :  { %s7584_s10 = smov [#allocation16]  }
0x14a0   :  { %s5631_s22 = sshll.u32 %s7584_s10, 4  ;;  %s5632_s22 = int_to_ptr.vmem [resolvable:$true] %s5631_s22 }
0x14a1   :  { %s7535_s0 = scalar_lea.vmem %s5632_s22, 2048  ;;  %p7540_p4 = scmp.lt.s32.totalorder %s5632_s22, %s5632_s22 }
0x14a2   :  { %p7536_p3 = scmp.ne.s32.totalorder %s5632_s22, %s7535_s0  ;;  %p7541_p5 = scmp.lt.s32.totalorder %s7535_s0, %s7535_s0 }
0x14a4   :  { %p7542_p6 = por %p7541_p5, %p7540_p4 }
0x14a6   :  { %p7543_p7 = pnand %p7542_p6, %p7536_p3 }
0x152c   :  { %v6735_v52 = vpop.f32.mrf.mxu1 }
0x152d   :  { %v5596_v31 = vmax.f32 %v6735_v52, 0.0 }
0x152e   :  { %v5531_v17 = vpop.f32.mrf.mxu1 }
0x152f   :  { %5612 = vst [vmem:[#allocation16 + $0x10] sm:$0xff] %v5596_v31  ;;  %v5594_v54 = vmax.f32 %v5531_v17, 0.0 }
0x1530   :  { %v6736_v28 = vpop.f32.mrf.mxu1 }
0x1531   :  { %5610 = vst [vmem:[#allocation16] sm:$0xff] %v5594_v54  ;;  %v5597_v42 = vmax.f32 %v6736_v28, 0.0 }
0x1532   :  { %v5534_v24 = vpop.f32.mrf.mxu1 }
0x1533   :  { %5613 = vst [vmem:[#allocation16 + $0x18] sm:$0xff] %v5597_v42  ;;  %v5595_v63 = vmax.f32 %v5534_v24, 0.0 }
0x1535   :  { %5611 = vst [vmem:[#allocation16 + $0x8] sm:$0xff] %v5595_v63 }
0x153c   :  { %v6739_v18 = vpop.f32.mrf.mxu1 }
0x153d   :  { %v5600_v36 = vmax.f32 %v6739_v18, 0.0 }
0x153e   :  { %v5547_v7 = vpop.f32.mrf.mxu1 }
0x153f   :  { %5616 = vst [vmem:[#allocation16 + $0x30] sm:$0xff] %v5600_v36  ;;  %v5598_v38 = vmax.f32 %v5547_v7, 0.0 }
0x1540   :  { %v6740_v15 = vpop.f32.mrf.mxu1 }
0x1541   :  { %5614 = vst [vmem:[#allocation16 + $0x20] sm:$0xff] %v5598_v38  ;;  %v5601_v58 = vmax.f32 %v6740_v15, 0.0 }
0x1542   :  { %v5550_v40 = vpop.f32.mrf.mxu1 }
0x1543   :  { %5617 = vst [vmem:[#allocation16 + $0x38] sm:$0xff] %v5601_v58  ;;  %v5599_v9 = vmax.f32 %v5550_v40, 0.0 }
0x1545   :  { %5615 = vst [vmem:[#allocation16 + $0x28] sm:$0xff] %v5599_v9 }
0x154c   :  { %v6743_v47 = vpop.f32.mrf.mxu1 }
0x154d   :  { %v5604_v0 = vmax.f32 %v6743_v47, 0.0 }
0x154e   :  { %v5563_v12 = vpop.f32.mrf.mxu1 }
0x154f   :  { %5620 = vst [vmem:[#allocation16 + $0x50] sm:$0xff] %v5604_v0  ;;  %v5602_v3 = vmax.f32 %v5563_v12, 0.0 }
0x1550   :  { %v6744_v1 = vpop.f32.mrf.mxu1 }
0x1551   :  { %5618 = vst [vmem:[#allocation16 + $0x40] sm:$0xff] %v5602_v3  ;;  %v5605_v4 = vmax.f32 %v6744_v1, 0.0 }
0x1552   :  { %v5566_v32 = vpop.f32.mrf.mxu1 }
0x1553   :  { %5621 = vst [vmem:[#allocation16 + $0x58] sm:$0xff] %v5605_v4  ;;  %v5603_v11 = vmax.f32 %v5566_v32, 0.0 }
0x1555   :  { %5619 = vst [vmem:[#allocation16 + $0x48] sm:$0xff] %v5603_v11 }
0x155c   :  { %v6747_v30 = vpop.f32.mrf.mxu1 }
0x155d   :  { %v5608_v22 = vmax.f32 %v6747_v30, 0.0 }
0x155e   :  { %v5579_v29 = vpop.f32.mrf.mxu1 }
0x155f   :  { %5624 = vst [vmem:[#allocation16 + $0x70] sm:$0xff] %v5608_v22  ;;  %v5606_v25 = vmax.f32 %v5579_v29, 0.0 }
0x1560   :  { %v6748_v34 = vpop.f32.mrf.mxu1 }
0x1561   :  { %5622 = vst [vmem:[#allocation16 + $0x60] sm:$0xff] %v5606_v25  ;;  %v5609_v53 = vmax.f32 %v6748_v34, 0.0 }
0x1562   :  { %v5582_v56 = vpop.f32.mrf.mxu1 }
0x1563   :  { %5625 = vst [vmem:[#allocation16 + $0x78] sm:$0xff] %v5609_v53  ;;  %v5607_v8 = vmax.f32 %v5582_v56, 0.0 }
0x1565   :  { %5623 = vst [vmem:[#allocation16 + $0x68] sm:$0xff] %v5607_v8 }
0x1566   :  { %7546 = shalt.err (!%p7543_p7)
}
0x1567   :  { %5637 = dma.vmem_to_hbm [thread:$0]  %s5632_s22, 2048, %s9104_s9, [#allocation4], %s7575_s4, %s7575_s4, %s7576_s12  }
0x1568   :  { %7565 = dma.done.wait [#allocation4], 2048  }
0x1569   :  { %7566 = vsyncadd [#allocation4], 4294965248 }
0x156a   :  { %7567 = dma.done.wait [#allocation18], 2048  }
0x156b   :  { %7568 = vsyncadd [#allocation18], 4294965248 }
0x156c   :  { %5656 = vsyncpa [#allocation3], 1 }
0x156d   :  { %5657 = vsyncpa [#allocation7], 1 }
0x156e   :  { %5658 = vsyncpa [#allocation10], 1 }
0x156f   :  { %5659 = vsyncpa [#allocation13], 1 }
0x1570   :  { %5660 = vsyncpa [#allocation4], 1 }
0x1571   :  { %5661 = vsyncpa [#allocation18], 1 }
0x1572   :  { %5662 = vsyncpa [#allocation5], 1 }

</bundles_post_ra>
